<compile_context>
chip_gen: v6e
topology: v6e:2x2x1
jax: 0.10.0
libtpu: 0.0.40
codegen_flags: <defaults>
</compile_context>

<pallas_src>
import functools

import numpy as np
import jax
import jax.numpy as jnp
from jax.experimental import pallas as pl
from jax.experimental.pallas import tpu as pltpu


# ----------------------------------------------------------------------------
# Pallas kernels: dilated 3x3 conv (BN folded), optional fused residual 1x1
# ----------------------------------------------------------------------------
def _dconv_taps(x_ref, w_ref, TH, W, dil):
    """9-tap dilated 3x3 conv on one TH-row stripe as 3 matmuls with K=3*Cin.

    x_ref: (Hp, Wp, Cin) bf16 padded image (resident across row tiles).
    w_ref: (3, 3*Cin, Cout) bf16, w_ref[kx][ky*Cin + ci, co].
    Returns (TH*W, Cout) float32 accumulator.
    """
    cin3 = w_ref.shape[1]
    cout = w_ref.shape[2]
    row0 = pl.multiple_of(pl.program_id(1) * TH, TH)

    # ky taps are outer-dim (row) offsets -> cheap dynamic slices, no sublane
    # relayout; stack them along the contraction axis for deeper MXU matmuls.
    xcat = jnp.concatenate(
        [x_ref[pl.ds(row0 + k * dil, TH), :, :] for k in range(3)], axis=-1
    )  # (TH, Wp, 3*Cin) bf16

    acc = jnp.zeros((TH * W, cout), jnp.float32)
    for kx in range(3):
        xs = xcat[:, kx * dil:kx * dil + W, :]                 # (TH, W, 3*Cin)
        acc = acc + jnp.dot(xs.reshape(TH * W, cin3), w_ref[kx],
                            preferred_element_type=jnp.float32)
    return acc


def _dconv_kernel(x_ref, w_ref, b_ref, o_ref, *, TH, W, dil, relu):
    """Dilated 3x3 conv (BN folded) [+ ReLU] on one (batch, row-tile) block."""
    cout = o_ref.shape[-1]
    y = _dconv_taps(x_ref, w_ref, TH, W, dil) + b_ref[...]     # f32 epilogue
    if relu:
        y = jnp.maximum(y, 0.0)
    o_ref[...] = y.reshape(TH, W, cout).astype(o_ref.dtype)


def _dconv_res_kernel(x_ref, w_ref, b_ref, x0_ref, w1_ref, o_ref, *, TH, W, dil):
    """Dilated 3x3 conv + fused residual 1x1 conv + ReLU on one block.

    The 1x1 bias is pre-folded into b_ref by the wrapper/init.
    """
    cout = o_ref.shape[-1]
    cin = x0_ref.shape[-1]
    y = _dconv_taps(x_ref, w_ref, TH, W, dil)
    # Residual branch rides on the already-resident identity tile -> no extra
    # HBM round trip and no separate pointwise kernel launch.
    res = jnp.dot(x0_ref[...].reshape(TH * W, cin), w1_ref[...],
                  preferred_element_type=jnp.float32)
    y = jnp.maximum(y + res + b_ref[...], 0.0)                 # block ReLU
    o_ref[...] = y.reshape(TH, W, cout).astype(o_ref.dtype)


# ----------------------------------------------------------------------------
# Pallas wrapper
# ----------------------------------------------------------------------------
def _pick_row_tile(H, W, cout):
    """Largest power-of-two row tile dividing H whose f32 accumulator <=64 KiB."""
    budget_rows = max(8, (64 * 1024) // max(W * cout * 4, 1))
    for cand in (128, 64, 32, 16, 8):
        if cand <= budget_rows and H % cand == 0:
            return cand
    return H  # small / odd images: single stripe


def dilated_conv3x3(x_nhwc, wk, b, dil, relu=True, residual_in=None, w1x1=None):
    """x: (N,H,W,Cin); wk: (3, 3*Cin, Cout); b: (Cout,). 'same' conv, pad=dil.

    If residual_in/w1x1 are given, fuses out = relu(conv3x3(x) + residual_in@w1x1 + b).
    Activations/weights are bf16 on the MXU; accumulation and epilogue are f32.
    """
    x_nhwc = x_nhwc.astype(jnp.bfloat16)
    wk = wk.astype(jnp.bfloat16)
    N, H, W, Cin = x_nhwc.shape
    Cout = wk.shape[-1]
    pad = dil
    # TODO(synk): the zero halo is materialized once per conv via jnp.pad and the
    # padded image is kept whole (resident) per batch; for very large SR inputs
    # switch the x block to a manual halo DMA (pl.ANY + make_async_copy) to bound
    # input VMEM and drop the padded HBM copy.
    xp = jnp.pad(x_nhwc, ((0, 0), (pad, pad), (pad, pad), (0, 0)))
    Hp, Wp = H + 2 * pad, W + 2 * pad

    TH = _pick_row_tile(H, W, Cout)
    nH = H // TH
    b2 = b.reshape(1, Cout).astype(jnp.float32)

    # x block: whole padded image, resident across the row-tile axis (only
    # re-DMA'd when the batch index changes).  Output is a TH-row stripe.
    x_spec = pl.BlockSpec((None, Hp, Wp, Cin), lambda n, r: (n, 0, 0, 0))
    w_spec = pl.BlockSpec(wk.shape, lambda n, r: (0, 0, 0))
    b_spec = pl.BlockSpec((1, Cout), lambda n, r: (0, 0))
    o_spec = pl.BlockSpec((None, TH, W, Cout), lambda n, r: (n, r, 0, 0))

    # Explicit VMEM budget (double-buffered blocks + weights + slack); keeps the
    # kernel well inside v7x's 64 MiB physical VMEM (v5e/v6e have 128 MiB).
    vmem_bytes = 2 * (Hp * Wp * Cin + TH * W * Cout) * 2 + wk.size * 2

    if residual_in is None:
        kernel = functools.partial(_dconv_kernel, TH=TH, W=W, dil=dil, relu=relu)
        in_specs = [x_spec, w_spec, b_spec]
        args = (xp, wk, b2)
    else:
        residual_in = residual_in.astype(jnp.bfloat16)
        w1x1 = w1x1.astype(jnp.bfloat16)
        kernel = functools.partial(_dconv_res_kernel, TH=TH, W=W, dil=dil)
        x0_spec = pl.BlockSpec((None, TH, W, Cin), lambda n, r: (n, r, 0, 0))
        w1_spec = pl.BlockSpec(w1x1.shape, lambda n, r: (0, 0))
        in_specs = [x_spec, w_spec, b_spec, x0_spec, w1_spec]
        args = (xp, wk, b2, residual_in, w1x1)
        vmem_bytes += 2 * TH * W * Cin * 2 + w1x1.size * 2

    vmem_limit = int(min(48 << 20, max(16 << 20, 4 * vmem_bytes)))

    return pl.pallas_call(
        kernel,
        out_shape=jax.ShapeDtypeStruct((N, H, W, Cout), jnp.bfloat16),
        grid=(N, nH),
        in_specs=in_specs,
        out_specs=o_spec,
        compiler_params=pltpu.CompilerParams(
            dimension_semantics=("parallel", "arbitrary"),
            vmem_limit_bytes=vmem_limit,
        ),
    )(*args)


# ----------------------------------------------------------------------------
# Model glue (bilinear matrices, BN folding, parameter init, forward)
# ----------------------------------------------------------------------------
def _bilinear_matrix(n_in, n_out):
    """Interpolation matrix matching F.interpolate(mode='bilinear', align_corners=True)."""
    if n_in == 1:
        return jnp.ones((n_out, 1), jnp.float32)
    if n_out == 1:  # align_corners picks the first sample
        A = np.zeros((1, n_in), np.float32)
        A[0, 0] = 1.0
        return jnp.asarray(A)
    src = np.arange(n_out, dtype=np.float64) * (n_in - 1) / (n_out - 1)
    i0 = np.clip(np.floor(src).astype(np.int64), 0, n_in - 2)
    frac = (src - i0).astype(np.float32)
    A = np.zeros((n_out, n_in), dtype=np.float32)
    rows = np.arange(n_out)
    A[rows, i0] += 1.0 - frac
    A[rows, i0 + 1] += frac
    return jnp.asarray(A)


def _fold_bn(w, b, gamma, beta, mean, var, eps=1e-5):
    # BatchNorm applied in eval mode (running statistics), folded into the conv.
    s = gamma / jnp.sqrt(var + eps)
    return w * s, (b - mean) * s + beta


def init_params(key, in_channels=3, feat=64, out_channels=3, n_blocks=4):
    kit = iter(jax.random.split(key, 256))

    def nrm(shape, scale=0.05):
        return scale * jax.random.normal(next(kit), shape, jnp.float32)

    def make_block():
        p = {}
        for name in ("1", "2", "3"):
            w = nrm((3, 3, feat, feat))            # (ky, kx, Cin, Cout)
            b = nrm((feat,))
            gamma = 1.0 + nrm((feat,), 0.1)
            beta = nrm((feat,), 0.1)
            mean = nrm((feat,), 0.1)
            var = jax.random.uniform(next(kit), (feat,), jnp.float32, 0.5, 1.5)
            wf, bf = _fold_bn(w, b, gamma, beta, mean, var)
            # (kx, 3*Cin, Cout): ky stacked along the contraction (K) axis,
            # matching the in-kernel ky concat; stored in bf16 for the MXU.
            p["w" + name] = (jnp.transpose(wf, (1, 0, 2, 3))
                             .reshape(3, 3 * feat, feat).astype(jnp.bfloat16))
            p["b" + name] = bf
        w1x1 = nrm((feat, feat))
        b1x1 = nrm((feat,))
        p["w1x1"] = w1x1.astype(jnp.bfloat16)
        p["b3"] = p["b3"] + b1x1   # fold the residual 1x1 bias into conv3's bias
        return p

    return {
        "conv1_w": nrm((in_channels, feat)),
        "conv1_b": nrm((feat,)),
        "conv2_w": nrm((feat, out_channels)),
        "conv2_b": nrm((out_channels,)),
        "blocks": [make_block() for _ in range(n_blocks)],
    }


def residual_block(x_nhwc, p):
    """conv(d=1)+BN+ReLU -> conv(d=2)+BN+ReLU -> conv(d=5)+BN + conv1x1(x) -> ReLU."""
    h = dilated_conv3x3(x_nhwc, p["w1"], p["b1"], dil=1, relu=True)
    h = dilated_conv3x3(h, p["w2"], p["b2"], dil=2, relu=True)
    return dilated_conv3x3(h, p["w3"], p["b3"], dil=5,
                           residual_in=x_nhwc, w1x1=p["w1x1"])


def resize_convolution_forward(x_nchw, params, upscale):
    N, C, H, W = x_nchw.shape
    Hup, Wup = H * upscale, W * upscale

    # Bilinear upsample (align_corners=True) as two static matrix contractions.
    Ah = _bilinear_matrix(H, Hup)
    Aw = _bilinear_matrix(W, Wup)
    x = jnp.einsum("oh,nchw->ncow", Ah, x_nchw)
    x = jnp.einsum("pw,ncow->ncop", Aw, x)
    x = jnp.transpose(x, (0, 2, 3, 1))  # NCHW -> NHWC, f32

    # conv1 (1x1, Cin=3) + ReLU: lane-sparse tiny layer -> plain XLA matmul.
    h = jnp.maximum(jnp.einsum("nhwc,cf->nhwf", x, params["conv1_w"])
                    + params["conv1_b"], 0.0)
    h = h.astype(jnp.bfloat16)  # bf16 activations through the Pallas conv stack

    for bp in params["blocks"]:
        h = residual_block(h, bp)

    # TODO(synk): WashGrad's gaussian blur only modifies backward grads; forward is identity.

    # conv2 (1x1, Cout=3), no activation: lane-sparse output -> plain XLA matmul.
    out = (jnp.einsum("nhwf,fc->nhwc", h.astype(jnp.float32), params["conv2_w"])
           + params["conv2_b"])
    return jnp.transpose(out, (0, 3, 1, 2))  # NHWC -> NCHW, f32


if __name__ == "__main__":
    key = jax.random.PRNGKey(0)
    pkey, xkey = jax.random.split(key)

    upscale = 2
    in_channels = 3
    params = init_params(pkey, in_channels=in_channels)
    x = jax.random.normal(xkey, (2, in_channels, 16, 16), jnp.float32)

    fwd = jax.jit(lambda xx, pp: resize_convolution_forward(xx, pp, upscale))
    out = jax.block_until_ready(fwd(x, params))

    assert out.shape == (2, 3, 32, 32), out.shape
    assert out.dtype == jnp.float32
    assert bool(jnp.all(jnp.isfinite(out)))
    print("KERNEL_OK")
</pallas_src>

<mosaic_0001>
module attributes {stable_mosaic.version = 11 : i64} {
  func.func @_dconv_kernel(%arg0: i32, %arg1: i32, %arg2: memref<1x34x34x64xbf16, #tpu.memory_space<vmem>>, %arg3: memref<3x192x64xbf16, #tpu.memory_space<vmem>>, %arg4: memref<1x64xf32, #tpu.memory_space<vmem>>, %arg5: memref<1x8x32x64xbf16, #tpu.memory_space<vmem>>) attributes {dimension_semantics = [#tpu.dimension_semantics<parallel>, #tpu.dimension_semantics<arbitrary>], iteration_bounds = array<i64: 2, 4>, scalar_prefetch = 0 : i64, scratch_operands = 0 : i64, tpu.core_type = #tpu.core_type<tc>, window_params = [{transform_indices = @transform_0, window_bounds = array<i64: 1, 34, 34, 64>}, {pipeline_mode = #tpu.pipeline_mode<synchronous>, transform_indices = @transform_1, window_bounds = array<i64: 3, 192, 64>}, {pipeline_mode = #tpu.pipeline_mode<synchronous>, transform_indices = @transform_2, window_bounds = array<i64: 1, 64>}, {transform_indices = @transform_3, window_bounds = array<i64: 1, 8, 32, 64>}]} {
    %c8_i32 = arith.constant 8 : i32
    %0 = arith.muli %arg1, %c8_i32 : i32
    %1 = tpu.assume_multiple %0, 8 : i32
    %c0_i32 = arith.constant 0 : i32
    %2 = arith.addi %1, %c0_i32 : i32
    %c0 = arith.constant 0 : index
    %3 = arith.index_cast %2 : i32 to index
    %c0_0 = arith.constant 0 : index
    %c0_1 = arith.constant 0 : index
    %4 = vector.load %arg2[%c0, %3, %c0_0, %c0_1] : memref<1x34x34x64xbf16, #tpu.memory_space<vmem>>, vector<1x8x34x64xbf16>
    %5 = vector.shape_cast %4 : vector<1x8x34x64xbf16> to vector<8x34x64xbf16>
    %c1_i32 = arith.constant 1 : i32
    %6 = arith.addi %1, %c1_i32 : i32
    %c0_2 = arith.constant 0 : index
    %7 = arith.index_cast %6 : i32 to index
    %c0_3 = arith.constant 0 : index
    %c0_4 = arith.constant 0 : index
    %8 = vector.load %arg2[%c0_2, %7, %c0_3, %c0_4] : memref<1x34x34x64xbf16, #tpu.memory_space<vmem>>, vector<1x8x34x64xbf16>
    %9 = vector.shape_cast %8 : vector<1x8x34x64xbf16> to vector<8x34x64xbf16>
    %c2_i32 = arith.constant 2 : i32
    %10 = arith.addi %1, %c2_i32 : i32
    %c0_5 = arith.constant 0 : index
    %11 = arith.index_cast %10 : i32 to index
    %c0_6 = arith.constant 0 : index
    %c0_7 = arith.constant 0 : index
    %12 = vector.load %arg2[%c0_5, %11, %c0_6, %c0_7] : memref<1x34x34x64xbf16, #tpu.memory_space<vmem>>, vector<1x8x34x64xbf16>
    %13 = vector.shape_cast %12 : vector<1x8x34x64xbf16> to vector<8x34x64xbf16>
    %14 = tpu.concatenate %5, %9, %13 in 2 : vector<8x34x64xbf16>, vector<8x34x64xbf16>, vector<8x34x64xbf16> -> vector<8x34x192xbf16>
    %cst = arith.constant 0.000000e+00 : f32
    %15 = vector.broadcast %cst : f32 to vector<256x64xf32>
    %16 = vector.extract_strided_slice %14 {offsets = [0, 0, 0], sizes = [8, 32, 192], strides = [1, 1, 1]} : vector<8x34x192xbf16> to vector<8x32x192xbf16>
    %17 = vector.shape_cast %16 : vector<8x32x192xbf16> to vector<256x192xbf16>
    %c0_8 = arith.constant 0 : index
    %c0_9 = arith.constant 0 : index
    %c0_10 = arith.constant 0 : index
    %18 = vector.load %arg3[%c0_8, %c0_9, %c0_10] : memref<3x192x64xbf16, #tpu.memory_space<vmem>>, vector<1x192x64xbf16>
    %19 = vector.shape_cast %18 : vector<1x192x64xbf16> to vector<192x64xbf16>
    %cst_11 = arith.constant dense<0.000000e+00> : vector<256x64xf32>
    %20 = tpu.matmul %17, %19, %cst_11 {dimension_numbers = #tpu.dot_dimension_numbers<[1], [0], [0], [1], [0, 0, 1, 1], [], []>} : vector<256x192xbf16>, vector<192x64xbf16>, vector<256x64xf32> -> vector<256x64xf32>
    %21 = arith.addf %15, %20 : vector<256x64xf32>
    %22 = vector.extract_strided_slice %14 {offsets = [0, 1, 0], sizes = [8, 32, 192], strides = [1, 1, 1]} : vector<8x34x192xbf16> to vector<8x32x192xbf16>
    %23 = vector.shape_cast %22 : vector<8x32x192xbf16> to vector<256x192xbf16>
    %c1 = arith.constant 1 : index
    %c0_12 = arith.constant 0 : index
    %c0_13 = arith.constant 0 : index
    %24 = vector.load %arg3[%c1, %c0_12, %c0_13] : memref<3x192x64xbf16, #tpu.memory_space<vmem>>, vector<1x192x64xbf16>
    %25 = vector.shape_cast %24 : vector<1x192x64xbf16> to vector<192x64xbf16>
    %cst_14 = arith.constant dense<0.000000e+00> : vector<256x64xf32>
    %26 = tpu.matmul %23, %25, %cst_14 {dimension_numbers = #tpu.dot_dimension_numbers<[1], [0], [0], [1], [0, 0, 1, 1], [], []>} : vector<256x192xbf16>, vector<192x64xbf16>, vector<256x64xf32> -> vector<256x64xf32>
    %27 = arith.addf %21, %26 : vector<256x64xf32>
    %28 = vector.extract_strided_slice %14 {offsets = [0, 2, 0], sizes = [8, 32, 192], strides = [1, 1, 1]} : vector<8x34x192xbf16> to vector<8x32x192xbf16>
    %29 = vector.shape_cast %28 : vector<8x32x192xbf16> to vector<256x192xbf16>
    %c2 = arith.constant 2 : index
    %c0_15 = arith.constant 0 : index
    %c0_16 = arith.constant 0 : index
    %30 = vector.load %arg3[%c2, %c0_15, %c0_16] : memref<3x192x64xbf16, #tpu.memory_space<vmem>>, vector<1x192x64xbf16>
    %31 = vector.shape_cast %30 : vector<1x192x64xbf16> to vector<192x64xbf16>
    %cst_17 = arith.constant dense<0.000000e+00> : vector<256x64xf32>
    %32 = tpu.matmul %29, %31, %cst_17 {dimension_numbers = #tpu.dot_dimension_numbers<[1], [0], [0], [1], [0, 0, 1, 1], [], []>} : vector<256x192xbf16>, vector<192x64xbf16>, vector<256x64xf32> -> vector<256x64xf32>
    %33 = arith.addf %27, %32 : vector<256x64xf32>
    %c0_18 = arith.constant 0 : index
    %c0_19 = arith.constant 0 : index
    %34 = vector.load %arg4[%c0_18, %c0_19] : memref<1x64xf32, #tpu.memory_space<vmem>>, vector<1x64xf32>
    %35 = vector.broadcast %34 : vector<1x64xf32> to vector<256x64xf32>
    %36 = arith.addf %33, %35 : vector<256x64xf32>
    %cst_20 = arith.constant 0.000000e+00 : f32
    %37 = vector.broadcast %cst_20 : f32 to vector<256x64xf32>
    %38 = arith.maximumf %36, %37 : vector<256x64xf32>
    %39 = vector.shape_cast %38 : vector<256x64xf32> to vector<8x32x64xf32>
    %40 = arith.truncf %39 : vector<8x32x64xf32> to vector<8x32x64xbf16>
    %c0_21 = arith.constant 0 : index
    %c0_22 = arith.constant 0 : index
    %c0_23 = arith.constant 0 : index
    %c0_24 = arith.constant 0 : index
    %41 = vector.load %arg5[%c0_21, %c0_22, %c0_23, %c0_24] : memref<1x8x32x64xbf16, #tpu.memory_space<vmem>>, vector<1x8x32x64xbf16>
    %42 = vector.shape_cast %41 : vector<1x8x32x64xbf16> to vector<8x32x64xbf16>
    %43 = vector.shape_cast %40 : vector<8x32x64xbf16> to vector<1x8x32x64xbf16>
    tpu.vector_store %arg5[%c0_21, %c0_22, %c0_23, %c0_24], %43 {strides = array<i32>} : memref<1x8x32x64xbf16, #tpu.memory_space<vmem>>, vector<1x8x32x64xbf16>,
    return
  }
  func.func @transform_0(%arg0: i32, %arg1: i32) -> (i32, i32, i32, i32) {
    %c0_i32 = arith.constant 0 : i32
    %c0_i32_0 = arith.constant 0 : i32
    %c0_i32_1 = arith.constant 0 : i32
    %c0_i32_2 = arith.constant 0 : i32
    return %arg0, %c0_i32, %c0_i32_0, %c0_i32_1 : i32, i32, i32, i32
  }
  func.func @transform_1(%arg0: i32, %arg1: i32) -> (i32, i32, i32) {
    %c0_i32 = arith.constant 0 : i32
    %c0_i32_0 = arith.constant 0 : i32
    %c0_i32_1 = arith.constant 0 : i32
    %c0_i32_2 = arith.constant 0 : i32
    return %c0_i32, %c0_i32_0, %c0_i32_1 : i32, i32, i32
  }
  func.func @transform_2(%arg0: i32, %arg1: i32) -> (i32, i32) {
    %c0_i32 = arith.constant 0 : i32
    %c0_i32_0 = arith.constant 0 : i32
    %c0_i32_1 = arith.constant 0 : i32
    return %c0_i32, %c0_i32_0 : i32, i32
  }
  func.func @transform_3(%arg0: i32, %arg1: i32) -> (i32, i32, i32, i32) {
    %c0_i32 = arith.constant 0 : i32
    %c0_i32_0 = arith.constant 0 : i32
    %c0_i32_1 = arith.constant 0 : i32
    return %arg0, %arg1, %c0_i32, %c0_i32_0 : i32, i32, i32, i32
  }
}

module attributes {stable_mosaic.version = 11 : i64} {
  func.func @_dconv_kernel(%arg0: i32, %arg1: i32, %arg2: memref<1x36x36x64xbf16, #tpu.memory_space<vmem>>, %arg3: memref<3x192x64xbf16, #tpu.memory_space<vmem>>, %arg4: memref<1x64xf32, #tpu.memory_space<vmem>>, %arg5: memref<1x8x32x64xbf16, #tpu.memory_space<vmem>>) attributes {dimension_semantics = [#tpu.dimension_semantics<parallel>, #tpu.dimension_semantics<arbitrary>], iteration_bounds = array<i64: 2, 4>, scalar_prefetch = 0 : i64, scratch_operands = 0 : i64, tpu.core_type = #tpu.core_type<tc>, window_params = [{transform_indices = @transform_0, window_bounds = array<i64: 1, 36, 36, 64>}, {pipeline_mode = #tpu.pipeline_mode<synchronous>, transform_indices = @transform_1, window_bounds = array<i64: 3, 192, 64>}, {pipeline_mode = #tpu.pipeline_mode<synchronous>, transform_indices = @transform_2, window_bounds = array<i64: 1, 64>}, {transform_indices = @transform_3, window_bounds = array<i64: 1, 8, 32, 64>}]} {
    %c8_i32 = arith.constant 8 : i32
    %0 = arith.muli %arg1, %c8_i32 : i32
    %1 = tpu.assume_multiple %0, 8 : i32
    %c0_i32 = arith.constant 0 : i32
    %2 = arith.addi %1, %c0_i32 : i32
    %c0 = arith.constant 0 : index
    %3 = arith.index_cast %2 : i32 to index
    %c0_0 = arith.constant 0 : index
    %c0_1 = arith.constant 0 : index
    %4 = vector.load %arg2[%c0, %3, %c0_0, %c0_1] : memref<1x36x36x64xbf16, #tpu.memory_space<vmem>>, vector<1x8x36x64xbf16>
    %5 = vector.shape_cast %4 : vector<1x8x36x64xbf16> to vector<8x36x64xbf16>
    %c2_i32 = arith.constant 2 : i32
    %6 = arith.addi %1, %c2_i32 : i32
    %c0_2 = arith.constant 0 : index
    %7 = arith.index_cast %6 : i32 to index
    %c0_3 = arith.constant 0 : index
    %c0_4 = arith.constant 0 : index
    %8 = vector.load %arg2[%c0_2, %7, %c0_3, %c0_4] : memref<1x36x36x64xbf16, #tpu.memory_space<vmem>>, vector<1x8x36x64xbf16>
    %9 = vector.shape_cast %8 : vector<1x8x36x64xbf16> to vector<8x36x64xbf16>
    %c4_i32 = arith.constant 4 : i32
    %10 = arith.addi %1, %c4_i32 : i32
    %c0_5 = arith.constant 0 : index
    %11 = arith.index_cast %10 : i32 to index
    %c0_6 = arith.constant 0 : index
    %c0_7 = arith.constant 0 : index
    %12 = vector.load %arg2[%c0_5, %11, %c0_6, %c0_7] : memref<1x36x36x64xbf16, #tpu.memory_space<vmem>>, vector<1x8x36x64xbf16>
    %13 = vector.shape_cast %12 : vector<1x8x36x64xbf16> to vector<8x36x64xbf16>
    %14 = tpu.concatenate %5, %9, %13 in 2 : vector<8x36x64xbf16>, vector<8x36x64xbf16>, vector<8x36x64xbf16> -> vector<8x36x192xbf16>
    %cst = arith.constant 0.000000e+00 : f32
    %15 = vector.broadcast %cst : f32 to vector<256x64xf32>
    %16 = vector.extract_strided_slice %14 {offsets = [0, 0, 0], sizes = [8, 32, 192], strides = [1, 1, 1]} : vector<8x36x192xbf16> to vector<8x32x192xbf16>
    %17 = vector.shape_cast %16 : vector<8x32x192xbf16> to vector<256x192xbf16>
    %c0_8 = arith.constant 0 : index
    %c0_9 = arith.constant 0 : index
    %c0_10 = arith.constant 0 : index
    %18 = vector.load %arg3[%c0_8, %c0_9, %c0_10] : memref<3x192x64xbf16, #tpu.memory_space<vmem>>, vector<1x192x64xbf16>
    %19 = vector.shape_cast %18 : vector<1x192x64xbf16> to vector<192x64xbf16>
    %cst_11 = arith.constant dense<0.000000e+00> : vector<256x64xf32>
    %20 = tpu.matmul %17, %19, %cst_11 {dimension_numbers = #tpu.dot_dimension_numbers<[1], [0], [0], [1], [0, 0, 1, 1], [], []>} : vector<256x192xbf16>, vector<192x64xbf16>, vector<256x64xf32> -> vector<256x64xf32>
    %21 = arith.addf %15, %20 : vector<256x64xf32>
    %22 = vector.extract_strided_slice %14 {offsets = [0, 2, 0], sizes = [8, 32, 192], strides = [1, 1, 1]} : vector<8x36x192xbf16> to vector<8x32x192xbf16>
    %23 = vector.shape_cast %22 : vector<8x32x192xbf16> to vector<256x192xbf16>
    %c1 = arith.constant 1 : index
    %c0_12 = arith.constant 0 : index
    %c0_13 = arith.constant 0 : index
    %24 = vector.load %arg3[%c1, %c0_12, %c0_13] : memref<3x192x64xbf16, #tpu.memory_space<vmem>>, vector<1x192x64xbf16>
    %25 = vector.shape_cast %24 : vector<1x192x64xbf16> to vector<192x64xbf16>
    %cst_14 = arith.constant dense<0.000000e+00> : vector<256x64xf32>
    %26 = tpu.matmul %23, %25, %cst_14 {dimension_numbers = #tpu.dot_dimension_numbers<[1], [0], [0], [1], [0, 0, 1, 1], [], []>} : vector<256x192xbf16>, vector<192x64xbf16>, vector<256x64xf32> -> vector<256x64xf32>
    %27 = arith.addf %21, %26 : vector<256x64xf32>
    %28 = vector.extract_strided_slice %14 {offsets = [0, 4, 0], sizes = [8, 32, 192], strides = [1, 1, 1]} : vector<8x36x192xbf16> to vector<8x32x192xbf16>
    %29 = vector.shape_cast %28 : vector<8x32x192xbf16> to vector<256x192xbf16>
    %c2 = arith.constant 2 : index
    %c0_15 = arith.constant 0 : index
    %c0_16 = arith.constant 0 : index
    %30 = vector.load %arg3[%c2, %c0_15, %c0_16] : memref<3x192x64xbf16, #tpu.memory_space<vmem>>, vector<1x192x64xbf16>
    %31 = vector.shape_cast %30 : vector<1x192x64xbf16> to vector<192x64xbf16>
    %cst_17 = arith.constant dense<0.000000e+00> : vector<256x64xf32>
    %32 = tpu.matmul %29, %31, %cst_17 {dimension_numbers = #tpu.dot_dimension_numbers<[1], [0], [0], [1], [0, 0, 1, 1], [], []>} : vector<256x192xbf16>, vector<192x64xbf16>, vector<256x64xf32> -> vector<256x64xf32>
    %33 = arith.addf %27, %32 : vector<256x64xf32>
    %c0_18 = arith.constant 0 : index
    %c0_19 = arith.constant 0 : index
    %34 = vector.load %arg4[%c0_18, %c0_19] : memref<1x64xf32, #tpu.memory_space<vmem>>, vector<1x64xf32>
    %35 = vector.broadcast %34 : vector<1x64xf32> to vector<256x64xf32>
    %36 = arith.addf %33, %35 : vector<256x64xf32>
    %cst_20 = arith.constant 0.000000e+00 : f32
    %37 = vector.broadcast %cst_20 : f32 to vector<256x64xf32>
    %38 = arith.maximumf %36, %37 : vector<256x64xf32>
    %39 = vector.shape_cast %38 : vector<256x64xf32> to vector<8x32x64xf32>
    %40 = arith.truncf %39 : vector<8x32x64xf32> to vector<8x32x64xbf16>
    %c0_21 = arith.constant 0 : index
    %c0_22 = arith.constant 0 : index
    %c0_23 = arith.constant 0 : index
    %c0_24 = arith.constant 0 : index
    %41 = vector.load %arg5[%c0_21, %c0_22, %c0_23, %c0_24] : memref<1x8x32x64xbf16, #tpu.memory_space<vmem>>, vector<1x8x32x64xbf16>
    %42 = vector.shape_cast %41 : vector<1x8x32x64xbf16> to vector<8x32x64xbf16>
    %43 = vector.shape_cast %40 : vector<8x32x64xbf16> to vector<1x8x32x64xbf16>
    tpu.vector_store %arg5[%c0_21, %c0_22, %c0_23, %c0_24], %43 {strides = array<i32>} : memref<1x8x32x64xbf16, #tpu.memory_space<vmem>>, vector<1x8x32x64xbf16>,
    return
  }
  func.func @transform_0(%arg0: i32, %arg1: i32) -> (i32, i32, i32, i32) {
    %c0_i32 = arith.constant 0 : i32
    %c0_i32_0 = arith.constant 0 : i32
    %c0_i32_1 = arith.constant 0 : i32
    %c0_i32_2 = arith.constant 0 : i32
    return %arg0, %c0_i32, %c0_i32_0, %c0_i32_1 : i32, i32, i32, i32
  }
  func.func @transform_1(%arg0: i32, %arg1: i32) -> (i32, i32, i32) {
    %c0_i32 = arith.constant 0 : i32
    %c0_i32_0 = arith.constant 0 : i32
    %c0_i32_1 = arith.constant 0 : i32
    %c0_i32_2 = arith.constant 0 : i32
    return %c0_i32, %c0_i32_0, %c0_i32_1 : i32, i32, i32
  }
  func.func @transform_2(%arg0: i32, %arg1: i32) -> (i32, i32) {
    %c0_i32 = arith.constant 0 : i32
    %c0_i32_0 = arith.constant 0 : i32
    %c0_i32_1 = arith.constant 0 : i32
    return %c0_i32, %c0_i32_0 : i32, i32
  }
  func.func @transform_3(%arg0: i32, %arg1: i32) -> (i32, i32, i32, i32) {
    %c0_i32 = arith.constant 0 : i32
    %c0_i32_0 = arith.constant 0 : i32
    %c0_i32_1 = arith.constant 0 : i32
    return %arg0, %arg1, %c0_i32, %c0_i32_0 : i32, i32, i32, i32
  }
}

module attributes {stable_mosaic.version = 11 : i64} {
  func.func @_dconv_res_kernel(%arg0: i32, %arg1: i32, %arg2: memref<1x42x42x64xbf16, #tpu.memory_space<vmem>>, %arg3: memref<3x192x64xbf16, #tpu.memory_space<vmem>>, %arg4: memref<1x64xf32, #tpu.memory_space<vmem>>, %arg5: memref<1x8x32x64xbf16, #tpu.memory_space<vmem>>, %arg6: memref<64x64xbf16, #tpu.memory_space<vmem>>, %arg7: memref<1x8x32x64xbf16, #tpu.memory_space<vmem>>) attributes {dimension_semantics = [#tpu.dimension_semantics<parallel>, #tpu.dimension_semantics<arbitrary>], iteration_bounds = array<i64: 2, 4>, scalar_prefetch = 0 : i64, scratch_operands = 0 : i64, tpu.core_type = #tpu.core_type<tc>, window_params = [{transform_indices = @transform_0, window_bounds = array<i64: 1, 42, 42, 64>}, {pipeline_mode = #tpu.pipeline_mode<synchronous>, transform_indices = @transform_1, window_bounds = array<i64: 3, 192, 64>}, {pipeline_mode = #tpu.pipeline_mode<synchronous>, transform_indices = @transform_2, window_bounds = array<i64: 1, 64>}, {transform_indices = @transform_3, window_bounds = array<i64: 1, 8, 32, 64>}, {pipeline_mode = #tpu.pipeline_mode<synchronous>, transform_indices = @transform_4, window_bounds = array<i64: 64, 64>}, {transform_indices = @transform_5, window_bounds = array<i64: 1, 8, 32, 64>}]} {
    %c8_i32 = arith.constant 8 : i32
    %0 = arith.muli %arg1, %c8_i32 : i32
    %1 = tpu.assume_multiple %0, 8 : i32
    %c0_i32 = arith.constant 0 : i32
    %2 = arith.addi %1, %c0_i32 : i32
    %c0 = arith.constant 0 : index
    %3 = arith.index_cast %2 : i32 to index
    %c0_0 = arith.constant 0 : index
    %c0_1 = arith.constant 0 : index
    %4 = vector.load %arg2[%c0, %3, %c0_0, %c0_1] : memref<1x42x42x64xbf16, #tpu.memory_space<vmem>>, vector<1x8x42x64xbf16>
    %5 = vector.shape_cast %4 : vector<1x8x42x64xbf16> to vector<8x42x64xbf16>
    %c5_i32 = arith.constant 5 : i32
    %6 = arith.addi %1, %c5_i32 : i32
    %c0_2 = arith.constant 0 : index
    %7 = arith.index_cast %6 : i32 to index
    %c0_3 = arith.constant 0 : index
    %c0_4 = arith.constant 0 : index
    %8 = vector.load %arg2[%c0_2, %7, %c0_3, %c0_4] : memref<1x42x42x64xbf16, #tpu.memory_space<vmem>>, vector<1x8x42x64xbf16>
    %9 = vector.shape_cast %8 : vector<1x8x42x64xbf16> to vector<8x42x64xbf16>
    %c10_i32 = arith.constant 10 : i32
    %10 = arith.addi %1, %c10_i32 : i32
    %c0_5 = arith.constant 0 : index
    %11 = arith.index_cast %10 : i32 to index
    %c0_6 = arith.constant 0 : index
    %c0_7 = arith.constant 0 : index
    %12 = vector.load %arg2[%c0_5, %11, %c0_6, %c0_7] : memref<1x42x42x64xbf16, #tpu.memory_space<vmem>>, vector<1x8x42x64xbf16>
    %13 = vector.shape_cast %12 : vector<1x8x42x64xbf16> to vector<8x42x64xbf16>
    %14 = tpu.concatenate %5, %9, %13 in 2 : vector<8x42x64xbf16>, vector<8x42x64xbf16>, vector<8x42x64xbf16> -> vector<8x42x192xbf16>
    %cst = arith.constant 0.000000e+00 : f32
    %15 = vector.broadcast %cst : f32 to vector<256x64xf32>
    %16 = vector.extract_strided_slice %14 {offsets = [0, 0, 0], sizes = [8, 32, 192], strides = [1, 1, 1]} : vector<8x42x192xbf16> to vector<8x32x192xbf16>
    %17 = vector.shape_cast %16 : vector<8x32x192xbf16> to vector<256x192xbf16>
    %c0_8 = arith.constant 0 : index
    %c0_9 = arith.constant 0 : index
    %c0_10 = arith.constant 0 : index
    %18 = vector.load %arg3[%c0_8, %c0_9, %c0_10] : memref<3x192x64xbf16, #tpu.memory_space<vmem>>, vector<1x192x64xbf16>
    %19 = vector.shape_cast %18 : vector<1x192x64xbf16> to vector<192x64xbf16>
    %cst_11 = arith.constant dense<0.000000e+00> : vector<256x64xf32>
    %20 = tpu.matmul %17, %19, %cst_11 {dimension_numbers = #tpu.dot_dimension_numbers<[1], [0], [0], [1], [0, 0, 1, 1], [], []>} : vector<256x192xbf16>, vector<192x64xbf16>, vector<256x64xf32> -> vector<256x64xf32>
    %21 = arith.addf %15, %20 : vector<256x64xf32>
    %22 = vector.extract_strided_slice %14 {offsets = [0, 5, 0], sizes = [8, 32, 192], strides = [1, 1, 1]} : vector<8x42x192xbf16> to vector<8x32x192xbf16>
    %23 = vector.shape_cast %22 : vector<8x32x192xbf16> to vector<256x192xbf16>
    %c1 = arith.constant 1 : index
    %c0_12 = arith.constant 0 : index
    %c0_13 = arith.constant 0 : index
    %24 = vector.load %arg3[%c1, %c0_12, %c0_13] : memref<3x192x64xbf16, #tpu.memory_space<vmem>>, vector<1x192x64xbf16>
    %25 = vector.shape_cast %24 : vector<1x192x64xbf16> to vector<192x64xbf16>
    %cst_14 = arith.constant dense<0.000000e+00> : vector<256x64xf32>
    %26 = tpu.matmul %23, %25, %cst_14 {dimension_numbers = #tpu.dot_dimension_numbers<[1], [0], [0], [1], [0, 0, 1, 1], [], []>} : vector<256x192xbf16>, vector<192x64xbf16>, vector<256x64xf32> -> vector<256x64xf32>
    %27 = arith.addf %21, %26 : vector<256x64xf32>
    %28 = vector.extract_strided_slice %14 {offsets = [0, 10, 0], sizes = [8, 32, 192], strides = [1, 1, 1]} : vector<8x42x192xbf16> to vector<8x32x192xbf16>
    %29 = vector.shape_cast %28 : vector<8x32x192xbf16> to vector<256x192xbf16>
    %c2 = arith.constant 2 : index
    %c0_15 = arith.constant 0 : index
    %c0_16 = arith.constant 0 : index
    %30 = vector.load %arg3[%c2, %c0_15, %c0_16] : memref<3x192x64xbf16, #tpu.memory_space<vmem>>, vector<1x192x64xbf16>
    %31 = vector.shape_cast %30 : vector<1x192x64xbf16> to vector<192x64xbf16>
    %cst_17 = arith.constant dense<0.000000e+00> : vector<256x64xf32>
    %32 = tpu.matmul %29, %31, %cst_17 {dimension_numbers = #tpu.dot_dimension_numbers<[1], [0], [0], [1], [0, 0, 1, 1], [], []>} : vector<256x192xbf16>, vector<192x64xbf16>, vector<256x64xf32> -> vector<256x64xf32>
    %33 = arith.addf %27, %32 : vector<256x64xf32>
    %c0_18 = arith.constant 0 : index
    %c0_19 = arith.constant 0 : index
    %c0_20 = arith.constant 0 : index
    %c0_21 = arith.constant 0 : index
    %34 = vector.load %arg5[%c0_18, %c0_19, %c0_20, %c0_21] : memref<1x8x32x64xbf16, #tpu.memory_space<vmem>>, vector<1x8x32x64xbf16>
    %35 = vector.shape_cast %34 : vector<1x8x32x64xbf16> to vector<8x32x64xbf16>
    %36 = vector.shape_cast %35 : vector<8x32x64xbf16> to vector<256x64xbf16>
    %c0_22 = arith.constant 0 : index
    %c0_23 = arith.constant 0 : index
    %37 = vector.load %arg6[%c0_22, %c0_23] : memref<64x64xbf16, #tpu.memory_space<vmem>>, vector<64x64xbf16>
    %cst_24 = arith.constant dense<0.000000e+00> : vector<256x64xf32>
    %38 = tpu.matmul %36, %37, %cst_24 {dimension_numbers = #tpu.dot_dimension_numbers<[1], [0], [0], [1], [0, 0, 1, 1], [], []>} : vector<256x64xbf16>, vector<64x64xbf16>, vector<256x64xf32> -> vector<256x64xf32>
    %39 = arith.addf %33, %38 : vector<256x64xf32>
    %c0_25 = arith.constant 0 : index
    %c0_26 = arith.constant 0 : index
    %40 = vector.load %arg4[%c0_25, %c0_26] : memref<1x64xf32, #tpu.memory_space<vmem>>, vector<1x64xf32>
    %41 = vector.broadcast %40 : vector<1x64xf32> to vector<256x64xf32>
    %42 = arith.addf %39, %41 : vector<256x64xf32>
    %cst_27 = arith.constant 0.000000e+00 : f32
    %43 = vector.broadcast %cst_27 : f32 to vector<256x64xf32>
    %44 = arith.maximumf %42, %43 : vector<256x64xf32>
    %45 = vector.shape_cast %44 : vector<256x64xf32> to vector<8x32x64xf32>
    %46 = arith.truncf %45 : vector<8x32x64xf32> to vector<8x32x64xbf16>
    %c0_28 = arith.constant 0 : index
    %c0_29 = arith.constant 0 : index
    %c0_30 = arith.constant 0 : index
    %c0_31 = arith.constant 0 : index
    %47 = vector.load %arg7[%c0_28, %c0_29, %c0_30, %c0_31] : memref<1x8x32x64xbf16, #tpu.memory_space<vmem>>, vector<1x8x32x64xbf16>
    %48 = vector.shape_cast %47 : vector<1x8x32x64xbf16> to vector<8x32x64xbf16>
    %49 = vector.shape_cast %46 : vector<8x32x64xbf16> to vector<1x8x32x64xbf16>
    tpu.vector_store %arg7[%c0_28, %c0_29, %c0_30, %c0_31], %49 {strides = array<i32>} : memref<1x8x32x64xbf16, #tpu.memory_space<vmem>>, vector<1x8x32x64xbf16>,
    return
  }
  func.func @transform_0(%arg0: i32, %arg1: i32) -> (i32, i32, i32, i32) {
    %c0_i32 = arith.constant 0 : i32
    %c0_i32_0 = arith.constant 0 : i32
    %c0_i32_1 = arith.constant 0 : i32
    %c0_i32_2 = arith.constant 0 : i32
    return %arg0, %c0_i32, %c0_i32_0, %c0_i32_1 : i32, i32, i32, i32
  }
  func.func @transform_1(%arg0: i32, %arg1: i32) -> (i32, i32, i32) {
    %c0_i32 = arith.constant 0 : i32
    %c0_i32_0 = arith.constant 0 : i32
    %c0_i32_1 = arith.constant 0 : i32
    %c0_i32_2 = arith.constant 0 : i32
    return %c0_i32, %c0_i32_0, %c0_i32_1 : i32, i32, i32
  }
  func.func @transform_2(%arg0: i32, %arg1: i32) -> (i32, i32) {
    %c0_i32 = arith.constant 0 : i32
    %c0_i32_0 = arith.constant 0 : i32
    %c0_i32_1 = arith.constant 0 : i32
    return %c0_i32, %c0_i32_0 : i32, i32
  }
  func.func @transform_3(%arg0: i32, %arg1: i32) -> (i32, i32, i32, i32) {
    %c0_i32 = arith.constant 0 : i32
    %c0_i32_0 = arith.constant 0 : i32
    %c0_i32_1 = arith.constant 0 : i32
    return %arg0, %arg1, %c0_i32, %c0_i32_0 : i32, i32, i32, i32
  }
  func.func @transform_4(%arg0: i32, %arg1: i32) -> (i32, i32) {
    %c0_i32 = arith.constant 0 : i32
    %c0_i32_0 = arith.constant 0 : i32
    %c0_i32_1 = arith.constant 0 : i32
    return %c0_i32, %c0_i32_0 : i32, i32
  }
  func.func @transform_5(%arg0: i32, %arg1: i32) -> (i32, i32, i32, i32) {
    %c0_i32 = arith.constant 0 : i32
    %c0_i32_0 = arith.constant 0 : i32
    %c0_i32_1 = arith.constant 0 : i32
    return %arg0, %arg1, %c0_i32, %c0_i32_0 : i32, i32, i32, i32
  }
}

</mosaic_0001>

<bundles_post_ra>
// kernel: _lambda_.12
= control target key start
LH: loop header
LB: loop body
LE: loop exit
PB: predicated region body
PF: predicated region fallthrough
CT: control target
= control target key end

     0   :  { %s3087_s12 = smov 0   ;;  %s3089_s13 = smov 0   ;;  %s3985_s0 = inlined_call_operand.vmem [shape: bf16[2,34,34,64], index: 0, kind: input, shape index: {}]   ;;  %s3986_s1 = inlined_call_operand.vmem [shape: bf16[3,192,64], index: 1, kind: input, shape index: {}]   ;;  %s3987_s2 = inlined_call_operand.vmem [shape: f32[1,64], index: 2, kind: input, shape index: {}]   ;;  %s3988_s3 = inlined_call_operand.vmem [shape: bf16[2,32,32,64], index: 3, kind: output, shape index: {}]  }
   0x1   :  { %s3091_s14 = smov 0   ;;  %s3093_s15 = smov 0  }
   0x2   :  { %s3095_s16 = smov 0  }
   0x3 LB: > { %s22_s17 = sadd.s32 1, %s3055_s14  ;;  %s25_s18 = sadd.s32 1, %s3059_s15  ;;  %s3063_s16 = sphi %s3095_s16, %s13_s16   ;;  %s3059_s15 = sphi %s3093_s15, %s4018_s15   ;;  %s3055_s14 = sphi %s3091_s14, %s4017_s14   ;;  %s3051_s13 = sphi %s3089_s13, %s4016_s13   ;;  %s3047_s12 = sphi %s3087_s12, %s4015_s12  }
   0x4   : > { %p23_p0 = scmp.ge.s32.totalorder %s22_s17, 4  ;;  %p2481_p1 = scmp.ge.s32.totalorder %s3063_s16, 1 }
   0x5   : > { %p151_p2 = scmp.lt.s32.totalorder %s3063_s16, 9 }
   0x6   : > { %s4020_s17 = smov (%p23_p0, %s22_s17), 0  ;;  %s4022_s18 = smov (!%p23_p0, %s25_s18), %s3059_s15 }
   0x7   : > { %p152_p3 = pnand %p2481_p1, %p151_p2  ;;  %p27_p4 = scmp.ge.s32.totalorder %s4022_s18, 2 }
   0x9   : > { %s4024_s18 = smov (%p27_p4, %s4022_s18), 0  ;;  %155 = sbr.rel (%p152_p3) target bundleno = 539 (0x21b), region = 32 }
   0xe   : > { %p180_p5 = scmp.lt.s32.totalorder %s3051_s13, 1  ;;  %v2937_v0 = vld [vmem:[%s3986_s1 + $0x98] sm:$0xff]   ;;  %s2813_s21 = smul.u32 160, %s3047_s12  ;;  %v3065_v1 = vmov 0   ;;  %v2938_v2 = vld [vmem:[%s3986_s1 + $0x90] sm:$0xff]   ;;  %v2939_v3 = vld [vmem:[%s3986_s1 + $0x88] sm:$0xff]  }
   0xf   : > { %2846 = vmatprep.subr.bf16.mxu1 %v3065_v1  ;;  %1260 = vmatprep.subr.bf16.mxu0 %v3065_v1  ;;  %v2940_v5 = vld [vmem:[%s3986_s1 + $0x80] sm:$0xff]   ;;  %s3066_s6 = smov 64   ;;  %v2941_v11 = vld [vmem:[%s3986_s1 + $0x78] sm:$0xff]   ;;  %v2942_v12 = vld [vmem:[%s3986_s1 + $0x70] sm:$0xff]   ;;  %vm802_vm0 = vsmask.f32 7424 }
  0x10   : > { %s4026_s13 = smov (!%p180_p5, %s3051_s13), 1  ;;  %2858 = vmatpush1.bf16.msra.mxu1 %v2937_v0  ;;  %1261 = vmatpush1.bf16.msra.mxu0 %v2937_v0  ;;  %v2943_v15 = vld [vmem:[%s3986_s1 + $0x68] sm:$0xff]   ;;  %v2944_v20 = vld [vmem:[%s3986_s1 + $0x60] sm:$0xff]   ;;  %v2945_v22 = vld [vmem:[%s3986_s1 + $0xb8] sm:$0xff]   ;;  %vm689_vm1 = vcmask 523264   ;;  %vm1710_vm2 = vcmask 1046528  }
  0x11   : > { %2847 = vmatprep.subr.bf16.mxu1 %v3065_v1  ;;  %1262 = vmatprep.subr.bf16.mxu0 %v3065_v1  ;;  %s2870_s24 = smul.u32 680, %s4026_s13  ;;  %v2946_v25 = vld [vmem:[%s3986_s1 + $0xb0] sm:$0xff]   ;;  %v2949_v29 = vld [vmem:[%s3986_s1 + $0xa8] sm:$0xff]   ;;  %v2952_v37 = vld [vmem:[%s3986_s1 + $0xa0] sm:$0xff]   ;;  %s2485_s22 = sshll.u32 %s4026_s13, 7  ;;  %vm2344_vm3 = vcmask 519168  }
  0x13   : > { %s184_s27 = scalar_lea.vmem %s3985_s0, %s2870_s24 }
  0x14   : > { %2859 = vmatpush1.bf16.msra.mxu1 %v2938_v2  ;;  %1263 = vmatpush1.bf16.msra.mxu0 %v2938_v2  ;;  %s3139_s30 = scalar_lea.vmem %s184_s27, %s2813_s21 }
  0x15   : > { %2848 = vmatprep.subr.bf16.mxu1 %v3065_v1  ;;  %1264 = vmatprep.subr.bf16.mxu0 %v3065_v1  ;;  %v2913_v4 = vld [vmem:[%s3139_s30 + $0x6c] sm:$0xff]   ;;  %v2914_v6 = vld [vmem:[%s3139_s30 + $0x64] sm:$0xff]   ;;  %v2915_v7 = vld [vmem:[%s3139_s30 + $0x1c] sm:$0xff]  }
  0x16   : > { %563 = vrot.lane.b32.xlu1 %v2913_v4, %s3066_s6  ;;  %561 = vrot.lane.b32.xlu0 %v2914_v6, %s3066_s6  ;;  %v2916_v8 = vld [vmem:[%s3139_s30 + $0x14] sm:$0xff]   ;;  %v2917_v9 = vld [vmem:[%s3139_s30 + $0x24] ss:$0 sps:$4 sm:$0x11]  }
  0x17   : > { %v2918_v10 = vld [vmem:[%s3139_s30 + $0x74] ss:$0 sps:$4 sm:$0x11]   ;;  %v2919_v13 = vld [vmem:[%s3139_s30 + $0x78] sm:$0xff]   ;;  %v2920_v14 = vld [vmem:[%s3139_s30 + $0x28] sm:$0xff]  }
  0x18   : > { %2860 = vmatpush1.bf16.msra.mxu1 %v2939_v3  ;;  %1265 = vmatpush1.bf16.msra.mxu0 %v2939_v3  ;;  %v2922_v16 = vld [vmem:[%s3139_s30 + $0x30] sm:$0xff]   ;;  %v2921_v17 = vld [vmem:[%s3139_s30 + $0x80] sm:$0xff]   ;;  %v2924_v18 = vld [vmem:[%s3139_s30 + $0x38] ss:$0 sps:$4 sm:$0x11]  }
  0x19   : > { %2849 = vmatprep.subr.bf16.mxu1 %v3065_v1  ;;  %1266 = vmatprep.subr.bf16.mxu0 %v3065_v1  ;;  %v2923_v19 = vld [vmem:[%s3139_s30 + $0x88] ss:$0 sps:$4 sm:$0x11]   ;;  %v2926_v21 = vld [vmem:[%s3139_s30 + $0x3c] sm:$0xff]   ;;  %v2925_v23 = vld [vmem:[%s3139_s30 + $0x8c] sm:$0xff]  }
  0x1a   : > { %539 = vrot.lane.b32.xlu1 %v2915_v7, %s3066_s6  ;;  %537 = vrot.lane.b32.xlu0 %v2916_v8, %s3066_s6  ;;  %v2928_v24 = vld [vmem:[%s3139_s30 + $0x44] sm:$0xff]   ;;  %v2927_v26 = vld [vmem:[%s3139_s30 + $0x94] sm:$0xff]  }
  0x1b   : > { %v2930_v27 = vld [vmem:[%s3139_s30 + $0x4c] ss:$0 sps:$4 sm:$0x11]   ;;  %v2929_v28 = vld [vmem:[%s3139_s30 + $0x9c] ss:$0 sps:$4 sm:$0x11]  }
  0x1c   : > { %2861 = vmatpush1.bf16.msra.mxu1 %v2940_v5  ;;  %1267 = vmatpush1.bf16.msra.mxu0 %v2940_v5  ;;  %v2953_v30 = vld [vmem:[%s3139_s30 + $0x78] sm:$0xff]   ;;  %v3217_v31 = vld [vmem:[%s3139_s30 + $0x80] sm:$0xff]   ;;  %v2932_v33 = vld [vmem:[%s3139_s30 + $0x50] sm:$0xff]  }
  0x1d   : > { %2850 = vmatprep.subr.bf16.mxu1 %v3065_v1  ;;  %1268 = vmatprep.subr.bf16.mxu0 %v3065_v1  ;;  %v2931_v32 = vld [vmem:[%s3139_s30 + $0xa0] sm:$0xff]   ;;  %v962_v34 = vshrl.u32 %v2953_v30, 16  ;;  %v964_v35 = vshll.u32 %v2953_v30, 16  ;;  %v969_v36 = vshll.u32 %v3217_v31, 16  ;;  %v3229_v38 = vld [vmem:[%s3139_s30 + $0x28] sm:$0xff]   ;;  %v3235_v41 = vld [vmem:[%s3139_s30 + $0x30] sm:$0xff]  }
  0x1e   : > { %541 = vrot.lane.b32.xlu1 %v2917_v9, %s3066_s6  ;;  %565 = vrot.lane.b32.xlu0 %v2918_v10, %s3066_s6  ;;  %v814_v43 = vshrl.u32 %v3229_v38, 16  ;;  %v816_v44 = vshll.u32 %v3229_v38, 16  ;;  %v2934_v45 = vld [vmem:[%s3139_s30 + $0x58] sm:$0xff]   ;;  %v821_v46 = vshll.u32 %v3235_v41, 16  ;;  %v2933_v47 = vld [vmem:[%s3139_s30 + $0xa8] sm:$0xff]   ;;  %v980_v60 = vshrl.u32 %v3217_v31, 16 }
  0x1f   : > { %v966_v39 = vrot.slane %v964_v35, 1  ;;  %v971_v40 = vrot.slane %v969_v36, 1  ;;  %v2935_v51 = vld [vmem:[%s3139_s30 + $0xb0] ss:$0 sps:$4 sm:$0x11]   ;;  %v2947_v56 = vld [vmem:[%s3139_s30 + $0x58] sm:$0xff]  }
  0x20   : > { %2862 = vmatpush1.bf16.msra.mxu1 %v2941_v11  ;;  %1269 = vmatpush1.bf16.msra.mxu0 %v2941_v11  ;;  %v818_v49 = vrot.slane %v816_v44, 1  ;;  %v823_v50 = vrot.slane %v821_v46, 1  ;;  %v2936_v52 = vld [vmem:[%s3139_s30 + $0x60] ss:$0 sps:$4 sm:$0x11]   ;;  %v2948_v57 = vld [vmem:[%s3139_s30 + $0x50] sm:$0xff]  }
  0x21   : > { %2851 = vmatprep.subr.bf16.mxu1 %v3065_v1  ;;  %1270 = vmatprep.subr.bf16.mxu0 %v3065_v1  ;;  %v967_v42 = vor.u32 %v966_v39, %v962_v34  ;;  %v3257_v55 = vld [vmem:[%s3139_s30 + $0x88] ss:$0 sps:$4 sm:$0x11]   ;;  %v3262_v58 = vld [vmem:[%s3139_s30 + $0x8c] sm:$0xff]   ;;  %v2951_v4 = vld [vmem:[%s3139_s30] sm:$0xff]   ;;  %v982_v10 = vor.u32 %v980_v60, %v971_v40  ;;  %v832_v11 = vshrl.u32 %v3235_v41, 16 }
  0x22   : > { %543 = vrot.lane.b32.xlu1 %v2920_v14, %s3066_s6  ;;  %567 = vrot.lane.b32.xlu0 %v2919_v13, %s3066_s6  ;;  %v819_v53 = vor.u32 %v818_v49, %v814_v43  ;;  %v984_v61 = vshll.u32 %v3257_v55, 16  ;;  %v3267_v62 = vld [vmem:[%s3139_s30 + $0x38] ss:$0 sps:$4 sm:$0x11]   ;;  %v2950_v2 = vld [vmem:[%s3139_s30 + $0x8] sm:$0xff]   ;;  %v1001_v6 = vshll.u32 %v3262_v58, 16 }
  0x23   : > { %v972_v48 = vsel %vm802_vm0, %v967_v42, %v971_v40  ;;  %v3278_v5 = vld [vmem:[%s3139_s30 + $0x94] sm:$0xff]   ;;  %v836_v13 = vshll.u32 %v3267_v62, 16  ;;  %v3286_v14 = vld [vmem:[%s3139_s30 + $0x3c] sm:$0xff]   ;;  %v834_v31 = vor.u32 %v832_v11, %v823_v50  ;;  %v3306_v34 = vld [vmem:[%s3139_s30 + $0x44] sm:$0xff]  }
  0x24   : > { %2863 = vmatpush1.bf16.msra.mxu1 %v2942_v12  ;;  %1271 = vmatpush1.bf16.msra.mxu0 %v2942_v12  ;;  %v824_v54 = vsel %vm802_vm0, %v819_v53, %v823_v50  ;;  %v986_v12 = vrot.slane %v984_v61, 1  ;;  %v853_v35 = vshll.u32 %v3286_v14, 16  ;;  %v2962_v43 = vld [vmem:[%s3139_s30 + $0x14] sm:$0xff]   ;;  %v858_v61 = vshll.u32 %v3306_v34, 16 }
  0x25   : > { %2852 = vmatprep.subr.bf16.mxu1 %v3065_v1  ;;  %1272 = vmatprep.subr.bf16.mxu0 %v3065_v1  ;;  %v2961_v46 = vld [vmem:[%s3986_s1 + $0xf8] sm:$0xff]  }
  0x26   : > { %545 = vrot.lane.b32.xlu1 %v2922_v16, %s3066_s6  ;;  %569 = vrot.lane.b32.xlu0 %v2921_v17, %s3066_s6  ;;  %v855_v60 = vrot.slane %v853_v35, 1 }
  0x27   : > { %2690 = vmatprep.mubr.msk.bf16.mxu1 %vm689_vm1, %v972_v48  ;;  %2682 = vmatprep.mubr.msk.bf16.mxu0 %vm689_vm1, %v824_v54  ;;  %v3329_v54 = vld [vmem:[%s3139_s30 + $0x9c] ss:$0 sps:$4 sm:$0x11]  }
  0x28   : > { %2864 = vmatpush1.bf16.msra.mxu1 %v2943_v15  ;;  %1273 = vmatpush1.bf16.msra.mxu0 %v2943_v15 }
  0x29   : > { %2853 = vmatprep.subr.bf16.mxu1 %v3065_v1  ;;  %1274 = vmatprep.subr.bf16.mxu0 %v3065_v1 }
  0x2a   : > { %547 = vrot.lane.b32.xlu1 %v2924_v18, %s3066_s6  ;;  %571 = vrot.lane.b32.xlu0 %v2923_v19, %s3066_s6  ;;  %v2955_v19 = vld [vmem:[%s3139_s30 + $0x10] ss:$0 sps:$4 sm:$0x11]  }
  0x2c   : > { %2865 = vmatpush1.bf16.msra.mxu1 %v2944_v20  ;;  %1275 = vmatpush1.bf16.msra.mxu0 %v2944_v20 }
  0x2d   : > { %2854 = vmatprep.subr.bf16.mxu1 %v3065_v1  ;;  %1284 = vmatprep.subr.bf16.mxu0 %v3065_v1 }
  0x2e   : > { %549 = vrot.lane.b32.xlu1 %v2926_v21, %s3066_s6  ;;  %573 = vrot.lane.b32.xlu0 %v2925_v23, %s3066_s6  ;;  %v2956_v21 = vld [vmem:[%s3139_s30 + $0x60] ss:$0 sps:$4 sm:$0x11]   ;;  %v1003_v23 = vrot.slane %v1001_v6, 1 }
  0x30   : > { %2866 = vmatpush2.bf16.msra.mxu1 %v2945_v22  ;;  %1285 = vmatpush2.bf16.msra.mxu0 %v2945_v22  ;;  %v999_v22 = vshrl.u32 %v3262_v58, 16 }
  0x31   : > { %2855 = vmatprep.subr.bf16.mxu1 %v3065_v1  ;;  %1286 = vmatprep.subr.bf16.mxu0 %v3065_v1 }
  0x32   : > { %551 = vrot.lane.b32.xlu1 %v2928_v24, %s3066_s6  ;;  %575 = vrot.lane.b32.xlu0 %v2927_v26, %s3066_s6  ;;  %v1006_v24 = vshll.u32 %v3278_v5, 16  ;;  %v1004_v48 = vor.u32 %v1003_v23, %v999_v22  ;;  %v1021_v22 = vshll.u32 %v3329_v54, 16 }
  0x34   : > { %2867 = vmatpush2.bf16.msra.mxu1 %v2946_v25  ;;  %1287 = vmatpush2.bf16.msra.mxu0 %v2946_v25  ;;  %v1008_v49 = vrot.slane %v1006_v24, 1 }
  0x35   : > { %2856 = vmatprep.subr.bf16.mxu1 %v3065_v1  ;;  %1288 = vmatprep.subr.bf16.mxu0 %v3065_v1 }
  0x36   : > { %553 = vrot.lane.b32.xlu1 %v2930_v27, %s3066_s6  ;;  %577 = vrot.lane.b32.xlu0 %v2929_v28, %s3066_s6  ;;  %v1009_v11 = vsel %vm802_vm0, %v1004_v48, %v1008_v49  ;;  %v1023_v48 = vrot.slane %v1021_v22, 1 }
  0x38   : > { %2868 = vmatpush2.bf16.msra.mxu1 %v2949_v29  ;;  %1289 = vmatpush2.bf16.msra.mxu0 %v2949_v29  ;;  %v2957_v29 = vld [vmem:[%s3986_s1 + $0x38] sm:$0xff]  }
  0x39   : > { %2857 = vmatprep.subr.bf16.mxu1 %v3065_v1  ;;  %1290 = vmatprep.subr.bf16.mxu0 %v3065_v1 }
  0x3a   : > { %555 = vrot.lane.b32.xlu1 %v2932_v33, %s3066_s6  ;;  %579 = vrot.lane.b32.xlu0 %v2931_v32, %s3066_s6  ;;  %v987_v32 = vsel %vm802_vm0, %v982_v10, %v986_v12  ;;  %v838_v33 = vrot.slane %v836_v13, 1  ;;  %v2963_v10 = vld [vmem:[%s3139_s30 + $0x6c] sm:$0xff]   ;;  %v1017_v12 = vshrl.u32 %v3278_v5, 16  ;;  %v3348_v13 = vld [vmem:[%s3139_s30 + $0xa0] sm:$0xff]  }
  0x3c   : > { %2869 = vmatpush2.bf16.msra.mxu1 %v2952_v37  ;;  %1291 = vmatpush2.bf16.msra.mxu0 %v2952_v37 }
  0x3d   : > { %1525 = vmatprep.subr.bf16.mxu1 %v3065_v1  ;;  %1952 = vmatprep.subr.bf16.mxu0 %v3065_v1 }
  0x3e   : > { %557 = vrot.lane.b32.xlu1 %v2934_v45, %s3066_s6  ;;  %581 = vrot.lane.b32.xlu0 %v2933_v47, %s3066_s6  ;;  %v2960_v45 = vld [vmem:[%s3139_s30 + $0x64] sm:$0xff]   ;;  %v2965_v47 = vld [vmem:[%s3986_s1 + $0x30] sm:$0xff]  }
  0x42   : > { %559 = vrot.lane.b32.xlu1 %v2936_v52, %s3066_s6  ;;  %583 = vrot.lane.b32.xlu0 %v2935_v51, %s3066_s6 }
  0x88   : > { %v564_v59 = vpop.permute.xlu1 %563  ;;  %v562_v0 = vpop.permute.xlu0 %561 }
  0x89   : > { %v3270_v63 = vsel %vm689_vm1, %v2947_v56, %v564_v59  ;;  %v3274_v3 = vsel %vm689_vm1, %v2948_v57, %v562_v0  ;;  %v851_v59 = vshrl.u32 %v3286_v14, 16 }
  0x8a   : > { %v957_v7 = vshll.u32 %v3270_v63, 16  ;;  %v953_v8 = vshll.u32 %v3274_v3, 16  ;;  %v951_v15 = vshrl.u32 %v3274_v3, 16  ;;  %v973_v50 = vshrl.u32 %v3270_v63, 16 }
  0x8c   : > { %v540_v9 = vpop.permute.xlu1 %539  ;;  %v955_v16 = vrot.slane %v953_v8, 1  ;;  %v538_v18 = vpop.permute.xlu0 %537  ;;  %v959_v28 = vrot.slane %v957_v7, 1  ;;  %v2966_v7 = vld [vmem:[%s3139_s30 + $0x1c] sm:$0xff]   ;;  %v839_v8 = vsel %vm802_vm0, %v834_v31, %v838_v33 }
  0x8d   : > { %v3290_v17 = vsel %vm689_vm1, %v2950_v2, %v540_v9  ;;  %v3294_v20 = vsel %vm689_vm1, %v2951_v4, %v538_v18 }
  0x8e   : > { %v809_v25 = vshll.u32 %v3290_v17, 16  ;;  %v805_v26 = vshll.u32 %v3294_v20, 16  ;;  %v956_v27 = vor.u32 %v955_v16, %v951_v15  ;;  %v803_v36 = vshrl.u32 %v3294_v20, 16 }
  0x8f   : > { %v825_v15 = vshrl.u32 %v3290_v17, 16  ;;  %v975_v18 = vor.u32 %v973_v50, %v959_v28  ;;  %v3388_v50 = vld [vmem:[%s3139_s30 + $0x50] sm:$0xff]  }
  0x90   : > { %v542_v30 = vpop.permute.xlu1 %541  ;;  %v807_v37 = vrot.slane %v805_v26, 1  ;;  %v566_v40 = vpop.permute.xlu0 %565  ;;  %v960_v42 = vsel %vm802_vm0, %v956_v27, %v959_v28  ;;  %v811_v53 = vrot.slane %v809_v25, 1  ;;  %v856_v26 = vor.u32 %v855_v60, %v851_v59  ;;  %v3363_v28 = vld [vmem:[%s3139_s30 + $0x4c] ss:$0 sps:$4 sm:$0x11]  }
  0x91   : > { %v3311_v39 = vsel %vm689_vm1, %v2955_v19, %v542_v30  ;;  %v3316_v44 = vsel %vm689_vm1, %v2956_v21, %v566_v40  ;;  %1357 = vmatmul.mubr.bf16.vlgmr.msra.gmra.mxu1 %v960_v42  ;;  %v2967_v19 = vld [vmem:[%s3986_s1 + $0xf0] sm:$0xff]   ;;  %v2971_v21 = vld [vmem:[%s3986_s1 + $0x28] sm:$0xff]   ;;  %v860_v27 = vrot.slane %v858_v61, 1  ;;  %v1038_v42 = vshll.u32 %v3348_v13, 16 }
  0x92   : > { %v976_v51 = vshll.u32 %v3316_v44, 16  ;;  %1526 = vmatpush1.bf16.msra.mxu1 %v2957_v29  ;;  %v808_v52 = vor.u32 %v807_v37, %v803_v36  ;;  %2691 = vmatprep.mubr.msk.bf16.mxu1 %vm689_vm1, %v987_v32  ;;  %v828_v56 = vshll.u32 %v3311_v39, 16  ;;  %v2968_v36 = vld [vmem:[%s3139_s30 + $0x74] ss:$0 sps:$4 sm:$0x11]   ;;  %v1019_v37 = vor.u32 %v1017_v12, %v1008_v49  ;;  %v3376_v40 = vld [vmem:[%s3139_s30 + $0xa8] sm:$0xff]  }
  0x93   : > { %1527 = vmatprep.subr.bf16.mxu1 %v3065_v1  ;;  %v869_v49 = vshrl.u32 %v3306_v34, 16  ;;  %v2970_v61 = vld [vmem:[%s3139_s30 + $0x24] ss:$0 sps:$4 sm:$0x11]   ;;  %v1043_v12 = vshll.u32 %v3376_v40, 16 }
  0x94   : > { %v544_v57 = vpop.permute.xlu1 %543  ;;  %v978_v0 = vrot.slane %v976_v51, 1  ;;  %v568_v2 = vpop.permute.xlu0 %567  ;;  %v812_v4 = vsel %vm802_vm0, %v808_v52, %v811_v53  ;;  %v830_v23 = vrot.slane %v828_v56, 1 }
  0x95   : > { %v3337_v6 = vsel %vm689_vm1, %v2962_v43, %v544_v57  ;;  %v3342_v9 = vsel %vm689_vm1, %v2960_v45, %v568_v2  ;;  %1293 = vmatmul.mubr.bf16.vlgmr.msra.gmra.mxu0 %v812_v4  ;;  %v827_v45 = vor.u32 %v825_v15, %v811_v53  ;;  %v873_v57 = vshll.u32 %v3363_v28, 16  ;;  %v2979_v15 = vld [vmem:[%s3986_s1 + $0xe0] sm:$0xff]  }
  0x96   : > { %v990_v16 = vshll.u32 %v3342_v9, 16  ;;  %1953 = vmatpush1.bf16.msra.mxu0 %v2961_v46  ;;  %1528 = vmatpush1.bf16.msra.mxu1 %v2965_v47  ;;  %v842_v24 = vshll.u32 %v3337_v6, 16  ;;  %v988_v29 = vshrl.u32 %v3342_v9, 16  ;;  %v979_v32 = vsel %vm802_vm0, %v975_v18, %v978_v0  ;;  %v2974_v46 = vld [vmem:[%s3986_s1 + $0xe8] sm:$0xff]   ;;  %v2975_v47 = vld [vmem:[%s3986_s1 + $0x20] sm:$0xff]   ;;  %v3410_v18 = vld [vmem:[%s3139_s30 + $0x58] sm:$0xff]  }
  0x97   : > { %1954 = vmatprep.subr.bf16.mxu0 %v3065_v1  ;;  %2683 = vmatprep.mubr.msk.bf16.mxu0 %vm689_vm1, %v839_v8  ;;  %v840_v51 = vshrl.u32 %v3337_v6, 16  ;;  %v831_v60 = vsel %vm802_vm0, %v827_v45, %v830_v23  ;;  %v861_v4 = vsel %vm802_vm0, %v856_v26, %v860_v27  ;;  %v2976_v8 = vld [vmem:[%s3139_s30 + $0x78] sm:$0xff]   ;;  %v875_v26 = vrot.slane %v873_v57, 1 }
  0x98   : > { %v546_v25 = vpop.permute.xlu1 %545  ;;  %v992_v30 = vrot.slane %v990_v16, 1  ;;  %v570_v31 = vpop.permute.xlu0 %569  ;;  %1529 = vmatprep.subr.bf16.mxu1 %v3065_v1  ;;  %v844_v52 = vrot.slane %v842_v24, 1  ;;  %v1024_v16 = vsel %vm802_vm0, %v1019_v37, %v1023_v48  ;;  %v2983_v24 = vld [vmem:[%s3986_s1 + $0x18] sm:$0xff]   ;;  %v2980_v37 = vld [vmem:[%s3139_s30 + $0x28] sm:$0xff]  }
  0x99   : > { %v3368_v33 = vsel %vm689_vm1, %v2966_v7, %v546_v25  ;;  %v3372_v35 = vsel %vm689_vm1, %v2963_v10, %v570_v31  ;;  %1365 = vmatmul.mubr.bf16.gmra.mxu1 %v979_v32  ;;  %v1036_v10 = vshrl.u32 %v3348_v13, 16  ;;  %v871_v25 = vor.u32 %v869_v49, %v860_v27  ;;  %v2981_v27 = vld [vmem:[%s3139_s30 + $0x80] sm:$0xff]  }
  0x9a   : > { %v994_v43 = vshll.u32 %v3372_v35, 16  ;;  %1955 = vmatpush1.bf16.msra.mxu0 %v2967_v19  ;;  %1530 = vmatpush1.bf16.msra.mxu1 %v2971_v21  ;;  %v846_v53 = vshll.u32 %v3368_v33, 16  ;;  %v993_v0 = vor.u32 %v992_v30, %v988_v29  ;;  %v890_v19 = vshll.u32 %v3388_v50, 16 }
  0x9b   : > { %1956 = vmatprep.subr.bf16.mxu0 %v3065_v1  ;;  %2692 = vmatprep.mubr.msk.bf16.mxu1 %vm689_vm1, %v1009_v11  ;;  %v1040_v11 = vrot.slane %v1038_v42, 1  ;;  %v845_v21 = vor.u32 %v844_v52, %v840_v51  ;;  %v1010_v29 = vshrl.u32 %v3372_v35, 16  ;;  %v895_v49 = vshll.u32 %v3410_v18, 16  ;;  %v3437_v51 = vld [vmem:[%s3139_s30 + $0xb0] ss:$0 sps:$4 sm:$0x11]  }
  0x9c   : > { %v548_v56 = vpop.permute.xlu1 %547  ;;  %v572_v59 = vpop.permute.xlu0 %571  ;;  %v996_v2 = vrot.slane %v994_v43, 1  ;;  %1531 = vmatprep.subr.bf16.mxu1 %v3065_v1  ;;  %v848_v22 = vrot.slane %v846_v53, 1  ;;  %v2985_v43 = vld [vmem:[%s3986_s1 + $0xd8] sm:$0xff]   ;;  %v892_v48 = vrot.slane %v890_v19, 1  ;;  %v862_v52 = vshrl.u32 %v3368_v33, 16  ;;  %v2992_v19 = vld [vmem:[%s3986_s1 + $0xd0] sm:$0xff]  }
  0x9d   : > { %v3400_v7 = vsel %vm689_vm1, %v2968_v36, %v572_v59  ;;  %1301 = vmatmul.mubr.bf16.gmra.mxu0 %v831_v60  ;;  %v3421_v31 = vsel %vm689_vm1, %v2970_v61, %v548_v56  ;;  %v1041_v45 = vor.u32 %v1040_v11, %v1036_v10  ;;  %v876_v57 = vsel %vm802_vm0, %v871_v25, %v875_v26  ;;  %v2989_v59 = vld [vmem:[%s3986_s1 + $0x10] sm:$0xff]  }
  0x9e   : > { %1957 = vmatpush1.bf16.msra.mxu0 %v2974_v46  ;;  %1532 = vmatpush1.bf16.msra.mxu1 %v2975_v47  ;;  %v1013_v30 = vshll.u32 %v3400_v7, 16  ;;  %v997_v32 = vsel %vm802_vm0, %v993_v0, %v996_v2  ;;  %v1045_v46 = vrot.slane %v1043_v12, 1  ;;  %v888_v47 = vshrl.u32 %v3388_v50, 16  ;;  %v2984_v10 = vld [vmem:[%s3139_s30 + $0x30] sm:$0xff]  }
  0x9f   : > { %2684 = vmatprep.mubr.msk.bf16.mxu0 %vm689_vm1, %v861_v4  ;;  %1958 = vmatprep.subr.bf16.mxu0 %v3065_v1  ;;  %v865_v53 = vshll.u32 %v3421_v31, 16  ;;  %v849_v56 = vsel %vm802_vm0, %v845_v21, %v848_v22  ;;  %v897_v21 = vrot.slane %v895_v49, 1  ;;  %v3467_v25 = vld [vmem:[%s3139_s30 + $0xb4] sm:$0xff]  }
  0xa0   : > { %v550_v23 = vpop.permute.xlu1 %549  ;;  %v574_v36 = vpop.permute.xlu0 %573  ;;  %1533 = vmatprep.subr.bf16.mxu1 %v3065_v1  ;;  %v1015_v60 = vrot.slane %v1013_v30, 1  ;;  %4003 = vst [vmem:[#allocation4_spill] sm:$0xff] %v3467_v25 }
  0xa1   : > { %1373 = vmatmul.mubr.bf16.gmra.mxu1 %v997_v32  ;;  %v3427_v42 = vsel %vm689_vm1, %v2976_v8, %v574_v36  ;;  %v3449_v0 = vsel %vm689_vm1, %v2980_v37, %v550_v23  ;;  %v1012_v8 = vor.u32 %v1010_v29, %v996_v2  ;;  %v893_v2 = vor.u32 %v892_v48, %v888_v47  ;;  %v2993_v36 = vld [vmem:[%s3986_s1 + $0x8] sm:$0xff]  }
  0xa2   : > { %4001 = vst [vmem:[#allocation2_spill] sm:$0xff] %v3427_v42  ;;  %1959 = vmatpush1.bf16.msra.mxu0 %v2979_v15  ;;  %2693 = vmatprep.mubr.msk.bf16.mxu1 %vm689_vm1, %v1024_v16  ;;  %v1027_v61 = vshll.u32 %v3427_v42, 16  ;;  %v1046_v15 = vsel %vm802_vm0, %v1041_v45, %v1045_v46  ;;  %v3458_v16 = vld [vmem:[%s3139_s30 + $0x60] ss:$0 sps:$4 sm:$0x11]   ;;  %v1054_v23 = vshrl.u32 %v3376_v40, 16  ;;  %v864_v32 = vor.u32 %v862_v52, %v848_v22 }
  0xa3   : > { %1534 = vmatpush1.bf16.msra.mxu1 %v2983_v24  ;;  %1960 = vmatprep.subr.bf16.mxu0 %v3065_v1  ;;  %v1058_v24 = vshll.u32 %v3437_v51, 16  ;;  %v867_v26 = vrot.slane %v865_v53, 1  ;;  %v1025_v29 = vshrl.u32 %v3427_v42, 16  ;;  %v879_v30 = vshll.u32 %v3449_v0, 16  ;;  %v2997_v53 = vld [vmem:[%s3986_s1 + $0xc8] sm:$0xff]  }
  0xa4   : > { %v576_v4 = vpop.permute.xlu0 %575  ;;  %1535 = vmatprep.subr.bf16.mxu1 %v3065_v1  ;;  %v552_v12 = vpop.permute.xlu1 %551  ;;  %v1029_v37 = vrot.slane %v1027_v61, 1  ;;  %v2986_v22 = vld [vmem:[%s3139_s30 + $0x88] ss:$0 sps:$4 sm:$0x11]   ;;  %v906_v48 = vshrl.u32 %v3410_v18, 16  ;;  %v910_v49 = vshll.u32 %v3458_v16, 16  ;;  %v898_v52 = vsel %vm802_vm0, %v893_v2, %v897_v21 }
  0xa5   : > { %1309 = vmatmul.mubr.bf16.gmra.mxu0 %v849_v56  ;;  %v3454_v11 = vsel %vm689_vm1, %v2981_v27, %v576_v4  ;;  %v3478_v45 = vsel %vm689_vm1, %v2984_v10, %v552_v12  ;;  %v1056_v56 = vor.u32 %v1054_v23, %v1045_v46  ;;  %v881_v61 = vrot.slane %v879_v30, 1  ;;  %v3001_v10 = vld [vmem:[%s3986_s1] sm:$0xff]  }
  0xa6   : > { %4002 = vst [vmem:[#allocation3_spill] sm:$0xff] %v3454_v11  ;;  %1961 = vmatpush1.bf16.msra.mxu0 %v2985_v43  ;;  %2685 = vmatprep.mubr.msk.bf16.mxu0 %vm689_vm1, %v876_v57  ;;  %v1031_v27 = vshll.u32 %v3454_v11, 16  ;;  %v1016_v43 = vsel %vm802_vm0, %v1012_v8, %v1015_v60  ;;  %v3490_v57 = vld [vmem:[%s3139_s30 + $0xbc] sm:$0xff]   ;;  %v877_v60 = vshrl.u32 %v3449_v0, 16  ;;  %v883_v4 = vshll.u32 %v3478_v45, 16  ;;  %v3500_v12 = vld [vmem:[%s3139_s30 + $0x64] sm:$0xff]  }
  0xa7   : > { %1536 = vmatpush1.bf16.msra.mxu1 %v2989_v59  ;;  %1962 = vmatprep.subr.bf16.mxu0 %v3065_v1  ;;  %4004 = vst [vmem:[#allocation5_spill] sm:$0xff] %v3490_v57  ;;  %v1075_v59 = vshll.u32 %v3467_v25, 16  ;;  %v1060_v8 = vrot.slane %v1058_v24, 1  ;;  %v868_v46 = vsel %vm802_vm0, %v864_v32, %v867_v26  ;;  %v1030_v2 = vor.u32 %v1029_v37, %v1025_v29  ;;  %v2994_v24 = vld [vmem:[%s3139_s30 + $0x8c] sm:$0xff]   ;;  %v3003_v26 = vld [vmem:[%s3986_s1 + $0xc0] sm:$0xff]  }
  0xa8   : > { %v578_v47 = vpop.permute.xlu0 %577  ;;  %1537 = vmatprep.subr.bf16.mxu1 %v3065_v1  ;;  %v1033_v23 = vrot.slane %v1031_v27, 1  ;;  %v912_v42 = vrot.slane %v910_v49, 1  ;;  %v1073_v29 = vshrl.u32 %v3467_v25, 16  ;;  %v1080_v37 = vshll.u32 %v3490_v57, 16  ;;  %v3516_v27 = vld [vmem:[%s3139_s30 + $0x6c] sm:$0xff]  }
  0xa9   : > { %1381 = vmatmul.mubr.bf16.gmra.mxu1 %v1016_v43  ;;  %v908_v43 = vor.u32 %v906_v48, %v897_v21  ;;  %v1077_v32 = vrot.slane %v1075_v59, 1  ;;  %v1061_v21 = vsel %vm802_vm0, %v1056_v56, %v1060_v8  ;;  %v3007_v48 = vld [vmem:[%s3986_s1 + $0x58] sm:$0xff]   ;;  %v927_v49 = vshll.u32 %v3500_v12, 16 }
  0xaa   : > { %2694 = vmatprep.mubr.msk.bf16.mxu1 %vm689_vm1, %v1046_v15  ;;  %1963 = vmatpush1.bf16.msra.mxu0 %v2992_v19  ;;  %v554_v15 = vpop.permute.xlu1 %553  ;;  %v2988_v19 = vld [vmem:[%s3139_s30 + $0x38] ss:$0 sps:$4 sm:$0x11]  }
  0xab   : > { %1538 = vmatpush1.bf16.msra.mxu1 %v2993_v36  ;;  %1964 = vmatprep.subr.bf16.mxu0 %v3065_v1  ;;  %v3506_v36 = vsel %vm689_vm1, %v2986_v22, %v578_v47  ;;  %v882_v47 = vor.u32 %v881_v61, %v877_v60  ;;  %v885_v22 = vrot.slane %v883_v4, 1  ;;  %v3527_v59 = vsel %vm689_vm1, %v2988_v19, %v554_v15  ;;  %v2998_v61 = vld [vmem:[%s3139_s30 + $0x3c] sm:$0xff]   ;;  %v2999_v8 = vld [vmem:[%s3139_s30 + $0x94] sm:$0xff]  }
  0xac   : > { %v580_v30 = vpop.permute.xlu0 %579  ;;  %1539 = vmatprep.subr.bf16.mxu1 %v3065_v1  ;;  %4005 = vst [vmem:[#allocation6_spill] sm:$0xff] %v3506_v36  ;;  %v1034_v60 = vsel %vm802_vm0, %v1030_v2, %v1033_v23  ;;  %v1078_v19 = vor.u32 %v1077_v32, %v1073_v29  ;;  %v1082_v2 = vrot.slane %v1080_v37, 1  ;;  %v929_v29 = vrot.slane %v927_v49, 1 }
  0xad   : > { %1317 = vmatmul.mubr.bf16.gmra.mxu0 %v868_v46  ;;  %v3533_v4 = vsel %vm689_vm1, %v2994_v24, %v580_v30  ;;  %v3010_v46 = vld [vmem:[%s3986_s1 + $0x118] sm:$0xff]   ;;  %v3544_v30 = vld [vmem:[%s3139_s30 + $0xc4] ss:$0 sps:$4 sm:$0x11]   ;;  %v899_v24 = vshrl.u32 %v3478_v45, 16 }
  0xae   : > { %2686 = vmatprep.mubr.msk.bf16.mxu0 %vm689_vm1, %v898_v52  ;;  %1965 = vmatpush1.bf16.msra.mxu0 %v2997_v53  ;;  %v1047_v52 = vshrl.u32 %v3454_v11, 16  ;;  %v1050_v53 = vshll.u32 %v3506_v36, 16  ;;  %v556_v56 = vpop.permute.xlu1 %555  ;;  %4006 = vst [vmem:[#allocation7_spill] sm:$0xff] %v3533_v4  ;;  %v925_v36 = vshrl.u32 %v3500_v12, 16  ;;  %4007 = vst [vmem:[#allocation8_spill] sm:$0xff] %v3544_v30  ;;  %v1064_v37 = vshll.u32 %v3533_v4, 16 }
  0xaf   : > { %1540 = vmatpush1.bf16.msra.mxu1 %v3001_v10  ;;  %1966 = vmatprep.subr.bf16.mxu0 %v3065_v1  ;;  %v913_v10 = vsel %vm802_vm0, %v908_v43, %v912_v42  ;;  %v902_v42 = vshll.u32 %v3527_v59, 16  ;;  %v886_v43 = vsel %vm802_vm0, %v882_v47, %v885_v22  ;;  %v1083_v49 = vsel %vm802_vm0, %v1078_v19, %v1082_v2 }
  0xb0   : > { %1549 = vmatprep.subr.bf16.mxu1 %v3065_v1  ;;  %v582_v15 = vpop.permute.xlu0 %581  ;;  %v1052_v32 = vrot.slane %v1050_v53, 1  ;;  %v1049_v25 = vor.u32 %v1047_v52, %v1033_v23  ;;  %v1091_v23 = vshrl.u32 %v3490_v57, 16  ;;  %v1095_v52 = vshll.u32 %v3544_v30, 16 }
  0xb1   : > { %1389 = vmatmul.mubr.bf16.gmra.mxu1 %v1034_v60  ;;  %v932_v60 = vshll.u32 %v3516_v27, 16  ;;  %v3559_v47 = vsel %vm689_vm1, %v2999_v8, %v582_v15  ;;  %v901_v15 = vor.u32 %v899_v24, %v885_v22  ;;  %v1062_v19 = vshrl.u32 %v3533_v4, 16  ;;  %v3004_v22 = vld [vmem:[%s3139_s30 + $0x9c] ss:$0 sps:$4 sm:$0x11]   ;;  %v3020_v4 = vld [vmem:[%s3986_s1 + $0x100] sm:$0xff]  }
  0xb2   : > { %2695 = vmatprep.mubr.msk.bf16.mxu1 %vm689_vm1, %v1061_v21  ;;  %1967 = vmatpush1.bf16.msra.mxu0 %v3003_v26  ;;  %v3011_v26 = vld [vmem:[%s3986_s1 + $0x50] sm:$0xff]   ;;  %v3555_v21 = vsel %vm689_vm1, %v2998_v61, %v556_v56  ;;  %v558_v11 = vpop.permute.xlu1 %557  ;;  %v904_v61 = vrot.slane %v902_v42, 1  ;;  %v1068_v30 = vshll.u32 %v3559_v47, 16  ;;  %v1053_v42 = vsel %vm802_vm0, %v1049_v25, %v1052_v32 }
  0xb3   : > { %1550 = vmatpush2.bf16.msra.mxu1 %v3007_v48  ;;  %1976 = vmatprep.subr.bf16.mxu0 %v3065_v1  ;;  %v3002_v48 = vld [vmem:[%s3139_s30 + $0x44] sm:$0xff]   ;;  %v934_v53 = vrot.slane %v932_v60, 1  ;;  %v3014_v56 = vld [vmem:[%s3986_s1 + $0x110] sm:$0xff]   ;;  %v916_v8 = vshll.u32 %v3555_v21, 16  ;;  %v1066_v60 = vrot.slane %v1064_v37, 1  ;;  %v943_v25 = vshrl.u32 %v3516_v27, 16 }
  0xb4   : > { %1551 = vmatprep.subr.bf16.mxu1 %v3065_v1  ;;  %v584_v24 = vpop.permute.xlu0 %583  ;;  %v3017_v37 = vld [vmem:[%s3986_s1 + $0x108] sm:$0xff]   ;;  %v914_v32 = vshrl.u32 %v3555_v21, 16  ;;  %v1084_v57 = vshrl.u32 %v3559_v47, 16 }
  0xb5   : > { %1325 = vmatmul.mubr.bf16.gmra.mxu0 %v886_v43  ;;  %v930_v43 = vor.u32 %v929_v29, %v925_v36  ;;  %v3582_v36 = vsel %vm689_vm1, %v3002_v48, %v558_v11  ;;  %v1097_v29 = vrot.slane %v1095_v52, 1  ;;  %v1070_v52 = vrot.slane %v1068_v30, 1 }
  0xb6   : > { %2687 = vmatprep.mubr.msk.bf16.mxu0 %vm689_vm1, %v913_v10  ;;  %1977 = vmatpush2.bf16.msra.mxu0 %v3010_v46  ;;  %v3016_v10 = vld [vmem:[%s3986_s1 + $0x48] sm:$0xff]   ;;  %v3575_v46 = vld [vmem:[%s3139_s30 + $0x74] ss:$0 sps:$4 sm:$0x11]   ;;  %v945_v30 = vor.u32 %v943_v25, %v934_v53 }
  0xb7   : > { %1552 = vmatpush2.bf16.msra.mxu1 %v3011_v26  ;;  %1978 = vmatprep.subr.bf16.mxu0 %v3065_v1  ;;  %v1093_v26 = vor.u32 %v1091_v23, %v1082_v2  ;;  %v935_v11 = vsel %vm802_vm0, %v930_v43, %v934_v53  ;;  %v947_v48 = vshll.u32 %v3575_v46, 16  ;;  %v3019_v2 = vld [vmem:[%s3986_s1 + $0x40] sm:$0xff]   ;;  %v1067_v23 = vor.u32 %v1066_v60, %v1062_v19  ;;  %v3006_v43 = vld [vmem:[%s3139_s30 + $0x4c] ss:$0 sps:$4 sm:$0x11]  }
  0xb8   : > { %1553 = vmatprep.subr.bf16.mxu1 %v3065_v1  ;;  %v936_v53 = vshrl.u32 %v3582_v36, 16 }
  0xb9   : > { %1397 = vmatmul.mubr.bf16.gmra.mxu1 %v1053_v42  ;;  %v918_v42 = vrot.slane %v916_v8, 1  ;;  %v3601_v8 = vsel %vm689_vm1, %v3004_v22, %v584_v24  ;;  %v1071_v60 = vsel %vm802_vm0, %v1067_v23, %v1070_v52  ;;  %v1711_v23 = vrot.slane %v3294_v20, 1 }
  0xba   : > { %2696 = vmatprep.mubr.msk.bf16.mxu1 %vm689_vm1, %v1083_v49  ;;  %1979 = vmatpush2.bf16.msra.mxu0 %v3014_v56  ;;  %v920_v49 = vshll.u32 %v3582_v36, 16  ;;  %v905_v56 = vsel %vm802_vm0, %v901_v15, %v904_v61  ;;  %v1098_v61 = vsel %vm802_vm0, %v1093_v26, %v1097_v29  ;;  %v949_v15 = vrot.slane %v947_v48, 1 }
  0xbb   : > { %1554 = vmatpush2.bf16.msra.mxu1 %v3016_v10  ;;  %1980 = vmatprep.subr.bf16.mxu0 %v3065_v1  ;;  %v560_v10 = vpop.permute.xlu1 %559  ;;  %v1087_v19 = vshll.u32 %v3601_v8, 16  ;;  %v919_v22 = vor.u32 %v918_v42, %v914_v32  ;;  %v1714_v32 = vrot.slane %v3229_v38, 1  ;;  %v1715_v42 = vrot.slane %v3235_v41, 1 }
  0xbc   : > { %1555 = vmatprep.subr.bf16.mxu1 %v3065_v1  ;;  %v922_v24 = vrot.slane %v920_v49, 1  ;;  %v950_v26 = vsel %vm802_vm0, %v945_v30, %v949_v15  ;;  %v3021_v49 = vld [vmem:[%s3139_s30 + $0x28] sm:$0xff]   ;;  %v1719_v38 = vrot.slane %v3267_v62, 1  ;;  %v1712_v41 = vrot.slane %v3290_v17, 1 }
  0xbd   : > { %1333 = vmatmul.mubr.bf16.gmra.mxu0 %v905_v56  ;;  %v1089_v29 = vrot.slane %v1087_v19, 1  ;;  %v1716_v56 = vsel %vm1710_vm2, %v1714_v32, %v1715_v42  ;;  %v1725_v62 = vrot.slane %v3306_v34, 1  ;;  %v1717_v30 = vrot.slane %v3311_v39, 1  ;;  %v3023_v32 = vld [vmem:[%s3139_s30 + $0x78] sm:$0xff]  }
  0xbe   : > { %2688 = vmatprep.mubr.msk.bf16.mxu0 %vm689_vm1, %v935_v11  ;;  %1981 = vmatpush2.bf16.msra.mxu0 %v3017_v37  ;;  %v3614_v37 = vsel %vm689_vm1, %v3006_v43, %v560_v10  ;;  %v923_v25 = vsel %vm802_vm0, %v919_v22, %v922_v24  ;;  %v1086_v11 = vor.u32 %v1084_v57, %v1070_v52  ;;  %v3022_v52 = vld [vmem:[%s3139_s30 + $0x30] sm:$0xff]   ;;  %v1729_v19 = vrot.slane %v3363_v28, 1 }
  0xbf   : > { %1556 = vmatpush2.bf16.msra.mxu1 %v3019_v2  ;;  %1982 = vmatprep.subr.bf16.mxu0 %v3065_v1  ;;  %v939_v1 = vshll.u32 %v3614_v37, 16  ;;  %v938_v2 = vor.u32 %v936_v53, %v922_v24  ;;  %v1720_v43 = vsel %vm1710_vm2, %v1715_v42, %v1719_v38  ;;  %v1713_v10 = vsel %vm1710_vm2, %v1711_v23, %v1712_v41 }
  0xc0   : > { %v1718_v15 = vsel %vm1710_vm2, %v1712_v41, %v1717_v30  ;;  %v1722_v22 = vrot.slane %v3368_v33, 1  ;;  %v1734_v39 = vrot.slane %v3388_v50, 1  ;;  %v1735_v28 = vrot.slane %v3410_v18, 1 }
  0xc1   : > { %1405 = vmatmul.mubr.bf16.gmra.mxu1 %v1071_v60  ;;  %v941_v48 = vrot.slane %v939_v1, 1  ;;  %v1721_v60 = vrot.slane %v3337_v6, 1  ;;  %v1727_v24 = vrot.slane %v3421_v31, 1  ;;  %v1739_v53 = vrot.slane %v3458_v16, 1 }
  0xc2   : > { %2697 = vmatprep.mubr.msk.bf16.mxu1 %vm689_vm1, %v1098_v61  ;;  %1983 = vmatpush2.bf16.msra.mxu0 %v3020_v4  ;;  %v1090_v4 = vsel %vm802_vm0, %v1086_v11, %v1089_v29  ;;  %v1724_v61 = vrot.slane %v3286_v14, 1  ;;  %v1732_v29 = vrot.slane %v3478_v45, 1  ;;  %v1744_v31 = vrot.slane %v3500_v12, 1 }
  0xc3   : > { %v942_v57 = vsel %vm802_vm0, %v938_v2, %v941_v48  ;;  %v1745_v16 = vrot.slane %v3516_v27, 1  ;;  %v1737_v1 = vrot.slane %v3527_v59, 1  ;;  %v1741_v11 = vrot.slane %v3555_v21, 1  ;;  %v3024_v48 = vld [vmem:[%s3139_s30 + $0x80] sm:$0xff]   ;;  %s2483_s30 = sshll.u32 %s3047_s12, 3 }
  0xc4   : > { %v1742_v59 = vrot.slane %v3582_v36, 1  ;;  %v1754_v42 = vrot.slane %v3023_v32, 1  ;;  %v1759_v2 = vrot.slane %v3257_v55, 1  ;;  %v1765_v38 = vrot.slane %v3278_v5, 1  ;;  %p188_p6 = scmp.lt.s32.totalorder %s2483_s30, 31 }
  0xc5   : > { %1341 = vmatmul.mubr.bf16.gmra.mxu0 %v923_v25  ;;  %v1749_v25 = vrot.slane %v3575_v46, 1  ;;  %v1755_v46 = vrot.slane %v3024_v48, 1  ;;  %v1757_v55 = vrot.slane %v3316_v44, 1  ;;  %v1769_v23 = vrot.slane %v3329_v54, 1 }
  0xc6   : > { %2689 = vmatprep.mubr.msk.bf16.mxu0 %vm689_vm1, %v950_v26  ;;  %v1731_v26 = vrot.slane %v3449_v0, 1  ;;  %v1774_v44 = vrot.slane %v3348_v13, 1  ;;  %v1775_v54 = vrot.slane %v3376_v40, 1  ;;  %s4028_s30 = smov (!%p188_p6, %s2483_s30), 31 }
  0xc7   : > { %s2484_s21 = sshll.u32 %s4028_s30, 2 }
  0xc8   : > { %s192_s12 = sadd.s32 %s2485_s22, %s2484_s21 }
  0xc9   : > { %1413 = vmatmul.mubr.bf16.gmra.mxu1 %v1090_v4  ;;  %v1747_v4 = vrot.slane %v3614_v37, 1  ;;  %s2486_s25 = sshll.u32 %s192_s12, 2 }
  0xca   : > { %2710 = vmatprep.mubr.msk.bf16.mxu1 %vm689_vm1, %v3021_v49  ;;  %v1752_v49 = vrot.slane %v3270_v63, 1  ;;  %s3843_s27 = scalar_lea.vmem %s3988_s3, %s2486_s25 }
  0xcc   : > { %v1758_v41 = vsel %vm1710_vm2, %v1752_v49, %v1757_v55 }
  0xcd   : > { %1349 = vmatmul.mubr.bf16.gmra.mxu0 %v942_v57  ;;  %v1764_v57 = vrot.slane %v3262_v58, 1 }
  0xce   : > { %2762 = vmatprep.mubr.msk.bf16.mxu0 %vm689_vm1, %v1716_v56  ;;  %v1751_v56 = vrot.slane %v3274_v3, 1 }
  0xd0   : > { %v1753_v37 = vsel %vm1710_vm2, %v1751_v56, %v1752_v49 }
  0xd1   : > { %1558 = vmatmul.mubr.bf16.vlgmr.msra.gmra.mxu1 %v3294_v20  ;;  %v1726_v20 = vsel %vm1710_vm2, %v1724_v61, %v1725_v62  ;;  %v1779_v61 = vrot.slane %v3437_v51, 1 }
  0xd2   : > { %2711 = vmatprep.mubr.msk.bf16.mxu1 %vm689_vm1, %v3022_v52  ;;  %v1761_v52 = vrot.slane %v3342_v9, 1 }
  0xd5   : > { %1985 = vmatmul.mubr.bf16.vlgmr.msra.gmra.mxu0 %v1713_v10  ;;  %v1767_v10 = vrot.slane %v3400_v7, 1  ;;  %v4010_v7 = vld [vmem:[#allocation4_spill] sm:$0xff] }
  0xd6   : > { %2763 = vmatprep.mubr.msk.bf16.mxu0 %vm689_vm1, %v1720_v43  ;;  %v1762_v43 = vrot.slane %v3372_v35, 1 }
  0xd9   : > { %1566 = vmatmul.mubr.bf16.gmra.mxu1 %v3290_v17  ;;  %v1723_v17 = vsel %vm1710_vm2, %v1721_v60, %v1722_v22  ;;  %v4011_v60 = vld [vmem:[#allocation5_spill] sm:$0xff] }
  0xda   : > { %2712 = vmatprep.mubr.msk.bf16.mxu1 %vm689_vm1, %v3286_v14  ;;  %v1730_v14 = vsel %vm1710_vm2, %v1725_v62, %v1729_v19  ;;  %v4008_v62 = vld [vmem:[#allocation2_spill] sm:$0xff]  ;;  %v1784_v19 = vrot.slane %v4010_v7, 1  ;;  %v1785_v51 = vrot.slane %v4011_v60, 1 }
  0xdb   : > { %v1771_v30 = vrot.slane %v4008_v62, 1 }
  0xdd   : > { %1993 = vmatmul.mubr.bf16.gmra.mxu0 %v1718_v15 }
  0xde   : > { %2764 = vmatprep.mubr.msk.bf16.mxu0 %vm689_vm1, %v1726_v20  ;;  %v4009_v20 = vld [vmem:[#allocation3_spill] sm:$0xff] }
  0xdf   : > { %v1772_v15 = vrot.slane %v4009_v20, 1 }
  0xe1   : > { %1574 = vmatmul.mubr.bf16.gmra.mxu1 %v3337_v6  ;;  %v1728_v6 = vsel %vm1710_vm2, %v1722_v22, %v1727_v24  ;;  %v4012_v22 = vld [vmem:[#allocation6_spill] sm:$0xff]  ;;  %v4014_v24 = vld [vmem:[#allocation7_spill] sm:$0xff] }
  0xe2   : > { %2713 = vmatprep.mubr.msk.bf16.mxu1 %vm689_vm1, %v3306_v34  ;;  %v1736_v34 = vsel %vm1710_vm2, %v1734_v39, %v1735_v28  ;;  %v4013_v39 = vld [vmem:[#allocation8_spill] sm:$0xff] }
  0xe5   : > { %2001 = vmatmul.mubr.bf16.gmra.mxu0 %v1723_v17 }
  0xe6   : > { %2765 = vmatprep.mubr.msk.bf16.mxu0 %vm689_vm1, %v1730_v14  ;;  %v1777_v14 = vrot.slane %v4012_v22, 1 }
  0xe8   : > { %v1778_v17 = vsel %vm1710_vm2, %v1772_v15, %v1777_v14 }
  0xe9   : > { %1582 = vmatmul.mubr.bf16.gmra.mxu1 %v3368_v33  ;;  %v1740_v33 = vsel %vm1710_vm2, %v1735_v28, %v1739_v53  ;;  %v1789_v28 = vrot.slane %v4013_v39, 1 }
  0xea   : > { %2714 = vmatprep.mubr.msk.bf16.mxu1 %vm689_vm1, %v3388_v50  ;;  %v1733_v50 = vsel %vm1710_vm2, %v1731_v26, %v1732_v29 }
  0xeb   : > { %v1790_v53 = vsel %vm1710_vm2, %v1785_v51, %v1789_v28 }
  0xed   : > { %2009 = vmatmul.mubr.bf16.gmra.mxu0 %v1728_v6  ;;  %v1782_v6 = vrot.slane %v3559_v47, 1 }
  0xee   : > { %2766 = vmatprep.mubr.msk.bf16.mxu0 %vm689_vm1, %v1736_v34  ;;  %v1781_v34 = vrot.slane %v4014_v24, 1 }
  0xf0   : > { %v1783_v26 = vsel %vm1710_vm2, %v1781_v34, %v1782_v6 }
  0xf1   : > { %1590 = vmatmul.mubr.bf16.gmra.mxu1 %v3449_v0  ;;  %v1738_v0 = vsel %vm1710_vm2, %v1732_v29, %v1737_v1  ;;  %v1787_v29 = vrot.slane %v3601_v8, 1 }
  0xf2   : > { %2715 = vmatprep.mubr.msk.bf16.mxu1 %vm689_vm1, %v3410_v18  ;;  %v1746_v18 = vsel %vm1710_vm2, %v1744_v31, %v1745_v16 }
  0xf5   : > { %2017 = vmatmul.mubr.bf16.gmra.mxu0 %v1733_v50 }
  0xf6   : > { %2767 = vmatprep.mubr.msk.bf16.mxu0 %vm689_vm1, %v1740_v33  ;;  %v1788_v33 = vsel %vm1710_vm2, %v1782_v6, %v1787_v29 }
  0xf9   : > { %1598 = vmatmul.mubr.bf16.gmra.mxu1 %v3478_v45  ;;  %v1750_v45 = vsel %vm1710_vm2, %v1745_v16, %v1749_v25 }
  0xfa   : > { %2716 = vmatprep.mubr.msk.bf16.mxu1 %vm689_vm1, %v3500_v12  ;;  %v1743_v12 = vsel %vm1710_vm2, %v1741_v11, %v1742_v59 }
  0xfd   : > { %2025 = vmatmul.mubr.bf16.gmra.mxu0 %v1738_v0 }
  0xfe   : > { %2768 = vmatprep.mubr.msk.bf16.mxu0 %vm689_vm1, %v1746_v18 }
 0x101   : > { %1606 = vmatmul.mubr.bf16.gmra.mxu1 %v3555_v21  ;;  %v1756_v21 = vsel %vm1710_vm2, %v1754_v42, %v1755_v46 }
 0x102   : > { %2717 = vmatprep.mubr.msk.bf16.mxu1 %vm689_vm1, %v3516_v27  ;;  %v1748_v27 = vsel %vm1710_vm2, %v1742_v59, %v1747_v4 }
 0x105   : > { %2033 = vmatmul.mubr.bf16.gmra.mxu0 %v1743_v12 }
 0x106   : > { %2769 = vmatprep.mubr.msk.bf16.mxu0 %vm689_vm1, %v1750_v45 }
 0x109   : > { %1614 = vmatmul.mubr.bf16.gmra.mxu1 %v3582_v36  ;;  %v1760_v36 = vsel %vm1710_vm2, %v1755_v46, %v1759_v2 }
 0x10a   : > { %2718 = vmatprep.mubr.msk.bf16.mxu1 %vm689_vm1, %v3023_v32 }
 0x10d   : > { %2041 = vmatmul.mubr.bf16.gmra.mxu0 %v1748_v27 }
 0x10e   : > { %2770 = vmatprep.mubr.msk.bf16.mxu0 %vm689_vm1, %v1756_v21 }
 0x111   : > { %1622 = vmatmul.mubr.bf16.gmra.mxu1 %v3274_v3  ;;  %v1766_v3 = vsel %vm1710_vm2, %v1764_v57, %v1765_v38 }
 0x112   : > { %2719 = vmatprep.mubr.msk.bf16.mxu1 %vm689_vm1, %v3024_v48 }
 0x115   : > { %2049 = vmatmul.mubr.bf16.gmra.mxu0 %v1753_v37 }
 0x116   : > { %2771 = vmatprep.mubr.msk.bf16.mxu0 %vm689_vm1, %v1760_v36 }
 0x119   : > { %1630 = vmatmul.mubr.bf16.gmra.mxu1 %v3270_v63  ;;  %v1763_v63 = vsel %vm1710_vm2, %v1761_v52, %v1762_v43 }
 0x11a   : > { %2720 = vmatprep.mubr.msk.bf16.mxu1 %vm689_vm1, %v3262_v58  ;;  %v1770_v58 = vsel %vm1710_vm2, %v1765_v38, %v1769_v23 }
 0x11d   : > { %2057 = vmatmul.mubr.bf16.gmra.mxu0 %v1758_v41 }
 0x11e   : > { %2772 = vmatprep.mubr.msk.bf16.mxu0 %vm689_vm1, %v1766_v3 }
 0x121   : > { %1638 = vmatmul.mubr.bf16.gmra.mxu1 %v3342_v9  ;;  %v1768_v9 = vsel %vm1710_vm2, %v1762_v43, %v1767_v10 }
 0x122   : > { %2721 = vmatprep.mubr.msk.bf16.mxu1 %vm689_vm1, %v3278_v5  ;;  %v1776_v5 = vsel %vm1710_vm2, %v1774_v44, %v1775_v54 }
 0x125   : > { %2065 = vmatmul.mubr.bf16.gmra.mxu0 %v1763_v63 }
 0x126   : > { %2773 = vmatprep.mubr.msk.bf16.mxu0 %vm689_vm1, %v1770_v58 }
 0x129   : > { %1646 = vmatmul.mubr.bf16.gmra.mxu1 %v3372_v35  ;;  %v1773_v35 = vsel %vm1710_vm2, %v1771_v30, %v1772_v15 }
 0x12a   : > { %2722 = vmatprep.mubr.msk.bf16.mxu1 %vm689_vm1, %v3348_v13  ;;  %v1780_v13 = vsel %vm1710_vm2, %v1775_v54, %v1779_v61 }
 0x12d   : > { %2073 = vmatmul.mubr.bf16.gmra.mxu0 %v1768_v9 }
 0x12e   : > { %2774 = vmatprep.mubr.msk.bf16.mxu0 %vm689_vm1, %v1776_v5 }
 0x131   : > { %1654 = vmatmul.mubr.bf16.gmra.mxu1 %v4008_v62 }
 0x132   : > { %2723 = vmatprep.mubr.msk.bf16.mxu1 %vm689_vm1, %v3376_v40  ;;  %v1786_v40 = vsel %vm1710_vm2, %v1784_v19, %v1785_v51 }
 0x135   : > { %2081 = vmatmul.mubr.bf16.gmra.mxu0 %v1773_v35 }
 0x136   : > { %2775 = vmatprep.mubr.msk.bf16.mxu0 %vm689_vm1, %v1780_v13 }
 0x139   : > { %1662 = vmatmul.mubr.bf16.gmra.mxu1 %v4009_v20 }
 0x13a   : > { %2724 = vmatprep.mubr.msk.bf16.mxu1 %vm689_vm1, %v4010_v7 }
 0x13d   : > { %2089 = vmatmul.mubr.bf16.gmra.mxu0 %v1778_v17 }
 0x13e   : > { %2776 = vmatprep.mubr.msk.bf16.mxu0 %vm689_vm1, %v1786_v40 }
 0x141   : > { %1670 = vmatmul.mubr.bf16.gmra.mxu1 %v4014_v24 }
 0x142   : > { %2725 = vmatprep.mubr.msk.bf16.mxu1 %vm689_vm1, %v4011_v60 }
 0x145   : > { %2097 = vmatmul.mubr.bf16.gmra.mxu0 %v1783_v26 }
 0x146   : > { %2777 = vmatprep.mubr.msk.bf16.mxu0 %vm689_vm1, %v1790_v53 }
 0x149   : > { %1678 = vmatmul.mubr.bf16.gmra.mxu1 %v3559_v47 }
 0x14d   : > { %2105 = vmatmul.mubr.bf16.gmra.mxu0 %v1788_v33 }
 0x151   : > { %v3766_v50 = vpop.f32.mrf.mxu1 }
 0x153   : > { %v1360_v31 = vpop.f32.mrf.mxu1 }
 0x155   : > { %v3768_v16 = vpop.f32.mrf.mxu0  ;;  %v3770_v1 = vpop.f32.mrf.mxu1 }
 0x157   : > { %v1296_v18 = vpop.f32.mrf.mxu0  ;;  %v1363_v0 = vpop.f32.mrf.mxu1 }
 0x159   : > { %v3772_v25 = vpop.f32.mrf.mxu0  ;;  %v3774_v11 = vpop.f32.mrf.mxu1 }
 0x15b   : > { %v1299_v59 = vpop.f32.mrf.mxu0  ;;  %v1368_v8 = vpop.f32.mrf.mxu1 }
 0x15d   : > { %v3776_v45 = vpop.f32.mrf.mxu0  ;;  %v3778_v47 = vpop.f32.mrf.mxu1 }
 0x15f   : > { %v1304_v12 = vpop.f32.mrf.mxu0  ;;  %v1371_v32 = vpop.f32.mrf.mxu1 }
 0x160   : > { %v3836_v12 = vld [vmem:[%s3987_s2] ss:$0 sm:$0xff] }
 0x161   : > { %v3780_v42 = vpop.f32.mrf.mxu0  ;;  %v3782_v48 = vpop.f32.mrf.mxu1 }
 0x163   : > { %v1307_v46 = vpop.f32.mrf.mxu0  ;;  %v1376_v4 = vpop.f32.mrf.mxu1 }
 0x165   : > { %v3784_v21 = vpop.f32.mrf.mxu0  ;;  %v3786_v27 = vpop.f32.mrf.mxu1 }
 0x167   : > { %v1312_v2 = vpop.f32.mrf.mxu0  ;;  %v1379_v49 = vpop.f32.mrf.mxu1 }
 0x169   : > { %v3788_v56 = vpop.f32.mrf.mxu0  ;;  %v3790_v36 = vpop.f32.mrf.mxu1 }
 0x16b   : > { %v1315_v37 = vpop.f32.mrf.mxu0  ;;  %v1384_v57 = vpop.f32.mrf.mxu1 }
 0x16d   : > { %v3792_v38 = vpop.f32.mrf.mxu0  ;;  %v3794_v55 = vpop.f32.mrf.mxu1 }
 0x16f   : > { %v1320_v3 = vpop.f32.mrf.mxu0  ;;  %v1387_v41 = vpop.f32.mrf.mxu1 }
 0x171   : > { %v3796_v23 = vpop.f32.mrf.mxu0  ;;  %v3798_v52 = vpop.f32.mrf.mxu1 }
 0x173   : > { %v1323_v43 = vpop.f32.mrf.mxu0  ;;  %v1392_v58 = vpop.f32.mrf.mxu1 }
 0x175   : > { %v3800_v63 = vpop.f32.mrf.mxu0  ;;  %v3802_v44 = vpop.f32.mrf.mxu1 }
 0x177   : > { %v1328_v54 = vpop.f32.mrf.mxu0  ;;  %v1395_v10 = vpop.f32.mrf.mxu1 }
 0x179   : > { %v3804_v5 = vpop.f32.mrf.mxu0  ;;  %v3806_v9 = vpop.f32.mrf.mxu1 }
 0x17b   : > { %v1331_v61 = vpop.f32.mrf.mxu0  ;;  %v1400_v62 = vpop.f32.mrf.mxu1 }
 0x17d   : > { %v3808_v30 = vpop.f32.mrf.mxu0  ;;  %v3810_v20 = vpop.f32.mrf.mxu1 }
 0x17f   : > { %v1336_v15 = vpop.f32.mrf.mxu0  ;;  %v1403_v13 = vpop.f32.mrf.mxu1 }
 0x181   : > { %v3812_v35 = vpop.f32.mrf.mxu0  ;;  %v3814_v7 = vpop.f32.mrf.mxu1 }
 0x183   : > { %v1339_v19 = vpop.f32.mrf.mxu0  ;;  %v1408_v60 = vpop.f32.mrf.mxu1 }
 0x185   : > { %v3816_v51 = vpop.f32.mrf.mxu0  ;;  %v3818_v22 = vpop.f32.mrf.mxu1 }
 0x187   : > { %v1344_v14 = vpop.f32.mrf.mxu0  ;;  %v1411_v40 = vpop.f32.mrf.mxu1 }
 0x189   : > { %v3821_v17 = vpop.f32.mrf.mxu0  ;;  %v3823_v39 = vpop.f32.mrf.mxu1 }
 0x18b   : > { %v1347_v28 = vpop.f32.mrf.mxu0  ;;  %v1416_v24 = vpop.f32.mrf.mxu1 }
 0x18d   : > { %v3825_v34 = vpop.f32.mrf.mxu0  ;;  %v3827_v6 = vpop.f32.mrf.mxu1 }
 0x18f   : > { %v1352_v53 = vpop.f32.mrf.mxu0  ;;  %v1419_v26 = vpop.f32.mrf.mxu1 }
 0x191   : > { %v3829_v29 = vpop.f32.mrf.mxu0  ;;  %v1559_v33 = vpop.f32.mrf.mxu1 }
 0x192   : > { %v1560_v0 = vadd.f32 %v1559_v33, %v3768_v16 }
 0x193   : > { %v1355_v31 = vpop.f32.mrf.mxu0  ;;  %v1561_v18 = vpop.f32.mrf.mxu1 }
 0x195   : > { %v1562_v59 = vpop.f32.mrf.mxu1  ;;  %v1986_v8 = vpop.f32.mrf.mxu0 }
 0x196   : > { %v2113_v32 = vadd.f32 %v1986_v8, %v1560_v0  ;;  %v1563_v2 = vadd.f32 %v1562_v59, %v3772_v25 }
 0x197   : > { %v1564_v46 = vpop.f32.mrf.mxu1  ;;  %v1988_v4 = vpop.f32.mrf.mxu0 }
 0x198   : > { %v2152_v49 = vadd.f32 %v3836_v12, %v2113_v32 }
 0x199   : > { %v1567_v37 = vpop.f32.mrf.mxu1  ;;  %v1989_v57 = vpop.f32.mrf.mxu0 }
 0x19a   : > { %v2184_v3 = vmax.f32 %v2152_v49, 0.0  ;;  %v2114_v16 = vadd.f32 %v1989_v57, %v1563_v2  ;;  %v1568_v25 = vadd.f32 %v1567_v37, %v3776_v45 }
 0x19b   : > { %v1569_v41 = vpop.f32.mrf.mxu1  ;;  %v1991_v43 = vpop.f32.mrf.mxu0 }
 0x19c   : > { %v2814_v58 = vpack.c.bf16 %v2184_v3, %v2184_v3  ;;  %v2153_v54 = vadd.f32 %v3836_v12, %v2114_v16 }
 0x19d   : > { %v1570_v10 = vpop.f32.mrf.mxu1  ;;  %v1994_v61 = vpop.f32.mrf.mxu0 }
 0x19e   : > { %2345 = vst.msk [vmem:[%s3843_s27] sm:$0xf] %vm2344_vm3, %v2814_v58  ;;  %v2185_v62 = vmax.f32 %v2153_v54, 0.0  ;;  %v2115_v15 = vadd.f32 %v1994_v61, %v1568_v25  ;;  %v1571_v14 = vadd.f32 %v1570_v10, %v3780_v42 }
 0x19f   : > { %v1572_v13 = vpop.f32.mrf.mxu1  ;;  %v1996_v19 = vpop.f32.mrf.mxu0 }
 0x1a0   : > { %v2815_v60 = vpack.c.bf16 %v2185_v62, %v2185_v62  ;;  %v2154_v40 = vadd.f32 %v3836_v12, %v2115_v15 }
 0x1a1   : > { %v1575_v28 = vpop.f32.mrf.mxu1  ;;  %v1997_v24 = vpop.f32.mrf.mxu0 }
 0x1a2   : > { %2346 = vst.msk [vmem:[%s3843_s27 + $0x4] sm:$0xf] %vm2344_vm3, %v2815_v60  ;;  %v2186_v45 = vmax.f32 %v2154_v40, 0.0  ;;  %v2116_v53 = vadd.f32 %v1997_v24, %v1571_v14  ;;  %v1576_v18 = vadd.f32 %v1575_v28, %v3784_v21 }
 0x1a3   : > { %v1577_v26 = vpop.f32.mrf.mxu1  ;;  %v1999_v33 = vpop.f32.mrf.mxu0 }
 0x1a4   : > { %v2816_v31 = vpack.c.bf16 %v2186_v45, %v2186_v45  ;;  %v2155_v0 = vadd.f32 %v3836_v12, %v2116_v53 }
 0x1a5   : > { %v1578_v59 = vpop.f32.mrf.mxu1  ;;  %v2002_v8 = vpop.f32.mrf.mxu0 }
 0x1a6   : > { %2347 = vst.msk [vmem:[%s3843_s27 + $0x8] sm:$0xf] %vm2344_vm3, %v2816_v31  ;;  %v2187_v42 = vmax.f32 %v2155_v0, 0.0  ;;  %v2117_v32 = vadd.f32 %v2002_v8, %v1576_v18  ;;  %v1579_v49 = vadd.f32 %v1578_v59, %v3788_v56 }
 0x1a7   : > { %v1580_v46 = vpop.f32.mrf.mxu1  ;;  %v2004_v4 = vpop.f32.mrf.mxu0 }
 0x1a8   : > { %v2817_v2 = vpack.c.bf16 %v2187_v42, %v2187_v42  ;;  %v2156_v37 = vadd.f32 %v3836_v12, %v2117_v32 }
 0x1a9   : > { %v1583_v57 = vpop.f32.mrf.mxu1  ;;  %v2005_v3 = vpop.f32.mrf.mxu0 }
 0x1aa   : > { %2348 = vst.msk [vmem:[%s3843_s27 + $0xc] sm:$0xf] %vm2344_vm3, %v2817_v2  ;;  %v2188_v21 = vmax.f32 %v2156_v37, 0.0  ;;  %v2118_v16 = vadd.f32 %v2005_v3, %v1579_v49  ;;  %v1584_v25 = vadd.f32 %v1583_v57, %v3792_v38 }
 0x1ab   : > { %v1585_v41 = vpop.f32.mrf.mxu1  ;;  %v2007_v43 = vpop.f32.mrf.mxu0 }
 0x1ac   : > { %v2818_v58 = vpack.c.bf16 %v2188_v21, %v2188_v21  ;;  %v2157_v54 = vadd.f32 %v3836_v12, %v2118_v16 }
 0x1ad   : > { %v1586_v10 = vpop.f32.mrf.mxu1  ;;  %v2010_v61 = vpop.f32.mrf.mxu0 }
 0x1ae   : > { %2349 = vst.msk [vmem:[%s3843_s27 + $0x10] sm:$0xf] %vm2344_vm3, %v2818_v58  ;;  %v2189_v56 = vmax.f32 %v2157_v54, 0.0  ;;  %v2119_v62 = vadd.f32 %v2010_v61, %v1584_v25  ;;  %v1587_v60 = vadd.f32 %v1586_v10, %v3796_v23 }
 0x1af   : > { %v1588_v15 = vpop.f32.mrf.mxu1  ;;  %v2012_v13 = vpop.f32.mrf.mxu0 }
 0x1b0   : > { %v2819_v19 = vpack.c.bf16 %v2189_v56, %v2189_v56  ;;  %v2158_v14 = vadd.f32 %v3836_v12, %v2119_v62 }
 0x1b1   : > { %v1591_v40 = vpop.f32.mrf.mxu1  ;;  %v2013_v28 = vpop.f32.mrf.mxu0 }
 0x1b2   : > { %2350 = vst.msk [vmem:[%s3843_s27 + $0x14] sm:$0xf] %vm2344_vm3, %v2819_v19  ;;  %v2190_v38 = vmax.f32 %v2158_v14, 0.0  ;;  %v2120_v24 = vadd.f32 %v2013_v28, %v1587_v60  ;;  %v1592_v33 = vadd.f32 %v1591_v40, %v3800_v63 }
 0x1b3   : > { %v1593_v45 = vpop.f32.mrf.mxu1  ;;  %v2015_v53 = vpop.f32.mrf.mxu0 }
 0x1b4   : > { %v2820_v26 = vpack.c.bf16 %v2190_v38, %v2190_v38  ;;  %v2159_v31 = vadd.f32 %v3836_v12, %v2120_v24 }
 0x1b5   : > { %v1594_v18 = vpop.f32.mrf.mxu1  ;;  %v2018_v0 = vpop.f32.mrf.mxu0 }
 0x1b6   : > { %2351 = vst.msk [vmem:[%s3843_s27 + $0x18] sm:$0xf] %vm2344_vm3, %v2820_v26  ;;  %v2191_v23 = vmax.f32 %v2159_v31, 0.0  ;;  %v2121_v59 = vadd.f32 %v2018_v0, %v1592_v33  ;;  %v1595_v46 = vadd.f32 %v1594_v18, %v3804_v5 }
 0x1b7   : > { %v1596_v8 = vpop.f32.mrf.mxu1  ;;  %v2020_v42 = vpop.f32.mrf.mxu0 }
 0x1b8   : > { %v2821_v32 = vpack.c.bf16 %v2191_v23, %v2191_v23  ;;  %v2160_v4 = vadd.f32 %v3836_v12, %v2121_v59 }
 0x1b9   : > { %v1599_v2 = vpop.f32.mrf.mxu1  ;;  %v2021_v49 = vpop.f32.mrf.mxu0 }
 0x1ba   : > { %2352 = vst.msk [vmem:[%s3843_s27 + $0x1c] sm:$0xf] %vm2344_vm3, %v2821_v32  ;;  %v2192_v63 = vmax.f32 %v2160_v4, 0.0  ;;  %v2122_v37 = vadd.f32 %v2021_v49, %v1595_v46  ;;  %v1600_v16 = vadd.f32 %v1599_v2, %v3808_v30 }
 0x1bb   : > { %v1601_v57 = vpop.f32.mrf.mxu1  ;;  %v2023_v3 = vpop.f32.mrf.mxu0 }
 0x1bc   : > { %v2822_v21 = vpack.c.bf16 %v2192_v63, %v2192_v63  ;;  %v2161_v41 = vadd.f32 %v3836_v12, %v2122_v37 }
 0x1bd   : > { %v1602_v43 = vpop.f32.mrf.mxu1  ;;  %v2026_v58 = vpop.f32.mrf.mxu0 }
 0x1be   : > { %2353 = vst.msk [vmem:[%s3843_s27 + $0x20] sm:$0xf] %vm2344_vm3, %v2822_v21  ;;  %v2193_v5 = vmax.f32 %v2161_v41, 0.0  ;;  %v2123_v25 = vadd.f32 %v2026_v58, %v1600_v16  ;;  %v1603_v56 = vadd.f32 %v1602_v43, %v3812_v35 }
 0x1bf   : > { %v1604_v54 = vpop.f32.mrf.mxu1  ;;  %v2028_v10 = vpop.f32.mrf.mxu0 }
 0x1c0   : > { %v2823_v61 = vpack.c.bf16 %v2193_v5, %v2193_v5  ;;  %v2162_v62 = vadd.f32 %v3836_v12, %v2123_v25 }
 0x1c1   : > { %v1607_v15 = vpop.f32.mrf.mxu1  ;;  %v2029_v13 = vpop.f32.mrf.mxu0 }
 0x1c2   : > { %2354 = vst.msk [vmem:[%s3843_s27 + $0x24] sm:$0xf] %vm2344_vm3, %v2823_v61  ;;  %v2194_v30 = vmax.f32 %v2162_v62, 0.0  ;;  %v2124_v19 = vadd.f32 %v2029_v13, %v1603_v56  ;;  %v1608_v28 = vadd.f32 %v1607_v15, %v3816_v51 }
 0x1c3   : > { %v1609_v60 = vpop.f32.mrf.mxu1  ;;  %v2031_v14 = vpop.f32.mrf.mxu0 }
 0x1c4   : > { %v2824_v40 = vpack.c.bf16 %v2194_v30, %v2194_v30  ;;  %v2163_v38 = vadd.f32 %v3836_v12, %v2124_v19 }
 0x1c5   : > { %v1610_v24 = vpop.f32.mrf.mxu1  ;;  %v2034_v45 = vpop.f32.mrf.mxu0 }
 0x1c6   : > { %2355 = vst.msk [vmem:[%s3843_s27 + $0x28] sm:$0xf] %vm2344_vm3, %v2824_v40  ;;  %v2195_v35 = vmax.f32 %v2163_v38, 0.0  ;;  %v2125_v53 = vadd.f32 %v2034_v45, %v1608_v28  ;;  %v1611_v18 = vadd.f32 %v1610_v24, %v3821_v17 }
 0x1c7   : > { %v1612_v26 = vpop.f32.mrf.mxu1  ;;  %v2036_v33 = vpop.f32.mrf.mxu0 }
 0x1c8   : > { %v2825_v31 = vpack.c.bf16 %v2195_v35, %v2195_v35  ;;  %v2164_v0 = vadd.f32 %v3836_v12, %v2125_v53 }
 0x1c9   : > { %v1615_v23 = vpop.f32.mrf.mxu1  ;;  %v2037_v59 = vpop.f32.mrf.mxu0 }
 0x1ca   : > { %2356 = vst.msk [vmem:[%s3843_s27 + $0x2c] sm:$0xf] %vm2344_vm3, %v2825_v31  ;;  %v2196_v51 = vmax.f32 %v2164_v0, 0.0  ;;  %v2126_v8 = vadd.f32 %v2037_v59, %v1611_v18  ;;  %v1616_v4 = vadd.f32 %v1615_v23, %v3825_v34 }
 0x1cb   : > { %v1617_v42 = vpop.f32.mrf.mxu1  ;;  %v2039_v32 = vpop.f32.mrf.mxu0 }
 0x1cc   : > { %v2826_v46 = vpack.c.bf16 %v2196_v51, %v2196_v51  ;;  %v2165_v2 = vadd.f32 %v3836_v12, %v2126_v8 }
 0x1cd   : > { %v1618_v49 = vpop.f32.mrf.mxu1  ;;  %v2042_v63 = vpop.f32.mrf.mxu0 }
 0x1ce   : > { %2357 = vst.msk [vmem:[%s3843_s27 + $0x30] sm:$0xf] %vm2344_vm3, %v2826_v46  ;;  %v2197_v17 = vmax.f32 %v2165_v2, 0.0  ;;  %v2127_v37 = vadd.f32 %v2042_v63, %v1616_v4  ;;  %v1619_v16 = vadd.f32 %v1618_v49, %v3829_v29 }
 0x1cf   : > { %v1620_v57 = vpop.f32.mrf.mxu1  ;;  %v2044_v3 = vpop.f32.mrf.mxu0 }
 0x1d0   : > { %v2827_v21 = vpack.c.bf16 %v2197_v17, %v2197_v17  ;;  %v2166_v41 = vadd.f32 %v3836_v12, %v2127_v37 }
 0x1d1   : > { %v1623_v43 = vpop.f32.mrf.mxu1  ;;  %v2045_v58 = vpop.f32.mrf.mxu0 }
 0x1d2   : > { %2358 = vst.msk [vmem:[%s3843_s27 + $0x34] sm:$0xf] %vm2344_vm3, %v2827_v21  ;;  %v2198_v34 = vmax.f32 %v2166_v41, 0.0  ;;  %v2128_v5 = vadd.f32 %v2045_v58, %v1619_v16  ;;  %v1624_v61 = vadd.f32 %v1623_v43, %v3766_v50 }
 0x1d3   : > { %v1625_v25 = vpop.f32.mrf.mxu1  ;;  %v2047_v54 = vpop.f32.mrf.mxu0 }
 0x1d4   : > { %v2828_v10 = vpack.c.bf16 %v2198_v34, %v2198_v34  ;;  %v2167_v56 = vadd.f32 %v3836_v12, %v2128_v5 }
 0x1d5   : > { %v1626_v62 = vpop.f32.mrf.mxu1  ;;  %v2050_v15 = vpop.f32.mrf.mxu0 }
 0x1d6   : > { %2359 = vst.msk [vmem:[%s3843_s27 + $0x38] sm:$0xf] %vm2344_vm3, %v2828_v10  ;;  %v2199_v29 = vmax.f32 %v2167_v56, 0.0  ;;  %v2129_v13 = vadd.f32 %v2050_v15, %v1624_v61  ;;  %v1627_v14 = vadd.f32 %v1626_v62, %v3770_v1 }
 0x1d7   : > { %v1628_v30 = vpop.f32.mrf.mxu1  ;;  %v2052_v19 = vpop.f32.mrf.mxu0 }
 0x1d8   : > { %v2829_v60 = vpack.c.bf16 %v2199_v29, %v2199_v29  ;;  %v2168_v40 = vadd.f32 %v3836_v12, %v2129_v13 }
 0x1d9   : > { %v1631_v28 = vpop.f32.mrf.mxu1  ;;  %v2053_v38 = vpop.f32.mrf.mxu0 }
 0x1da   : > { %2360 = vst.msk [vmem:[%s3843_s27 + $0x3c] sm:$0xf] %vm2344_vm3, %v2829_v60  ;;  %v2200_v50 = vmax.f32 %v2168_v40, 0.0  ;;  %v2130_v24 = vadd.f32 %v2053_v38, %v1627_v14  ;;  %v1632_v26 = vadd.f32 %v1631_v28, %v3774_v11 }
 0x1db   : > { %v1633_v45 = vpop.f32.mrf.mxu1  ;;  %v2055_v35 = vpop.f32.mrf.mxu0 }
 0x1dc   : > { %v2830_v53 = vpack.c.bf16 %v2200_v50, %v2200_v50  ;;  %v2169_v33 = vadd.f32 %v3836_v12, %v2130_v24 }
 0x1dd   : > { %v1634_v31 = vpop.f32.mrf.mxu1  ;;  %v2058_v18 = vpop.f32.mrf.mxu0 }
 0x1de   : > { %2361 = vst.msk [vmem:[%s3843_s27 + $0x40] sm:$0xf] %vm2344_vm3, %v2830_v53  ;;  %v2201_v1 = vmax.f32 %v2169_v33, 0.0  ;;  %v2131_v0 = vadd.f32 %v2058_v18, %v1632_v26  ;;  %v1635_v8 = vadd.f32 %v1634_v31, %v3778_v47 }
 0x1df   : > { %v1636_v23 = vpop.f32.mrf.mxu1  ;;  %v2060_v59 = vpop.f32.mrf.mxu0 }
 0x1e0   : > { %v2831_v51 = vpack.c.bf16 %v2201_v1, %v2201_v1  ;;  %v2170_v42 = vadd.f32 %v3836_v12, %v2131_v0 }
 0x1e1   : > { %v1639_v32 = vpop.f32.mrf.mxu1  ;;  %v2061_v46 = vpop.f32.mrf.mxu0 }
 0x1e2   : > { %2362 = vst.msk [vmem:[%s3843_s27 + $0x44] sm:$0xf] %vm2344_vm3, %v2831_v51  ;;  %v2202_v11 = vmax.f32 %v2170_v42, 0.0  ;;  %v2132_v4 = vadd.f32 %v2061_v46, %v1635_v8  ;;  %v1640_v17 = vadd.f32 %v1639_v32, %v3782_v48 }
 0x1e3   : > { %v1641_v2 = vpop.f32.mrf.mxu1  ;;  %v2063_v49 = vpop.f32.mrf.mxu0 }
 0x1e4   : > { %v2832_v63 = vpack.c.bf16 %v2202_v11, %v2202_v11  ;;  %v2171_v37 = vadd.f32 %v3836_v12, %v2132_v4 }
 0x1e5   : > { %v1642_v57 = vpop.f32.mrf.mxu1  ;;  %v2066_v3 = vpop.f32.mrf.mxu0 }
 0x1e6   : > { %2363 = vst.msk [vmem:[%s3843_s27 + $0x48] sm:$0xf] %vm2344_vm3, %v2832_v63  ;;  %v2203_v47 = vmax.f32 %v2171_v37, 0.0  ;;  %v2133_v21 = vadd.f32 %v2066_v3, %v1640_v17  ;;  %v1643_v58 = vadd.f32 %v1642_v57, %v3786_v27 }
 0x1e7   : > { %v1644_v16 = vpop.f32.mrf.mxu1  ;;  %v2068_v41 = vpop.f32.mrf.mxu0 }
 0x1e8   : > { %v2833_v43 = vpack.c.bf16 %v2203_v47, %v2203_v47  ;;  %v2172_v34 = vadd.f32 %v3836_v12, %v2133_v21 }
 0x1e9   : > { %v1647_v5 = vpop.f32.mrf.mxu1  ;;  %v2069_v25 = vpop.f32.mrf.mxu0 }
 0x1ea   : > { %2364 = vst.msk [vmem:[%s3843_s27 + $0x4c] sm:$0xf] %vm2344_vm3, %v2833_v43  ;;  %v2204_v48 = vmax.f32 %v2172_v34, 0.0  ;;  %v2134_v54 = vadd.f32 %v2069_v25, %v1643_v58  ;;  %v1648_v62 = vadd.f32 %v1647_v5, %v3790_v36 }
 0x1eb   : > { %v1649_v10 = vpop.f32.mrf.mxu1  ;;  %v2071_v61 = vpop.f32.mrf.mxu0 }
 0x1ec   : > { %v2834_v56 = vpack.c.bf16 %v2204_v48, %v2204_v48  ;;  %v2173_v15 = vadd.f32 %v3836_v12, %v2134_v54 }
 0x1ed   : > { %v1650_v29 = vpop.f32.mrf.mxu1  ;;  %v2074_v13 = vpop.f32.mrf.mxu0 }
 0x1ee   : > { %2365 = vst.msk [vmem:[%s3843_s27 + $0x50] sm:$0xf] %vm2344_vm3, %v2834_v56  ;;  %v2205_v27 = vmax.f32 %v2173_v15, 0.0  ;;  %v2135_v30 = vadd.f32 %v2074_v13, %v1648_v62  ;;  %v1651_v40 = vadd.f32 %v1650_v29, %v3794_v55 }
 0x1ef   : > { %v1652_v19 = vpop.f32.mrf.mxu1  ;;  %v2076_v60 = vpop.f32.mrf.mxu0 }
 0x1f0   : > { %v2835_v14 = vpack.c.bf16 %v2205_v27, %v2205_v27  ;;  %v2174_v28 = vadd.f32 %v3836_v12, %v2135_v30 }
 0x1f1   : > { %v1655_v38 = vpop.f32.mrf.mxu1  ;;  %v2077_v50 = vpop.f32.mrf.mxu0 }
 0x1f2   : > { %2366 = vst.msk [vmem:[%s3843_s27 + $0x54] sm:$0xf] %vm2344_vm3, %v2835_v14  ;;  %v2206_v36 = vmax.f32 %v2174_v28, 0.0  ;;  %v2136_v24 = vadd.f32 %v2077_v50, %v1651_v40  ;;  %v1656_v26 = vadd.f32 %v1655_v38, %v3798_v52 }
 0x1f3   : > { %v1657_v45 = vpop.f32.mrf.mxu1  ;;  %v2079_v35 = vpop.f32.mrf.mxu0 }
 0x1f4   : > { %v2836_v53 = vpack.c.bf16 %v2206_v36, %v2206_v36  ;;  %v2175_v33 = vadd.f32 %v3836_v12, %v2136_v24 }
 0x1f5   : > { %v1658_v31 = vpop.f32.mrf.mxu1  ;;  %v2082_v18 = vpop.f32.mrf.mxu0 }
 0x1f6   : > { %2367 = vst.msk [vmem:[%s3843_s27 + $0x58] sm:$0xf] %vm2344_vm3, %v2836_v53  ;;  %v2207_v55 = vmax.f32 %v2175_v33, 0.0  ;;  %v2137_v1 = vadd.f32 %v2082_v18, %v1656_v26  ;;  %v1659_v51 = vadd.f32 %v1658_v31, %v3802_v44 }
 0x1f7   : > { %v1660_v0 = vpop.f32.mrf.mxu1  ;;  %v2084_v23 = vpop.f32.mrf.mxu0 }
 0x1f8   : > { %v2837_v59 = vpack.c.bf16 %v2207_v55, %v2207_v55  ;;  %v2176_v8 = vadd.f32 %v3836_v12, %v2137_v1 }
 0x1f9   : > { %v1663_v42 = vpop.f32.mrf.mxu1  ;;  %v2085_v32 = vpop.f32.mrf.mxu0 }
 0x1fa   : > { %2368 = vst.msk [vmem:[%s3843_s27 + $0x5c] sm:$0xf] %vm2344_vm3, %v2837_v59  ;;  %v2208_v52 = vmax.f32 %v2176_v8, 0.0  ;;  %v2138_v46 = vadd.f32 %v2085_v32, %v1659_v51  ;;  %v1664_v49 = vadd.f32 %v1663_v42, %v3806_v9 }
 0x1fb   : > { %v1665_v11 = vpop.f32.mrf.mxu1  ;;  %v2087_v4 = vpop.f32.mrf.mxu0 }
 0x1fc   : > { %v2838_v2 = vpack.c.bf16 %v2208_v52, %v2208_v52  ;;  %v2177_v63 = vadd.f32 %v3836_v12, %v2138_v46 }
 0x1fd   : > { %v1666_v17 = vpop.f32.mrf.mxu1  ;;  %v2090_v37 = vpop.f32.mrf.mxu0 }
 0x1fe   : > { %2369 = vst.msk [vmem:[%s3843_s27 + $0x60] sm:$0xf] %vm2344_vm3, %v2838_v2  ;;  %v2209_v44 = vmax.f32 %v2177_v63, 0.0  ;;  %v2139_v57 = vadd.f32 %v2090_v37, %v1664_v49  ;;  %v1667_v16 = vadd.f32 %v1666_v17, %v3810_v20 }
 0x1ff   : > { %v1668_v3 = vpop.f32.mrf.mxu1  ;;  %v2092_v47 = vpop.f32.mrf.mxu0 }
 0x200   : > { %v2839_v21 = vpack.c.bf16 %v2209_v44, %v2209_v44  ;;  %v2178_v41 = vadd.f32 %v3836_v12, %v2139_v57 }
 0x201   : > { %v1671_v43 = vpop.f32.mrf.mxu1  ;;  %v2093_v58 = vpop.f32.mrf.mxu0 }
 0x202   : > { %2370 = vst.msk [vmem:[%s3843_s27 + $0x64] sm:$0xf] %vm2344_vm3, %v2839_v21  ;;  %v2210_v9 = vmax.f32 %v2178_v41, 0.0  ;;  %v2140_v34 = vadd.f32 %v2093_v58, %v1667_v16  ;;  %v1672_v54 = vadd.f32 %v1671_v43, %v3814_v7 }
 0x203   : > { %v1673_v5 = vpop.f32.mrf.mxu1  ;;  %v2095_v25 = vpop.f32.mrf.mxu0 }
 0x204   : > { %v2840_v48 = vpack.c.bf16 %v2210_v9, %v2210_v9  ;;  %v2179_v10 = vadd.f32 %v3836_v12, %v2140_v34 }
 0x205   : > { %v1674_v61 = vpop.f32.mrf.mxu1  ;;  %v2098_v56 = vpop.f32.mrf.mxu0 }
 0x206   : > { %2371 = vst.msk [vmem:[%s3843_s27 + $0x68] sm:$0xf] %vm2344_vm3, %v2840_v48  ;;  %v2211_v20 = vmax.f32 %v2179_v10, 0.0  ;;  %v2141_v62 = vadd.f32 %v2098_v56, %v1672_v54  ;;  %v1675_v27 = vadd.f32 %v1674_v61, %v3818_v22 }
 0x207   : > { %v1676_v15 = vpop.f32.mrf.mxu1  ;;  %v2100_v29 = vpop.f32.mrf.mxu0 }
 0x208   : > { %v2841_v13 = vpack.c.bf16 %v2211_v20, %v2211_v20  ;;  %v2180_v30 = vadd.f32 %v3836_v12, %v2141_v62 }
 0x209   : > { %v1679_v19 = vpop.f32.mrf.mxu1  ;;  %v2101_v60 = vpop.f32.mrf.mxu0 }
 0x20a   : > { %2372 = vst.msk [vmem:[%s3843_s27 + $0x6c] sm:$0xf] %vm2344_vm3, %v2841_v13  ;;  %v2212_v7 = vmax.f32 %v2180_v30, 0.0  ;;  %v2142_v14 = vadd.f32 %v2101_v60, %v1675_v27  ;;  %v1680_v50 = vadd.f32 %v1679_v19, %v3823_v39 }
 0x20b   : > { %v1681_v40 = vpop.f32.mrf.mxu1  ;;  %v2103_v28 = vpop.f32.mrf.mxu0 }
 0x20c   : > { %v2842_v38 = vpack.c.bf16 %v2212_v7, %v2212_v7  ;;  %v2181_v36 = vadd.f32 %v3836_v12, %v2142_v14 }
 0x20d   : > { %v1682_v24 = vpop.f32.mrf.mxu1  ;;  %v2106_v45 = vpop.f32.mrf.mxu0 }
 0x20e   : > { %2373 = vst.msk [vmem:[%s3843_s27 + $0x70] sm:$0xf] %vm2344_vm3, %v2842_v38  ;;  %v2213_v22 = vmax.f32 %v2181_v36, 0.0  ;;  %v2143_v35 = vadd.f32 %v2106_v45, %v1680_v50  ;;  %v1683_v31 = vadd.f32 %v1682_v24, %v3827_v6 }
 0x20f   : > { %v1684_v53 = vpop.f32.mrf.mxu1  ;;  %v2108_v26 = vpop.f32.mrf.mxu0 }
 0x210   : > { %v2843_v33 = vpack.c.bf16 %v2213_v22, %v2213_v22  ;;  %v2182_v18 = vadd.f32 %v3836_v12, %v2143_v35 }
 0x211   : > { %v2109_v55 = vpop.f32.mrf.mxu0 }
 0x212   : > { %2374 = vst.msk [vmem:[%s3843_s27 + $0x74] sm:$0xf] %vm2344_vm3, %v2843_v33  ;;  %v2214_v39 = vmax.f32 %v2182_v18, 0.0  ;;  %v2144_v1 = vadd.f32 %v2109_v55, %v1683_v31 }
 0x213   : > { %v2111_v0 = vpop.f32.mrf.mxu0 }
 0x214   : > { %v2844_v23 = vpack.c.bf16 %v2214_v39, %v2214_v39  ;;  %v2183_v59 = vadd.f32 %v3836_v12, %v2144_v1 }
 0x216   : > { %2375 = vst.msk [vmem:[%s3843_s27 + $0x78] sm:$0xf] %vm2344_vm3, %v2844_v23  ;;  %v2215_v51 = vmax.f32 %v2183_v59, 0.0 }
 0x218   : > { %v2845_v8 = vpack.c.bf16 %v2215_v51, %v2215_v51 }
 0x21a   : > { %2376 = vst.msk [vmem:[%s3843_s27 + $0x7c] sm:$0xf] %vm2344_vm3, %v2845_v8 }
 0x21b PF: > { %s13_s16 = sadd.s32 1, %s3063_s16   ;;  %s4015_s12 = smov %s3055_s14 }
 0x21c   : > { %p10_p7 = scmp.ge.s32.totalorder %s13_s16, 10   ;;  %s4016_s13 = smov %s3059_s15 }
 0x21d   : > { %s4017_s14 = smov %s4020_s17  ;;  %s4018_s15 = smov %s4024_s18 }
 0x21e   :  { %12 = sbr.rel (!%p10_p7) target bundleno = 3 (0x3), region = 67 }

// kernel: _lambda_.13
= control target key start
LH: loop header
LB: loop body
LE: loop exit
PB: predicated region body
PF: predicated region fallthrough
CT: control target
= control target key end

     0   :  { %s2883_s12 = smov 0   ;;  %s2885_s13 = smov 0   ;;  %s3767_s0 = inlined_call_operand.vmem [shape: bf16[2,36,36,64], index: 0, kind: input, shape index: {}]   ;;  %s3768_s1 = inlined_call_operand.vmem [shape: bf16[3,192,64], index: 1, kind: input, shape index: {}]   ;;  %s3769_s2 = inlined_call_operand.vmem [shape: f32[1,64], index: 2, kind: input, shape index: {}]   ;;  %s3770_s3 = inlined_call_operand.vmem [shape: bf16[2,32,32,64], index: 3, kind: output, shape index: {}]  }
   0x1   :  { %s2887_s14 = smov 0   ;;  %s2889_s15 = smov 0  }
   0x2   :  { %s2891_s16 = smov 0  }
   0x3 LB: > { %s22_s17 = sadd.s32 1, %s2851_s14  ;;  %s25_s18 = sadd.s32 1, %s2855_s15  ;;  %s2859_s16 = sphi %s2891_s16, %s13_s16   ;;  %s2855_s15 = sphi %s2889_s15, %s3790_s15   ;;  %s2851_s14 = sphi %s2887_s14, %s3789_s14   ;;  %s2847_s13 = sphi %s2885_s13, %s3788_s13   ;;  %s2843_s12 = sphi %s2883_s12, %s3787_s12  }
   0x4   : > { %p23_p0 = scmp.ge.s32.totalorder %s22_s17, 4  ;;  %p2281_p1 = scmp.ge.s32.totalorder %s2859_s16, 1 }
   0x5   : > { %p151_p2 = scmp.lt.s32.totalorder %s2859_s16, 9 }
   0x6   : > { %s3792_s17 = smov (%p23_p0, %s22_s17), 0  ;;  %s3794_s18 = smov (!%p23_p0, %s25_s18), %s2855_s15 }
   0x7   : > { %p152_p3 = pnand %p2281_p1, %p151_p2  ;;  %p27_p4 = scmp.ge.s32.totalorder %s3794_s18, 2 }
   0x9   : > { %s3796_s18 = smov (%p27_p4, %s3794_s18), 0  ;;  %155 = sbr.rel (%p152_p3) target bundleno = 537 (0x219), region = 32 }
   0xe   : > { %p180_p5 = scmp.lt.s32.totalorder %s2847_s13, 1  ;;  %v2737_v0 = vld [vmem:[%s3768_s1 + $0x98] sm:$0xff]   ;;  %s2613_s21 = smul.u32 160, %s2843_s12  ;;  %v3772_v1 = vmov 0   ;;  %v2738_v2 = vld [vmem:[%s3768_s1 + $0x90] sm:$0xff]   ;;  %v2739_v3 = vld [vmem:[%s3768_s1 + $0x88] sm:$0xff]  }
   0xf   : > { %2646 = vmatprep.subr.bf16.mxu1 %v3772_v1  ;;  %1068 = vmatprep.subr.bf16.mxu0 %v3772_v1  ;;  %v2740_v5 = vld [vmem:[%s3768_s1 + $0x80] sm:$0xff]   ;;  %s2862_s6 = smov 64   ;;  %v2741_v11 = vld [vmem:[%s3768_s1 + $0x78] sm:$0xff]   ;;  %v2742_v12 = vld [vmem:[%s3768_s1 + $0x70] sm:$0xff]   ;;  %vm826_vm0 = vcmask 1046528   ;;  %vm689_vm1 = vcmask 523264  }
  0x10   : > { %s3798_s13 = smov (!%p180_p5, %s2847_s13), 1  ;;  %2658 = vmatpush1.bf16.msra.mxu1 %v2737_v0  ;;  %1069 = vmatpush1.bf16.msra.mxu0 %v2737_v0  ;;  %v2743_v15 = vld [vmem:[%s3768_s1 + $0x68] sm:$0xff]   ;;  %v2744_v21 = vld [vmem:[%s3768_s1 + $0x60] sm:$0xff]   ;;  %v2745_v23 = vld [vmem:[%s3768_s1 + $0xb8] sm:$0xff]   ;;  %vm1510_vm2 = vcmask 1045504   ;;  %vm2144_vm3 = vcmask 519168  }
  0x11   : > { %2647 = vmatprep.subr.bf16.mxu1 %v3772_v1  ;;  %1070 = vmatprep.subr.bf16.mxu0 %v3772_v1  ;;  %s2670_s24 = smul.u32 720, %s3798_s13  ;;  %v2746_v26 = vld [vmem:[%s3768_s1 + $0xb0] sm:$0xff]   ;;  %v2749_v29 = vld [vmem:[%s3768_s1 + $0xa8] sm:$0xff]   ;;  %v2752_v38 = vld [vmem:[%s3768_s1 + $0xa0] sm:$0xff]  }
  0x13   : > { %s184_s27 = scalar_lea.vmem %s3767_s0, %s2670_s24 }
  0x14   : > { %2659 = vmatpush1.bf16.msra.mxu1 %v2738_v2  ;;  %1071 = vmatpush1.bf16.msra.mxu0 %v2738_v2  ;;  %s2935_s30 = scalar_lea.vmem %s184_s27, %s2613_s21 }
  0x15   : > { %2648 = vmatprep.subr.bf16.mxu1 %v3772_v1  ;;  %1072 = vmatprep.subr.bf16.mxu0 %v3772_v1  ;;  %v2713_v4 = vld [vmem:[%s2935_s30 + $0x78] sm:$0xff]   ;;  %v2714_v6 = vld [vmem:[%s2935_s30 + $0x28] sm:$0xff]   ;;  %v2715_v7 = vld [vmem:[%s2935_s30 + $0x80] sm:$0xff]  }
  0x16   : > { %561 = vrot.lane.b32.xlu0 %v2713_v4, %s2862_s6  ;;  %537 = vrot.lane.b32.xlu1 %v2714_v6, %s2862_s6  ;;  %v2716_v8 = vld [vmem:[%s2935_s30 + $0x30] sm:$0xff]   ;;  %v2717_v9 = vld [vmem:[%s2935_s30 + $0x88] ss:$0 sps:$4 sm:$0x33]  }
  0x17   : > { %v2718_v10 = vld [vmem:[%s2935_s30 + $0x38] ss:$0 sps:$4 sm:$0x33]   ;;  %v2719_v13 = vld [vmem:[%s2935_s30 + $0x8c] sm:$0xff]   ;;  %v2721_v16 = vld [vmem:[%s2935_s30 + $0x3c] sm:$0xff]  }
  0x18   : > { %2660 = vmatpush1.bf16.msra.mxu1 %v2739_v3  ;;  %1073 = vmatpush1.bf16.msra.mxu0 %v2739_v3  ;;  %v2720_v14 = vld [vmem:[%s2935_s30 + $0x94] sm:$0xff]   ;;  %v2722_v17 = vld [vmem:[%s2935_s30 + $0x44] sm:$0xff]   ;;  %v2723_v18 = vld [vmem:[%s2935_s30 + $0x9c] ss:$0 sps:$4 sm:$0x33]  }
  0x19   : > { %2649 = vmatprep.subr.bf16.mxu1 %v3772_v1  ;;  %1074 = vmatprep.subr.bf16.mxu0 %v3772_v1  ;;  %v2724_v19 = vld [vmem:[%s2935_s30 + $0x4c] ss:$0 sps:$4 sm:$0x33]   ;;  %v2725_v20 = vld [vmem:[%s2935_s30 + $0xa0] sm:$0xff]   ;;  %v2726_v24 = vld [vmem:[%s2935_s30 + $0x50] sm:$0xff]  }
  0x1a   : > { %563 = vrot.lane.b32.xlu0 %v2715_v7, %s2862_s6  ;;  %539 = vrot.lane.b32.xlu1 %v2716_v8, %s2862_s6  ;;  %v2727_v22 = vld [vmem:[%s2935_s30 + $0xa8] sm:$0xff]   ;;  %v2729_v25 = vld [vmem:[%s2935_s30 + $0x58] sm:$0xff]  }
  0x1b   : > { %v2728_v27 = vld [vmem:[%s2935_s30 + $0xb0] ss:$0 sps:$4 sm:$0x33]   ;;  %v2730_v28 = vld [vmem:[%s2935_s30 + $0x60] ss:$0 sps:$4 sm:$0x33]  }
  0x1c   : > { %2661 = vmatpush1.bf16.msra.mxu1 %v2740_v5  ;;  %1075 = vmatpush1.bf16.msra.mxu0 %v2740_v5  ;;  %v3012_v30 = vld [vmem:[%s2935_s30 + $0x50] sm:$0xff]   ;;  %v3015_v31 = vld [vmem:[%s2935_s30 + $0x58] sm:$0xff]   ;;  %v3022_v34 = vld [vmem:[%s2935_s30 + $0xa0] sm:$0xff]  }
  0x1d   : > { %2650 = vmatprep.subr.bf16.mxu1 %v3772_v1  ;;  %1076 = vmatprep.subr.bf16.mxu0 %v3772_v1  ;;  %v830_v32 = vrot.slane %v3012_v30, 1  ;;  %v831_v33 = vrot.slane %v3015_v31, 1  ;;  %v3025_v35 = vld [vmem:[%s2935_s30 + $0xa8] sm:$0xff]   ;;  %v2731_v36 = vld [vmem:[%s2935_s30 + $0xb4] sm:$0xff]   ;;  %v2733_v37 = vld [vmem:[%s2935_s30 + $0xbc] sm:$0xff]   ;;  %v870_v40 = vrot.slane %v3022_v34, 1 }
  0x1e   : > { %565 = vrot.lane.b32.xlu0 %v2717_v9, %s2862_s6  ;;  %541 = vrot.lane.b32.xlu1 %v2718_v10, %s2862_s6  ;;  %v871_v41 = vrot.slane %v3025_v35, 1  ;;  %v2732_v43 = vld [vmem:[%s2935_s30 + $0x64] sm:$0xff]   ;;  %v2735_v44 = vld [vmem:[%s2935_s30 + $0x6c] sm:$0xff]  }
  0x1f   : > { %v832_v39 = vsel %vm826_vm0, %v830_v32, %v831_v33  ;;  %v2734_v45 = vld [vmem:[%s2935_s30 + $0xc4] ss:$0 sps:$4 sm:$0x33]   ;;  %v2736_v46 = vld [vmem:[%s2935_s30 + $0x74] ss:$0 sps:$4 sm:$0x33]  }
  0x20   : > { %2662 = vmatpush1.bf16.msra.mxu1 %v2741_v11  ;;  %1077 = vmatpush1.bf16.msra.mxu0 %v2741_v11  ;;  %v872_v42 = vsel %vm826_vm0, %v870_v40, %v871_v41  ;;  %v2747_v47 = vld [vmem:[%s2935_s30 + $0x50] sm:$0xff]   ;;  %v2748_v49 = vld [vmem:[%s2935_s30] sm:$0xff]   ;;  %v2750_v50 = vld [vmem:[%s2935_s30 + $0x58] sm:$0xff]  }
  0x21   : > { %2651 = vmatprep.subr.bf16.mxu1 %v3772_v1  ;;  %1078 = vmatprep.subr.bf16.mxu0 %v3772_v1  ;;  %v3060_v52 = vld [vmem:[%s2935_s30 + $0x60] ss:$0 sps:$4 sm:$0x33]   ;;  %v3063_v53 = vld [vmem:[%s2935_s30 + $0xb0] ss:$0 sps:$4 sm:$0x33]  }
  0x22   : > { %567 = vrot.lane.b32.xlu0 %v2719_v13, %s2862_s6  ;;  %569 = vrot.lane.b32.xlu1 %v2720_v14, %s2862_s6  ;;  %v2751_v54 = vld [vmem:[%s2935_s30 + $0x8] sm:$0xff]   ;;  %v2757_v60 = vld [vmem:[%s2935_s30 + $0x60] ss:$0 sps:$4 sm:$0x33]   ;;  %v835_v61 = vrot.slane %v3060_v52, 1  ;;  %v875_v62 = vrot.slane %v3063_v53, 1 }
  0x23   : > { %2482 = vmatprep.mubr.msk.bf16.mxu0 %vm689_vm1, %v832_v39  ;;  %2490 = vmatprep.mubr.msk.bf16.mxu1 %vm689_vm1, %v872_v42  ;;  %v2758_v3 = vld [vmem:[%s2935_s30 + $0x10] ss:$0 sps:$4 sm:$0x33]   ;;  %v2759_v4 = vld [vmem:[%s3768_s1 + $0x38] sm:$0xff]   ;;  %v3093_v8 = vld [vmem:[%s2935_s30 + $0x64] sm:$0xff]  }
  0x24   : > { %2663 = vmatpush1.bf16.msra.mxu1 %v2742_v12  ;;  %1079 = vmatpush1.bf16.msra.mxu0 %v2742_v12  ;;  %v2760_v7 = vld [vmem:[%s3768_s1 + $0xf8] sm:$0xff]   ;;  %v3097_v11 = vld [vmem:[%s2935_s30 + $0x6c] sm:$0xff]  }
  0x25   : > { %2652 = vmatprep.subr.bf16.mxu1 %v3772_v1  ;;  %1080 = vmatprep.subr.bf16.mxu0 %v3772_v1  ;;  %v3100_v12 = vld [vmem:[%s2935_s30 + $0xb4] sm:$0xff]   ;;  %v3103_v13 = vld [vmem:[%s2935_s30 + $0xbc] sm:$0xff]   ;;  %v2772_v39 = vld [vmem:[%s3768_s1 + $0xe8] sm:$0xff]  }
  0x26   : > { %543 = vrot.lane.b32.xlu0 %v2721_v16, %s2862_s6  ;;  %545 = vrot.lane.b32.xlu1 %v2722_v17, %s2862_s6  ;;  %v836_v17 = vsel %vm826_vm0, %v831_v33, %v835_v61  ;;  %v2762_v33 = vld [vmem:[%s2935_s30 + $0x6c] sm:$0xff]  }
  0x28   : > { %2664 = vmatpush1.bf16.msra.mxu1 %v2743_v15  ;;  %1081 = vmatpush1.bf16.msra.mxu0 %v2743_v15 }
  0x29   : > { %2653 = vmatprep.subr.bf16.mxu1 %v3772_v1  ;;  %1082 = vmatprep.subr.bf16.mxu0 %v3772_v1 }
  0x2a   : > { %571 = vrot.lane.b32.xlu0 %v2723_v18, %s2862_s6  ;;  %547 = vrot.lane.b32.xlu1 %v2724_v19, %s2862_s6  ;;  %v876_v18 = vsel %vm826_vm0, %v871_v41, %v875_v62 }
  0x2c   : > { %2665 = vmatpush1.bf16.msra.mxu1 %v2744_v21  ;;  %1083 = vmatpush1.bf16.msra.mxu0 %v2744_v21  ;;  %v2767_v21 = vld [vmem:[%s3768_s1 + $0xf0] sm:$0xff]  }
  0x2d   : > { %2654 = vmatprep.subr.bf16.mxu1 %v3772_v1  ;;  %1092 = vmatprep.subr.bf16.mxu0 %v3772_v1 }
  0x2e   : > { %573 = vrot.lane.b32.xlu0 %v2725_v20, %s2862_s6  ;;  %575 = vrot.lane.b32.xlu1 %v2727_v22, %s2862_s6  ;;  %v2763_v20 = vld [vmem:[%s3768_s1 + $0x30] sm:$0xff]   ;;  %v840_v22 = vrot.slane %v3093_v8, 1 }
  0x30   : > { %2666 = vmatpush2.bf16.msra.mxu1 %v2745_v23  ;;  %1093 = vmatpush2.bf16.msra.mxu0 %v2745_v23 }
  0x31   : > { %2655 = vmatprep.subr.bf16.mxu1 %v3772_v1  ;;  %1094 = vmatprep.subr.bf16.mxu0 %v3772_v1 }
  0x32   : > { %549 = vrot.lane.b32.xlu0 %v2726_v24, %s2862_s6  ;;  %551 = vrot.lane.b32.xlu1 %v2729_v25, %s2862_s6  ;;  %v841_v25 = vrot.slane %v3097_v11, 1 }
  0x34   : > { %2667 = vmatpush2.bf16.msra.mxu1 %v2746_v26  ;;  %1095 = vmatpush2.bf16.msra.mxu0 %v2746_v26  ;;  %v880_v26 = vrot.slane %v3100_v12, 1  ;;  %v842_v42 = vsel %vm826_vm0, %v840_v22, %v841_v25  ;;  %v3208_v22 = vld [vmem:[%s2935_s30 + $0x80] sm:$0xff]  }
  0x35   : > { %2656 = vmatprep.subr.bf16.mxu1 %v3772_v1  ;;  %1096 = vmatprep.subr.bf16.mxu0 %v3772_v1 }
  0x36   : > { %577 = vrot.lane.b32.xlu0 %v2728_v27, %s2862_s6  ;;  %553 = vrot.lane.b32.xlu1 %v2730_v28, %s2862_s6  ;;  %v881_v27 = vrot.slane %v3103_v13, 1 }
  0x38   : > { %2668 = vmatpush2.bf16.msra.mxu1 %v2749_v29  ;;  %1097 = vmatpush2.bf16.msra.mxu0 %v2749_v29  ;;  %v2761_v29 = vld [vmem:[%s2935_s30 + $0x64] sm:$0xff]  }
  0x39   : > { %2657 = vmatprep.subr.bf16.mxu1 %v3772_v1  ;;  %1098 = vmatprep.subr.bf16.mxu0 %v3772_v1 }
  0x3a   : > { %579 = vrot.lane.b32.xlu0 %v2731_v36, %s2862_s6  ;;  %581 = vrot.lane.b32.xlu1 %v2733_v37, %s2862_s6  ;;  %v2764_v36 = vld [vmem:[%s2935_s30 + $0x14] sm:$0xff]   ;;  %v2768_v37 = vld [vmem:[%s2935_s30 + $0x1c] sm:$0xff]  }
  0x3c   : > { %2669 = vmatpush2.bf16.msra.mxu1 %v2752_v38  ;;  %1099 = vmatpush2.bf16.msra.mxu0 %v2752_v38  ;;  %v2770_v38 = vld [vmem:[%s3768_s1 + $0x28] sm:$0xff]  }
  0x3d   : > { %1349 = vmatprep.subr.bf16.mxu1 %v3772_v1  ;;  %1752 = vmatprep.subr.bf16.mxu0 %v3772_v1 }
  0x3e   : > { %555 = vrot.lane.b32.xlu0 %v2732_v43, %s2862_s6  ;;  %557 = vrot.lane.b32.xlu1 %v2735_v44, %s2862_s6  ;;  %v882_v43 = vsel %vm826_vm0, %v880_v26, %v881_v27  ;;  %v3148_v44 = vld [vmem:[%s2935_s30 + $0x74] ss:$0 sps:$4 sm:$0x33]  }
  0x42   : > { %583 = vrot.lane.b32.xlu0 %v2734_v45, %s2862_s6  ;;  %559 = vrot.lane.b32.xlu1 %v2736_v46, %s2862_s6  ;;  %v3151_v45 = vld [vmem:[%s2935_s30 + $0xc4] ss:$0 sps:$4 sm:$0x33]  }
  0x88   : > { %v562_v48 = vpop.permute.xlu0 %561  ;;  %v538_v51 = vpop.permute.xlu1 %537 }
  0x89   : > { %v3067_v55 = vsel %vm689_vm1, %v2747_v47, %v562_v48  ;;  %v3070_v56 = vsel %vm689_vm1, %v2748_v49, %v538_v51 }
  0x8a   : > { %v867_v63 = vrot.slane %v3067_v55, 1  ;;  %v827_v5 = vrot.slane %v3070_v56, 1 }
  0x8c   : > { %v564_v57 = vpop.permute.xlu0 %563  ;;  %v540_v59 = vpop.permute.xlu1 %539 }
  0x8d   : > { %v3073_v58 = vsel %vm689_vm1, %v2750_v50, %v564_v57  ;;  %v3081_v2 = vsel %vm689_vm1, %v2751_v54, %v540_v59  ;;  %v2777_v54 = vld [vmem:[%s3768_s1 + $0x20] sm:$0xff]  }
  0x8e   : > { %v868_v0 = vrot.slane %v3073_v58, 1  ;;  %v828_v6 = vrot.slane %v3081_v2, 1 }
  0x90   : > { %v566_v9 = vpop.permute.xlu0 %565  ;;  %v869_v10 = vsel %vm826_vm0, %v867_v63, %v868_v0  ;;  %v542_v15 = vpop.permute.xlu1 %541  ;;  %v829_v16 = vsel %vm826_vm0, %v827_v5, %v828_v6  ;;  %v845_v63 = vrot.slane %v3148_v44, 1 }
  0x91   : > { %v3106_v14 = vsel %vm689_vm1, %v2757_v60, %v566_v9  ;;  %1165 = vmatmul.mubr.bf16.vlgmr.msra.gmra.mxu1 %v869_v10  ;;  %v3114_v19 = vsel %vm689_vm1, %v2758_v3, %v542_v15  ;;  %1101 = vmatmul.mubr.bf16.vlgmr.msra.gmra.mxu0 %v829_v16  ;;  %v2779_v60 = vld [vmem:[%s3768_s1 + $0xe0] sm:$0xff]   ;;  %v3192_v10 = vld [vmem:[%s2935_s30 + $0xc8] sm:$0xff]   ;;  %v3195_v15 = vld [vmem:[%s2935_s30 + $0xd0] sm:$0xff]  }
  0x92   : > { %1350 = vmatpush1.bf16.msra.mxu1 %v2759_v4  ;;  %1753 = vmatpush1.bf16.msra.mxu0 %v2760_v7  ;;  %v873_v23 = vrot.slane %v3106_v14, 1  ;;  %v833_v28 = vrot.slane %v3114_v19, 1  ;;  %v2769_v4 = vld [vmem:[%s2935_s30 + $0x74] ss:$0 sps:$4 sm:$0x33]   ;;  %v2782_v7 = vld [vmem:[%s3768_s1 + $0x18] sm:$0xff]  }
  0x93   : > { %1351 = vmatprep.subr.bf16.mxu1 %v3772_v1  ;;  %2483 = vmatprep.mubr.msk.bf16.mxu0 %vm689_vm1, %v836_v17  ;;  %v846_v17 = vsel %vm826_vm0, %v841_v25, %v845_v63 }
  0x94   : > { %v568_v24 = vpop.permute.xlu0 %567  ;;  %2491 = vmatprep.mubr.msk.bf16.mxu1 %vm689_vm1, %v876_v18  ;;  %v570_v32 = vpop.permute.xlu1 %569  ;;  %1754 = vmatprep.subr.bf16.mxu0 %v3772_v1  ;;  %v874_v41 = vsel %vm826_vm0, %v868_v0, %v873_v23  ;;  %v834_v49 = vsel %vm826_vm0, %v828_v6, %v833_v28  ;;  %v885_v0 = vrot.slane %v3151_v45, 1  ;;  %v2771_v6 = vld [vmem:[%s2935_s30 + $0x24] ss:$0 sps:$4 sm:$0x33]   ;;  %v890_v28 = vrot.slane %v3192_v10, 1 }
  0x95   : > { %v3154_v46 = vsel %vm689_vm1, %v2761_v29, %v568_v24  ;;  %v3157_v47 = vsel %vm689_vm1, %v2762_v33, %v570_v32  ;;  %v891_v29 = vrot.slane %v3195_v15, 1  ;;  %v2780_v33 = vld [vmem:[%s2935_s30 + $0x28] sm:$0xff]  }
  0x96   : > { %1352 = vmatpush1.bf16.msra.mxu1 %v2763_v20  ;;  %1755 = vmatpush1.bf16.msra.mxu0 %v2767_v21  ;;  %v877_v61 = vrot.slane %v3154_v46, 1  ;;  %v878_v62 = vrot.slane %v3157_v47, 1  ;;  %v886_v18 = vsel %vm826_vm0, %v881_v27, %v885_v0  ;;  %v2785_v20 = vld [vmem:[%s3768_s1 + $0xd8] sm:$0xff]   ;;  %v2788_v27 = vld [vmem:[%s3768_s1 + $0x10] sm:$0xff]  }
  0x97   : > { %1353 = vmatprep.subr.bf16.mxu1 %v3772_v1  ;;  %1756 = vmatprep.subr.bf16.mxu0 %v3772_v1  ;;  %v3205_v21 = vld [vmem:[%s2935_s30 + $0x78] sm:$0xff]  }
  0x98   : > { %v544_v40 = vpop.permute.xlu0 %543  ;;  %v546_v50 = vpop.permute.xlu1 %545  ;;  %v879_v16 = vsel %vm826_vm0, %v877_v61, %v878_v62 }
  0x99   : > { %v3160_v48 = vsel %vm689_vm1, %v2764_v36, %v544_v40  ;;  %1173 = vmatmul.mubr.bf16.gmra.mxu1 %v874_v41  ;;  %1109 = vmatmul.mubr.bf16.gmra.mxu0 %v834_v49  ;;  %v3164_v51 = vsel %vm689_vm1, %v2768_v37, %v546_v50  ;;  %v2787_v36 = vld [vmem:[%s2935_s30 + $0x30] sm:$0xff]   ;;  %v2778_v41 = vld [vmem:[%s2935_s30 + $0x78] sm:$0xff]   ;;  %v892_v50 = vsel %vm826_vm0, %v890_v28, %v891_v29 }
  0x9a   : > { %1354 = vmatpush1.bf16.msra.mxu1 %v2770_v38  ;;  %v837_v57 = vrot.slane %v3160_v48, 1  ;;  %v838_v59 = vrot.slane %v3164_v51, 1  ;;  %1757 = vmatpush1.bf16.msra.mxu0 %v2772_v39  ;;  %v2790_v37 = vld [vmem:[%s3768_s1 + $0xd0] sm:$0xff]   ;;  %v850_v38 = vrot.slane %v3205_v21, 1  ;;  %v851_v39 = vrot.slane %v3208_v22, 1 }
  0x9b   : > { %2484 = vmatprep.mubr.msk.bf16.mxu0 %vm689_vm1, %v842_v42  ;;  %2492 = vmatprep.mubr.msk.bf16.mxu1 %vm689_vm1, %v882_v43  ;;  %v2781_v42 = vld [vmem:[%s2935_s30 + $0x80] sm:$0xff]  }
  0x9c   : > { %1355 = vmatprep.subr.bf16.mxu1 %v3772_v1  ;;  %v572_v3 = vpop.permute.xlu0 %571  ;;  %v548_v5 = vpop.permute.xlu1 %547  ;;  %1758 = vmatprep.subr.bf16.mxu0 %v3772_v1  ;;  %v839_v9 = vsel %vm826_vm0, %v837_v57, %v838_v59  ;;  %v3242_v57 = vld [vmem:[%s2935_s30 + $0xd8] ss:$0 sps:$4 sm:$0x33]   ;;  %v852_v0 = vsel %vm826_vm0, %v850_v38, %v851_v39 }
  0x9d   : > { %v3211_v23 = vsel %vm689_vm1, %v2769_v4, %v572_v3  ;;  %v3214_v26 = vsel %vm689_vm1, %v2771_v6, %v548_v5  ;;  %v2797_v3 = vld [vmem:[%s3768_s1 + $0xc8] sm:$0xff]  }
  0x9e   : > { %1356 = vmatpush1.bf16.msra.mxu1 %v2777_v54  ;;  %1759 = vmatpush1.bf16.msra.mxu0 %v2779_v60  ;;  %v883_v32 = vrot.slane %v3211_v23, 1  ;;  %v843_v40 = vrot.slane %v3214_v26, 1  ;;  %v2795_v54 = vld [vmem:[%s3768_s1 + $0x8] sm:$0xff]  }
  0x9f   : > { %1357 = vmatprep.subr.bf16.mxu1 %v3772_v1  ;;  %1760 = vmatprep.subr.bf16.mxu0 %v3772_v1  ;;  %v3256_v4 = vld [vmem:[%s2935_s30 + $0x88] ss:$0 sps:$4 sm:$0x33]  }
  0xa0   : > { %v574_v24 = vpop.permute.xlu0 %573  ;;  %v576_v25 = vpop.permute.xlu1 %575  ;;  %v884_v61 = vsel %vm826_vm0, %v878_v62, %v883_v32  ;;  %v844_v62 = vsel %vm826_vm0, %v838_v59, %v843_v40  ;;  %v2800_v59 = vld [vmem:[%s3768_s1] sm:$0xff]   ;;  %v2789_v32 = vld [vmem:[%s2935_s30 + $0x38] ss:$0 sps:$4 sm:$0x33]  }
  0xa1   : > { %1181 = vmatmul.mubr.bf16.gmra.mxu1 %v879_v16  ;;  %1117 = vmatmul.mubr.bf16.gmra.mxu0 %v839_v9  ;;  %v3259_v5 = vsel %vm689_vm1, %v2778_v41, %v574_v24  ;;  %v3262_v6 = vsel %vm689_vm1, %v2781_v42, %v576_v25  ;;  %v895_v16 = vrot.slane %v3242_v57, 1  ;;  %v2803_v24 = vld [vmem:[%s3768_s1 + $0xc0] sm:$0xff]   ;;  %v3297_v40 = vld [vmem:[%s2935_s30 + $0x94] sm:$0xff]  }
  0xa2   : > { %1358 = vmatpush1.bf16.msra.mxu1 %v2782_v7  ;;  %2485 = vmatprep.mubr.msk.bf16.mxu0 %vm689_vm1, %v846_v17  ;;  %v887_v17 = vrot.slane %v3259_v5, 1  ;;  %v3300_v41 = vld [vmem:[%s2935_s30 + $0xdc] sm:$0xff]   ;;  %v3303_v42 = vld [vmem:[%s2935_s30 + $0xe4] sm:$0xff]  }
  0xa3   : > { %2493 = vmatprep.mubr.msk.bf16.mxu1 %vm689_vm1, %v886_v18  ;;  %1761 = vmatpush1.bf16.msra.mxu0 %v2785_v20  ;;  %v888_v18 = vrot.slane %v3262_v6, 1  ;;  %v855_v20 = vrot.slane %v3256_v4, 1  ;;  %v896_v38 = vsel %vm826_vm0, %v891_v29, %v895_v16 }
  0xa4   : > { %1359 = vmatprep.subr.bf16.mxu1 %v3772_v1  ;;  %1762 = vmatprep.subr.bf16.mxu0 %v3772_v1  ;;  %v550_v43 = vpop.permute.xlu0 %549  ;;  %v552_v49 = vpop.permute.xlu1 %551 }
  0xa5   : > { %v3245_v60 = vsel %vm689_vm1, %v2780_v33, %v550_v43  ;;  %v3249_v63 = vsel %vm689_vm1, %v2787_v36, %v552_v49  ;;  %v2806_v33 = vld [vmem:[%s3768_s1 + $0x58] sm:$0xff]   ;;  %v3290_v36 = vld [vmem:[%s2935_s30 + $0x8c] sm:$0xff]   ;;  %v889_v43 = vsel %vm826_vm0, %v887_v17, %v888_v18  ;;  %v856_v49 = vsel %vm826_vm0, %v851_v39, %v855_v20  ;;  %v2805_v20 = vld [vmem:[%s2935_s30 + $0x44] sm:$0xff]  }
  0xa6   : > { %1360 = vmatpush1.bf16.msra.mxu1 %v2788_v27  ;;  %v847_v7 = vrot.slane %v3245_v60, 1  ;;  %v3771_v9 = vrot.slane %v3249_v63, 1  ;;  %v2786_v27 = vld [vmem:[%s2935_s30 + $0x88] ss:$0 sps:$4 sm:$0x33]   ;;  %v860_v39 = vrot.slane %v3290_v36, 1 }
  0xa7   : > { %1361 = vmatprep.subr.bf16.mxu1 %v3772_v1  ;;  %1763 = vmatpush1.bf16.msra.mxu0 %v2790_v37  ;;  %v2798_v17 = vld [vmem:[%s2935_s30 + $0x3c] sm:$0xff]  }
  0xa8   : > { %1764 = vmatprep.subr.bf16.mxu0 %v3772_v1  ;;  %v578_v25 = vpop.permute.xlu0 %577  ;;  %v554_v28 = vpop.permute.xlu1 %553  ;;  %v849_v37 = vsel %vm826_vm0, %v847_v7, %v3771_v9  ;;  %v901_v7 = vrot.slane %v3303_v42, 1 }
  0xa9   : > { %1189 = vmatmul.mubr.bf16.gmra.mxu1 %v884_v61  ;;  %1125 = vmatmul.mubr.bf16.gmra.mxu0 %v844_v62  ;;  %v900_v62 = vrot.slane %v3300_v41, 1 }
  0xaa   : > { %2494 = vmatprep.mubr.msk.bf16.mxu1 %vm689_vm1, %v892_v50  ;;  %2486 = vmatprep.mubr.msk.bf16.mxu0 %vm689_vm1, %v852_v0  ;;  %v2808_v50 = vld [vmem:[%s3768_s1 + $0x118] sm:$0xff]   ;;  %v3316_v0 = vsel %vm689_vm1, %v2789_v32, %v554_v28 }
  0xab   : > { %1362 = vmatpush1.bf16.msra.mxu1 %v2795_v54  ;;  %1765 = vmatpush1.bf16.msra.mxu0 %v2797_v3  ;;  %v3312_v54 = vsel %vm689_vm1, %v2786_v27, %v578_v25  ;;  %v861_v3 = vrot.slane %v3297_v40, 1  ;;  %v853_v25 = vrot.slane %v3316_v0, 1  ;;  %v2796_v27 = vld [vmem:[%s2935_s30 + $0x8c] sm:$0xff]   ;;  %v2799_v28 = vld [vmem:[%s2935_s30 + $0x94] sm:$0xff]  }
  0xac   : > { %1363 = vmatprep.subr.bf16.mxu1 %v3772_v1  ;;  %1766 = vmatprep.subr.bf16.mxu0 %v3772_v1  ;;  %3779 = vst [vmem:[#allocation2_spill] sm:$0xff] %v3312_v54  ;;  %v580_v29 = vpop.permute.xlu0 %579  ;;  %v582_v61 = vpop.permute.xlu1 %581  ;;  %v893_v16 = vrot.slane %v3312_v54, 1  ;;  %v3780_v54 = vmov 0  }
  0xae   : > { %v894_v9 = vsel %vm826_vm0, %v888_v18, %v893_v16  ;;  %v3783_v18 = vrot.slane %v3249_v63, 1 }
  0xaf   : > { %1364 = vmatpush1.bf16.msra.mxu1 %v2800_v59  ;;  %1767 = vmatpush1.bf16.msra.mxu0 %v2803_v24  ;;  %v2813_v59 = vld [vmem:[%s3768_s1 + $0x50] sm:$0xff]  }
  0xb0   : > { %1373 = vmatprep.subr.bf16.mxu1 %v3772_v1  ;;  %1776 = vmatprep.subr.bf16.mxu0 %v3772_v1  ;;  %v2814_v24 = vld [vmem:[%s3768_s1 + $0x110] sm:$0xff]   ;;  %v556_v32 = vpop.permute.xlu0 %555  ;;  %v854_v16 = vsel %vm826_vm0, %v3783_v18, %v853_v25 }
  0xb1   : > { %1197 = vmatmul.mubr.bf16.gmra.mxu1 %v889_v43  ;;  %1133 = vmatmul.mubr.bf16.gmra.mxu0 %v849_v37  ;;  %v862_v37 = vsel %vm826_vm0, %v860_v39, %v861_v3  ;;  %v2815_v43 = vld [vmem:[%s3768_s1 + $0x48] sm:$0xff]   ;;  %v3355_v39 = vld [vmem:[%s2935_s30 + $0x9c] ss:$0 sps:$4 sm:$0x33]  }
  0xb2   : > { %2495 = vmatprep.mubr.msk.bf16.mxu1 %vm689_vm1, %v896_v38  ;;  %2487 = vmatprep.mubr.msk.bf16.mxu0 %vm689_vm1, %v856_v49  ;;  %v902_v38 = vsel %vm826_vm0, %v900_v62, %v901_v7  ;;  %v3344_v49 = vld [vmem:[%s2935_s30 + $0xec] ss:$0 sps:$4 sm:$0x33]  }
  0xb3   : > { %1374 = vmatpush2.bf16.msra.mxu1 %v2806_v33  ;;  %1777 = vmatpush2.bf16.msra.mxu0 %v2808_v50  ;;  %v558_v33 = vpop.permute.xlu1 %557  ;;  %v3347_v50 = vsel %vm689_vm1, %v2798_v17, %v556_v32  ;;  %v2818_v62 = vld [vmem:[%s3768_s1 + $0x108] sm:$0xff]   ;;  %v3364_v17 = vsel %vm689_vm1, %v2799_v28, %v582_v61  ;;  %v905_v61 = vrot.slane %v3344_v49, 1  ;;  %v2820_v28 = vld [vmem:[%s3768_s1 + $0x100] sm:$0xff]   ;;  %v2804_v32 = vld [vmem:[%s2935_s30 + $0x9c] ss:$0 sps:$4 sm:$0x33]  }
  0xb4   : > { %1375 = vmatprep.subr.bf16.mxu1 %v3772_v1  ;;  %1778 = vmatprep.subr.bf16.mxu0 %v3772_v1  ;;  %v3351_v1 = vsel %vm689_vm1, %v2805_v20, %v558_v33  ;;  %3782 = vst [vmem:[#allocation4_spill] sm:$0xff] %v3364_v17  ;;  %v857_v20 = vrot.slane %v3347_v50, 1  ;;  %v898_v25 = vrot.slane %v3364_v17, 1  ;;  %v584_v33 = vpop.permute.xlu0 %583 }
  0xb5   : > { %v906_v18 = vsel %vm826_vm0, %v901_v7, %v905_v61  ;;  %v3393_v17 = vsel %vm689_vm1, %v2804_v32, %v584_v33  ;;  %v1514_v7 = vrot.slane %v3012_v30, 2  ;;  %v1511_v32 = vrot.slane %v3070_v56, 2 }
  0xb7   : > { %1376 = vmatpush2.bf16.msra.mxu1 %v2813_v59  ;;  %1779 = vmatpush2.bf16.msra.mxu0 %v2814_v24  ;;  %v3361_v59 = vsel %vm689_vm1, %v2796_v27, %v580_v29  ;;  %v858_v29 = vrot.slane %v3351_v1, 1  ;;  %v865_v27 = vrot.slane %v3355_v39, 1 }
  0xb8   : > { %1377 = vmatprep.subr.bf16.mxu1 %v3780_v54  ;;  %3781 = vst [vmem:[#allocation3_spill] sm:$0xff] %v3361_v59  ;;  %1780 = vmatprep.subr.bf16.mxu0 %v3780_v54  ;;  %v897_v24 = vrot.slane %v3361_v59, 1 }
  0xb9   : > { %1205 = vmatmul.mubr.bf16.gmra.mxu1 %v894_v9  ;;  %1141 = vmatmul.mubr.bf16.gmra.mxu0 %v854_v16  ;;  %v2819_v9 = vld [vmem:[%s3768_s1 + $0x40] sm:$0xff]  }
  0xba   : > { %2496 = vmatprep.mubr.msk.bf16.mxu1 %vm689_vm1, %v902_v38  ;;  %2488 = vmatprep.mubr.msk.bf16.mxu0 %vm689_vm1, %v862_v37  ;;  %v2807_v37 = vld [vmem:[%s2935_s30 + $0x4c] ss:$0 sps:$4 sm:$0x33]   ;;  %v560_v38 = vpop.permute.xlu1 %559  ;;  %v899_v16 = vsel %vm826_vm0, %v897_v24, %v898_v25  ;;  %s2283_s30 = sshll.u32 %s2843_s12, 3  ;;  %s2285_s12 = sshll.u32 %s3798_s13, 7 }
  0xbb   : > { %1378 = vmatpush2.bf16.msra.mxu1 %v2815_v43  ;;  %1781 = vmatpush2.bf16.msra.mxu0 %v2818_v62  ;;  %v859_v43 = vsel %vm826_vm0, %v857_v20, %v858_v29  ;;  %v866_v62 = vsel %vm826_vm0, %v861_v3, %v865_v27  ;;  %v3396_v59 = vsel %vm689_vm1, %v2807_v37, %v560_v38  ;;  %v1515_v20 = vrot.slane %v3015_v31, 2  ;;  %p188_p6 = scmp.lt.s32.totalorder %s2283_s30, 31 }
  0xbc   : > { %1379 = vmatprep.subr.bf16.mxu1 %v3780_v54  ;;  %1782 = vmatprep.subr.bf16.mxu0 %v3780_v54  ;;  %v903_v54 = vrot.slane %v3393_v17, 1  ;;  %v863_v3 = vrot.slane %v3396_v59, 1  ;;  %v1519_v27 = vrot.slane %v3060_v52, 2  ;;  %v1525_v52 = vrot.slane %v3097_v11, 2 }
  0xbd   : > { %v1521_v38 = vrot.slane %v3160_v48, 2  ;;  %s3800_s30 = smov (!%p188_p6, %s2283_s30), 31 }
  0xbe   : > { %v904_v61 = vsel %vm826_vm0, %v898_v25, %v903_v54  ;;  %v864_v24 = vsel %vm826_vm0, %v858_v29, %v863_v3  ;;  %v1520_v33 = vsel %vm1510_vm2, %v1515_v20, %v1519_v27  ;;  %v1517_v29 = vrot.slane %v3114_v19, 2  ;;  %s2284_s21 = sshll.u32 %s3800_s30, 2 }
  0xbf   : > { %1380 = vmatpush2.bf16.msra.mxu1 %v2819_v9  ;;  %1783 = vmatpush2.bf16.msra.mxu0 %v2820_v28  ;;  %v1516_v9 = vsel %vm1510_vm2, %v1514_v7, %v1515_v20  ;;  %v1512_v28 = vrot.slane %v3081_v2, 2  ;;  %v1532_v54 = vrot.slane %v3249_v63, 2  ;;  %v1537_v7 = vrot.slane %v3316_v0, 2  ;;  %s192_s22 = sadd.s32 %s2285_s12, %s2284_s21 }
  0xc0   : > { %v1541_v3 = vrot.slane %v3347_v50, 2  ;;  %v1552_v27 = vrot.slane %v3073_v58, 2  ;;  %s2286_s25 = sshll.u32 %s192_s22, 2 }
  0xc1   : > { %1213 = vmatmul.mubr.bf16.gmra.mxu1 %v899_v16  ;;  %1149 = vmatmul.mubr.bf16.gmra.mxu0 %v859_v43  ;;  %v1513_v25 = vsel %vm1510_vm2, %v1511_v32, %v1512_v28  ;;  %v1522_v43 = vrot.slane %v3164_v51, 2  ;;  %v1557_v32 = vrot.slane %v3106_v14, 2  ;;  %s3625_s27 = scalar_lea.vmem %s3770_s3, %s2286_s25 }
  0xc2   : > { %2497 = vmatprep.mubr.msk.bf16.mxu1 %vm689_vm1, %v906_v18  ;;  %2489 = vmatprep.mubr.msk.bf16.mxu0 %vm689_vm1, %v866_v62  ;;  %v1527_v18 = vrot.slane %v3214_v26, 2  ;;  %v1531_v62 = vrot.slane %v3245_v60, 2 }
  0xc9   : > { %1221 = vmatmul.mubr.bf16.gmra.mxu1 %v904_v61  ;;  %1157 = vmatmul.mubr.bf16.gmra.mxu0 %v864_v24  ;;  %v1542_v61 = vrot.slane %v3351_v1, 2 }
  0xca   : > { %2510 = vmatprep.mubr.msk.bf16.mxu1 %vm689_vm1, %v3012_v30  ;;  %2562 = vmatprep.mubr.msk.bf16.mxu0 %vm689_vm1, %v1516_v9  ;;  %v1524_v30 = vrot.slane %v3093_v8, 2  ;;  %v1547_v9 = vrot.slane %v3396_v59, 2 }
  0xcc   : > { %v1526_v37 = vsel %vm1510_vm2, %v1524_v30, %v1525_v52  ;;  %v1562_v30 = vrot.slane %v3157_v47, 2 }
  0xd1   : > { %1382 = vmatmul.mubr.bf16.vlgmr.msra.gmra.mxu1 %v3070_v56  ;;  %1785 = vmatmul.mubr.bf16.vlgmr.msra.gmra.mxu0 %v1513_v25  ;;  %v1518_v56 = vsel %vm1510_vm2, %v1512_v28, %v1517_v29  ;;  %v1551_v28 = vrot.slane %v3067_v55, 2  ;;  %v1561_v25 = vrot.slane %v3154_v46, 2 }
  0xd2   : > { %2511 = vmatprep.mubr.msk.bf16.mxu1 %vm689_vm1, %v3015_v31  ;;  %2563 = vmatprep.mubr.msk.bf16.mxu0 %vm689_vm1, %v1520_v33  ;;  %v1529_v31 = vrot.slane %v3148_v44, 2  ;;  %v1535_v44 = vrot.slane %v3208_v22, 2 }
  0xd4   : > { %v1530_v19 = vsel %vm1510_vm2, %v1525_v52, %v1529_v31  ;;  %v1567_v52 = vrot.slane %v3211_v23, 2  ;;  %v3784_v31 = vld [vmem:[#allocation2_spill] sm:$0xff] }
  0xd9   : > { %1390 = vmatmul.mubr.bf16.gmra.mxu1 %v3081_v2  ;;  %1793 = vmatmul.mubr.bf16.gmra.mxu0 %v1518_v56  ;;  %v1523_v2 = vsel %vm1510_vm2, %v1521_v38, %v1522_v43  ;;  %v1572_v56 = vrot.slane %v3262_v6, 2  ;;  %v1577_v38 = vrot.slane %v3784_v31, 2 }
  0xda   : > { %2512 = vmatprep.mubr.msk.bf16.mxu1 %vm689_vm1, %v3093_v8  ;;  %2564 = vmatprep.mubr.msk.bf16.mxu0 %vm689_vm1, %v1526_v37  ;;  %v1534_v8 = vrot.slane %v3205_v21, 2  ;;  %v1571_v37 = vrot.slane %v3259_v5, 2 }
  0xdc   : > { %v1536_v16 = vsel %vm1510_vm2, %v1534_v8, %v1535_v44  ;;  %v3786_v8 = vld [vmem:[#allocation4_spill] sm:$0xff] }
  0xe1   : > { %1398 = vmatmul.mubr.bf16.gmra.mxu1 %v3160_v48  ;;  %1801 = vmatmul.mubr.bf16.gmra.mxu0 %v1523_v2  ;;  %v1528_v48 = vsel %vm1510_vm2, %v1522_v43, %v1527_v18 }
  0xe2   : > { %2513 = vmatprep.mubr.msk.bf16.mxu1 %vm689_vm1, %v3097_v11  ;;  %2565 = vmatprep.mubr.msk.bf16.mxu0 %vm689_vm1, %v1530_v19  ;;  %v1539_v11 = vrot.slane %v3256_v4, 2  ;;  %v1545_v4 = vrot.slane %v3297_v40, 2  ;;  %v3785_v19 = vld [vmem:[#allocation3_spill] sm:$0xff] }
  0xe3   : > { %v1581_v2 = vrot.slane %v3785_v19, 2 }
  0xe4   : > { %v1540_v26 = vsel %vm1510_vm2, %v1535_v44, %v1539_v11  ;;  %v1582_v44 = vrot.slane %v3786_v8, 2 }
  0xe9   : > { %1406 = vmatmul.mubr.bf16.gmra.mxu1 %v3164_v51  ;;  %1809 = vmatmul.mubr.bf16.gmra.mxu0 %v1528_v48  ;;  %v1533_v51 = vsel %vm1510_vm2, %v1531_v62, %v1532_v54 }
  0xea   : > { %2514 = vmatprep.mubr.msk.bf16.mxu1 %vm689_vm1, %v3205_v21  ;;  %2566 = vmatprep.mubr.msk.bf16.mxu0 %vm689_vm1, %v1536_v16  ;;  %v1544_v21 = vrot.slane %v3290_v36, 2 }
  0xec   : > { %v1546_v20 = vsel %vm1510_vm2, %v1544_v21, %v1545_v4 }
  0xf1   : > { %1414 = vmatmul.mubr.bf16.gmra.mxu1 %v3245_v60  ;;  %1817 = vmatmul.mubr.bf16.gmra.mxu0 %v1533_v51  ;;  %v1538_v60 = vsel %vm1510_vm2, %v1532_v54, %v1537_v7 }
  0xf2   : > { %2515 = vmatprep.mubr.msk.bf16.mxu1 %vm689_vm1, %v3208_v22  ;;  %2567 = vmatprep.mubr.msk.bf16.mxu0 %vm689_vm1, %v1540_v26  ;;  %v1549_v22 = vrot.slane %v3355_v39, 2  ;;  %v1555_v39 = vrot.slane %v3025_v35, 2 }
  0xf4   : > { %v1550_v0 = vsel %vm1510_vm2, %v1545_v4, %v1549_v22 }
  0xf9   : > { %1422 = vmatmul.mubr.bf16.gmra.mxu1 %v3249_v63  ;;  %1825 = vmatmul.mubr.bf16.gmra.mxu0 %v1538_v60  ;;  %v1543_v63 = vsel %vm1510_vm2, %v1541_v3, %v1542_v61 }
  0xfa   : > { %2516 = vmatprep.mubr.msk.bf16.mxu1 %vm689_vm1, %v3290_v36  ;;  %2568 = vmatprep.mubr.msk.bf16.mxu0 %vm689_vm1, %v1546_v20  ;;  %v1554_v36 = vrot.slane %v3022_v34, 2 }
  0xfc   : > { %v1556_v24 = vsel %vm1510_vm2, %v1554_v36, %v1555_v39 }
 0x101   : > { %1430 = vmatmul.mubr.bf16.gmra.mxu1 %v3347_v50  ;;  %1833 = vmatmul.mubr.bf16.gmra.mxu0 %v1543_v63  ;;  %v1548_v50 = vsel %vm1510_vm2, %v1542_v61, %v1547_v9 }
 0x102   : > { %2517 = vmatprep.mubr.msk.bf16.mxu1 %vm689_vm1, %v3297_v40  ;;  %2569 = vmatprep.mubr.msk.bf16.mxu0 %vm689_vm1, %v1550_v0  ;;  %v1559_v40 = vrot.slane %v3063_v53, 2  ;;  %v1565_v53 = vrot.slane %v3103_v13, 2 }
 0x104   : > { %v1560_v59 = vsel %vm1510_vm2, %v1555_v39, %v1559_v40 }
 0x109   : > { %1438 = vmatmul.mubr.bf16.gmra.mxu1 %v3351_v1  ;;  %1841 = vmatmul.mubr.bf16.gmra.mxu0 %v1548_v50  ;;  %v1553_v1 = vsel %vm1510_vm2, %v1551_v28, %v1552_v27 }
 0x10a   : > { %2518 = vmatprep.mubr.msk.bf16.mxu1 %vm689_vm1, %v3022_v34  ;;  %2570 = vmatprep.mubr.msk.bf16.mxu0 %vm689_vm1, %v1556_v24  ;;  %v1564_v34 = vrot.slane %v3100_v12, 2 }
 0x10c   : > { %v1566_v33 = vsel %vm1510_vm2, %v1564_v34, %v1565_v53 }
 0x111   : > { %1446 = vmatmul.mubr.bf16.gmra.mxu1 %v3067_v55  ;;  %1849 = vmatmul.mubr.bf16.gmra.mxu0 %v1553_v1  ;;  %v1558_v55 = vsel %vm1510_vm2, %v1552_v27, %v1557_v32 }
 0x112   : > { %2519 = vmatprep.mubr.msk.bf16.mxu1 %vm689_vm1, %v3025_v35  ;;  %2571 = vmatprep.mubr.msk.bf16.mxu0 %vm689_vm1, %v1560_v59  ;;  %v1569_v35 = vrot.slane %v3151_v45, 2  ;;  %v1575_v45 = vrot.slane %v3195_v15, 2 }
 0x114   : > { %v1570_v14 = vsel %vm1510_vm2, %v1565_v53, %v1569_v35 }
 0x119   : > { %1454 = vmatmul.mubr.bf16.gmra.mxu1 %v3073_v58  ;;  %1857 = vmatmul.mubr.bf16.gmra.mxu0 %v1558_v55  ;;  %v1563_v58 = vsel %vm1510_vm2, %v1561_v25, %v1562_v30 }
 0x11a   : > { %2520 = vmatprep.mubr.msk.bf16.mxu1 %vm689_vm1, %v3100_v12  ;;  %2572 = vmatprep.mubr.msk.bf16.mxu0 %vm689_vm1, %v1566_v33  ;;  %v1574_v12 = vrot.slane %v3192_v10, 2 }
 0x11c   : > { %v1576_v29 = vsel %vm1510_vm2, %v1574_v12, %v1575_v45 }
 0x121   : > { %1462 = vmatmul.mubr.bf16.gmra.mxu1 %v3154_v46  ;;  %1865 = vmatmul.mubr.bf16.gmra.mxu0 %v1563_v58  ;;  %v1568_v46 = vsel %vm1510_vm2, %v1562_v30, %v1567_v52 }
 0x122   : > { %2521 = vmatprep.mubr.msk.bf16.mxu1 %vm689_vm1, %v3103_v13  ;;  %2573 = vmatprep.mubr.msk.bf16.mxu0 %vm689_vm1, %v1570_v14  ;;  %v1579_v13 = vrot.slane %v3242_v57, 2  ;;  %v1585_v57 = vrot.slane %v3303_v42, 2 }
 0x124   : > { %v1580_v23 = vsel %vm1510_vm2, %v1575_v45, %v1579_v13 }
 0x129   : > { %1470 = vmatmul.mubr.bf16.gmra.mxu1 %v3157_v47  ;;  %1873 = vmatmul.mubr.bf16.gmra.mxu0 %v1568_v46  ;;  %v1573_v47 = vsel %vm1510_vm2, %v1571_v37, %v1572_v56 }
 0x12a   : > { %2522 = vmatprep.mubr.msk.bf16.mxu1 %vm689_vm1, %v3192_v10  ;;  %2574 = vmatprep.mubr.msk.bf16.mxu0 %vm689_vm1, %v1576_v29  ;;  %v1584_v10 = vrot.slane %v3300_v41, 2 }
 0x12c   : > { %v1586_v43 = vsel %vm1510_vm2, %v1584_v10, %v1585_v57 }
 0x131   : > { %1478 = vmatmul.mubr.bf16.gmra.mxu1 %v3259_v5  ;;  %1881 = vmatmul.mubr.bf16.gmra.mxu0 %v1573_v47  ;;  %v1578_v5 = vsel %vm1510_vm2, %v1572_v56, %v1577_v38 }
 0x132   : > { %2523 = vmatprep.mubr.msk.bf16.mxu1 %vm689_vm1, %v3195_v15  ;;  %2575 = vmatprep.mubr.msk.bf16.mxu0 %vm689_vm1, %v1580_v23  ;;  %v1589_v15 = vrot.slane %v3344_v49, 2 }
 0x134   : > { %v1590_v18 = vsel %vm1510_vm2, %v1585_v57, %v1589_v15 }
 0x139   : > { %1486 = vmatmul.mubr.bf16.gmra.mxu1 %v3262_v6  ;;  %1889 = vmatmul.mubr.bf16.gmra.mxu0 %v1578_v5  ;;  %v1583_v6 = vsel %vm1510_vm2, %v1581_v2, %v1582_v44 }
 0x13a   : > { %2524 = vmatprep.mubr.msk.bf16.mxu1 %vm689_vm1, %v3300_v41  ;;  %2576 = vmatprep.mubr.msk.bf16.mxu0 %vm689_vm1, %v1586_v43  ;;  %v1587_v41 = vrot.slane %v3393_v17, 2 }
 0x13c   : > { %v1588_v49 = vsel %vm1510_vm2, %v1582_v44, %v1587_v41 }
 0x141   : > { %1494 = vmatmul.mubr.bf16.gmra.mxu1 %v3785_v19  ;;  %1897 = vmatmul.mubr.bf16.gmra.mxu0 %v1583_v6 }
 0x142   : > { %2525 = vmatprep.mubr.msk.bf16.mxu1 %vm689_vm1, %v3303_v42  ;;  %2577 = vmatprep.mubr.msk.bf16.mxu0 %vm689_vm1, %v1590_v18 }
 0x149   : > { %1502 = vmatmul.mubr.bf16.gmra.mxu1 %v3786_v8  ;;  %1905 = vmatmul.mubr.bf16.gmra.mxu0 %v1588_v49 }
 0x151   : > { %v3548_v16 = vpop.f32.mrf.mxu1  ;;  %v3550_v48 = vpop.f32.mrf.mxu0 }
 0x153   : > { %v1168_v11 = vpop.f32.mrf.mxu1  ;;  %v1104_v62 = vpop.f32.mrf.mxu0 }
 0x155   : > { %v3552_v54 = vpop.f32.mrf.mxu1  ;;  %v3554_v26 = vpop.f32.mrf.mxu0 }
 0x157   : > { %v1171_v42 = vpop.f32.mrf.mxu1  ;;  %v1107_v51 = vpop.f32.mrf.mxu0 }
 0x158   : > { %v3618_v51 = vld [vmem:[%s3769_s2] ss:$0 sm:$0xff] }
 0x159   : > { %v3556_v21 = vpop.f32.mrf.mxu1  ;;  %v3558_v17 = vpop.f32.mrf.mxu0 }
 0x15b   : > { %v1176_v4 = vpop.f32.mrf.mxu1  ;;  %v1112_v7 = vpop.f32.mrf.mxu0 }
 0x15d   : > { %v3560_v20 = vpop.f32.mrf.mxu1  ;;  %v3562_v60 = vpop.f32.mrf.mxu0 }
 0x15f   : > { %v1179_v22 = vpop.f32.mrf.mxu1  ;;  %v1115_v3 = vpop.f32.mrf.mxu0 }
 0x161   : > { %v3564_v61 = vpop.f32.mrf.mxu1  ;;  %v3566_v0 = vpop.f32.mrf.mxu0 }
 0x163   : > { %v1184_v63 = vpop.f32.mrf.mxu1  ;;  %v1120_v36 = vpop.f32.mrf.mxu0 }
 0x165   : > { %v3568_v39 = vpop.f32.mrf.mxu1  ;;  %v3570_v9 = vpop.f32.mrf.mxu0 }
 0x167   : > { %v1187_v24 = vpop.f32.mrf.mxu1  ;;  %v1123_v50 = vpop.f32.mrf.mxu0 }
 0x169   : > { %v3572_v40 = vpop.f32.mrf.mxu1  ;;  %v3574_v27 = vpop.f32.mrf.mxu0 }
 0x16b   : > { %v1192_v28 = vpop.f32.mrf.mxu1  ;;  %v1128_v59 = vpop.f32.mrf.mxu0 }
 0x16d   : > { %v3576_v1 = vpop.f32.mrf.mxu1  ;;  %v3578_v34 = vpop.f32.mrf.mxu0 }
 0x16f   : > { %v1195_v53 = vpop.f32.mrf.mxu1  ;;  %v1131_v32 = vpop.f32.mrf.mxu0 }
 0x171   : > { %v3580_v33 = vpop.f32.mrf.mxu1  ;;  %v3582_v55 = vpop.f32.mrf.mxu0 }
 0x173   : > { %v1200_v35 = vpop.f32.mrf.mxu1  ;;  %v1136_v25 = vpop.f32.mrf.mxu0 }
 0x175   : > { %v3584_v30 = vpop.f32.mrf.mxu1  ;;  %v3586_v14 = vpop.f32.mrf.mxu0 }
 0x177   : > { %v1203_v58 = vpop.f32.mrf.mxu1  ;;  %v1139_v12 = vpop.f32.mrf.mxu0 }
 0x179   : > { %v3588_v45 = vpop.f32.mrf.mxu1  ;;  %v3590_v52 = vpop.f32.mrf.mxu0 }
 0x17b   : > { %v1208_v29 = vpop.f32.mrf.mxu1  ;;  %v1144_v46 = vpop.f32.mrf.mxu0 }
 0x17d   : > { %v3592_v13 = vpop.f32.mrf.mxu1  ;;  %v3594_v37 = vpop.f32.mrf.mxu0 }
 0x17f   : > { %v1211_v56 = vpop.f32.mrf.mxu1  ;;  %v1147_v23 = vpop.f32.mrf.mxu0 }
 0x181   : > { %v3596_v47 = vpop.f32.mrf.mxu1  ;;  %v3598_v10 = vpop.f32.mrf.mxu0 }
 0x183   : > { %v1216_v57 = vpop.f32.mrf.mxu1  ;;  %v1152_v31 = vpop.f32.mrf.mxu0 }
 0x185   : > { %v3600_v38 = vpop.f32.mrf.mxu1  ;;  %v3603_v43 = vpop.f32.mrf.mxu0 }
 0x187   : > { %v1219_v5 = vpop.f32.mrf.mxu1  ;;  %v1155_v15 = vpop.f32.mrf.mxu0 }
 0x189   : > { %v3605_v19 = vpop.f32.mrf.mxu1  ;;  %v3607_v2 = vpop.f32.mrf.mxu0 }
 0x18b   : > { %v1224_v8 = vpop.f32.mrf.mxu1  ;;  %v1160_v44 = vpop.f32.mrf.mxu0 }
 0x18d   : > { %v3609_v18 = vpop.f32.mrf.mxu1  ;;  %v3611_v6 = vpop.f32.mrf.mxu0 }
 0x18f   : > { %v1227_v41 = vpop.f32.mrf.mxu1  ;;  %v1163_v49 = vpop.f32.mrf.mxu0 }
 0x191   : > { %v1383_v11 = vpop.f32.mrf.mxu1  ;;  %v1786_v42 = vpop.f32.mrf.mxu0 }
 0x192   : > { %v1384_v62 = vadd.f32 %v1383_v11, %v3550_v48 }
 0x193   : > { %v1385_v4 = vpop.f32.mrf.mxu1  ;;  %v1788_v22 = vpop.f32.mrf.mxu0 }
 0x194   : > { %v1913_v7 = vadd.f32 %v1786_v42, %v1384_v62 }
 0x195   : > { %v1386_v3 = vpop.f32.mrf.mxu1  ;;  %v1789_v24 = vpop.f32.mrf.mxu0 }
 0x196   : > { %v1952_v63 = vadd.f32 %v3618_v51, %v1913_v7  ;;  %v1387_v36 = vadd.f32 %v1386_v3, %v3554_v26 }
 0x197   : > { %v1388_v50 = vpop.f32.mrf.mxu1  ;;  %v1791_v59 = vpop.f32.mrf.mxu0 }
 0x198   : > { %v1984_v28 = vmax.f32 %v1952_v63, 0.0  ;;  %v1914_v48 = vadd.f32 %v1789_v24, %v1387_v36 }
 0x199   : > { %v1391_v53 = vpop.f32.mrf.mxu1  ;;  %v1794_v26 = vpop.f32.mrf.mxu0 }
 0x19a   : > { %v2614_v32 = vpack.c.bf16 %v1984_v28, %v1984_v28  ;;  %v1953_v35 = vadd.f32 %v3618_v51, %v1914_v48  ;;  %v1392_v25 = vadd.f32 %v1391_v53, %v3558_v17 }
 0x19b   : > { %v1393_v58 = vpop.f32.mrf.mxu1  ;;  %v1796_v46 = vpop.f32.mrf.mxu0 }
 0x19c   : > { %2145 = vst.msk [vmem:[%s3625_s27] sm:$0xf] %vm2144_vm3, %v2614_v32  ;;  %v1985_v12 = vmax.f32 %v1953_v35, 0.0  ;;  %v1915_v29 = vadd.f32 %v1794_v26, %v1392_v25 }
 0x19d   : > { %v1394_v56 = vpop.f32.mrf.mxu1  ;;  %v1797_v5 = vpop.f32.mrf.mxu0 }
 0x19e   : > { %v2615_v23 = vpack.c.bf16 %v1985_v12, %v1985_v12  ;;  %v1954_v57 = vadd.f32 %v3618_v51, %v1915_v29  ;;  %v1395_v31 = vadd.f32 %v1394_v56, %v3562_v60 }
 0x19f   : > { %v1396_v15 = vpop.f32.mrf.mxu1  ;;  %v1799_v44 = vpop.f32.mrf.mxu0 }
 0x1a0   : > { %2146 = vst.msk [vmem:[%s3625_s27 + $0x4] sm:$0xf] %vm2144_vm3, %v2615_v23  ;;  %v1986_v8 = vmax.f32 %v1954_v57, 0.0  ;;  %v1916_v17 = vadd.f32 %v1797_v5, %v1395_v31 }
 0x1a1   : > { %v1399_v41 = vpop.f32.mrf.mxu1  ;;  %v1802_v42 = vpop.f32.mrf.mxu0 }
 0x1a2   : > { %v2616_v49 = vpack.c.bf16 %v1986_v8, %v1986_v8  ;;  %v1955_v11 = vadd.f32 %v3618_v51, %v1916_v17  ;;  %v1400_v62 = vadd.f32 %v1399_v41, %v3566_v0 }
 0x1a3   : > { %v1401_v4 = vpop.f32.mrf.mxu1  ;;  %v1804_v22 = vpop.f32.mrf.mxu0 }
 0x1a4   : > { %2147 = vst.msk [vmem:[%s3625_s27 + $0x8] sm:$0xf] %vm2144_vm3, %v2616_v49  ;;  %v1987_v7 = vmax.f32 %v1955_v11, 0.0  ;;  %v1917_v60 = vadd.f32 %v1802_v42, %v1400_v62 }
 0x1a5   : > { %v1402_v3 = vpop.f32.mrf.mxu1  ;;  %v1805_v50 = vpop.f32.mrf.mxu0 }
 0x1a6   : > { %v2617_v63 = vpack.c.bf16 %v1987_v7, %v1987_v7  ;;  %v1956_v36 = vadd.f32 %v3618_v51, %v1917_v60  ;;  %v1403_v24 = vadd.f32 %v1402_v3, %v3570_v9 }
 0x1a7   : > { %v1404_v28 = vpop.f32.mrf.mxu1  ;;  %v1807_v59 = vpop.f32.mrf.mxu0 }
 0x1a8   : > { %2148 = vst.msk [vmem:[%s3625_s27 + $0xc] sm:$0xf] %vm2144_vm3, %v2617_v63  ;;  %v1988_v48 = vmax.f32 %v1956_v36, 0.0  ;;  %v1918_v0 = vadd.f32 %v1805_v50, %v1403_v24 }
 0x1a9   : > { %v1407_v53 = vpop.f32.mrf.mxu1  ;;  %v1810_v26 = vpop.f32.mrf.mxu0 }
 0x1aa   : > { %v2618_v32 = vpack.c.bf16 %v1988_v48, %v1988_v48  ;;  %v1957_v35 = vadd.f32 %v3618_v51, %v1918_v0  ;;  %v1408_v25 = vadd.f32 %v1407_v53, %v3574_v27 }
 0x1ab   : > { %v1409_v58 = vpop.f32.mrf.mxu1  ;;  %v1812_v29 = vpop.f32.mrf.mxu0 }
 0x1ac   : > { %2149 = vst.msk [vmem:[%s3625_s27 + $0x10] sm:$0xf] %vm2144_vm3, %v2618_v32  ;;  %v1989_v12 = vmax.f32 %v1957_v35, 0.0  ;;  %v1919_v9 = vadd.f32 %v1810_v26, %v1408_v25 }
 0x1ad   : > { %v1410_v46 = vpop.f32.mrf.mxu1  ;;  %v1813_v31 = vpop.f32.mrf.mxu0 }
 0x1ae   : > { %v2619_v56 = vpack.c.bf16 %v1989_v12, %v1989_v12  ;;  %v1958_v23 = vadd.f32 %v3618_v51, %v1919_v9  ;;  %v1411_v57 = vadd.f32 %v1410_v46, %v3578_v34 }
 0x1af   : > { %v1412_v5 = vpop.f32.mrf.mxu1  ;;  %v1815_v8 = vpop.f32.mrf.mxu0 }
 0x1b0   : > { %2150 = vst.msk [vmem:[%s3625_s27 + $0x14] sm:$0xf] %vm2144_vm3, %v2619_v56  ;;  %v1990_v15 = vmax.f32 %v1958_v23, 0.0  ;;  %v1920_v27 = vadd.f32 %v1813_v31, %v1411_v57 }
 0x1b1   : > { %v1415_v17 = vpop.f32.mrf.mxu1  ;;  %v1818_v11 = vpop.f32.mrf.mxu0 }
 0x1b2   : > { %v2620_v44 = vpack.c.bf16 %v1990_v15, %v1990_v15  ;;  %v1959_v41 = vadd.f32 %v3618_v51, %v1920_v27  ;;  %v1416_v49 = vadd.f32 %v1415_v17, %v3582_v55 }
 0x1b3   : > { %v1417_v62 = vpop.f32.mrf.mxu1  ;;  %v1820_v4 = vpop.f32.mrf.mxu0 }
 0x1b4   : > { %2151 = vst.msk [vmem:[%s3625_s27 + $0x18] sm:$0xf] %vm2144_vm3, %v2620_v44  ;;  %v1991_v42 = vmax.f32 %v1959_v41, 0.0  ;;  %v1921_v34 = vadd.f32 %v1818_v11, %v1416_v49 }
 0x1b5   : > { %v1418_v7 = vpop.f32.mrf.mxu1  ;;  %v1821_v63 = vpop.f32.mrf.mxu0 }
 0x1b6   : > { %v2621_v60 = vpack.c.bf16 %v1991_v42, %v1991_v42  ;;  %v1960_v22 = vadd.f32 %v3618_v51, %v1921_v34  ;;  %v1419_v3 = vadd.f32 %v1418_v7, %v3586_v14 }
 0x1b7   : > { %v1420_v36 = vpop.f32.mrf.mxu1  ;;  %v1823_v50 = vpop.f32.mrf.mxu0 }
 0x1b8   : > { %2152 = vst.msk [vmem:[%s3625_s27 + $0x1c] sm:$0xf] %vm2144_vm3, %v2621_v60  ;;  %v1992_v24 = vmax.f32 %v1960_v22, 0.0  ;;  %v1922_v55 = vadd.f32 %v1821_v63, %v1419_v3 }
 0x1b9   : > { %v1423_v28 = vpop.f32.mrf.mxu1  ;;  %v1826_v53 = vpop.f32.mrf.mxu0 }
 0x1ba   : > { %v2622_v48 = vpack.c.bf16 %v1992_v24, %v1992_v24  ;;  %v1961_v0 = vadd.f32 %v3618_v51, %v1922_v55  ;;  %v1424_v59 = vadd.f32 %v1423_v28, %v3590_v52 }
 0x1bb   : > { %v1425_v32 = vpop.f32.mrf.mxu1  ;;  %v1828_v25 = vpop.f32.mrf.mxu0 }
 0x1bc   : > { %2153 = vst.msk [vmem:[%s3625_s27 + $0x20] sm:$0xf] %vm2144_vm3, %v2622_v48  ;;  %v1993_v35 = vmax.f32 %v1961_v0, 0.0  ;;  %v1923_v14 = vadd.f32 %v1826_v53, %v1424_v59 }
 0x1bd   : > { %v1426_v26 = vpop.f32.mrf.mxu1  ;;  %v1829_v29 = vpop.f32.mrf.mxu0 }
 0x1be   : > { %v2623_v58 = vpack.c.bf16 %v1993_v35, %v1993_v35  ;;  %v1962_v12 = vadd.f32 %v3618_v51, %v1923_v14  ;;  %v1427_v9 = vadd.f32 %v1426_v26, %v3594_v37 }
 0x1bf   : > { %v1428_v46 = vpop.f32.mrf.mxu1  ;;  %v1831_v23 = vpop.f32.mrf.mxu0 }
 0x1c0   : > { %2154 = vst.msk [vmem:[%s3625_s27 + $0x24] sm:$0xf] %vm2144_vm3, %v2623_v58  ;;  %v1994_v56 = vmax.f32 %v1962_v12, 0.0  ;;  %v1924_v52 = vadd.f32 %v1829_v29, %v1427_v9 }
 0x1c1   : > { %v1431_v57 = vpop.f32.mrf.mxu1  ;;  %v1834_v27 = vpop.f32.mrf.mxu0 }
 0x1c2   : > { %v2624_v31 = vpack.c.bf16 %v1994_v56, %v1994_v56  ;;  %v1963_v5 = vadd.f32 %v3618_v51, %v1924_v52  ;;  %v1432_v15 = vadd.f32 %v1431_v57, %v3598_v10 }
 0x1c3   : > { %v1433_v8 = vpop.f32.mrf.mxu1  ;;  %v1836_v44 = vpop.f32.mrf.mxu0 }
 0x1c4   : > { %2155 = vst.msk [vmem:[%s3625_s27 + $0x28] sm:$0xf] %vm2144_vm3, %v2624_v31  ;;  %v1995_v17 = vmax.f32 %v1963_v5, 0.0  ;;  %v1925_v37 = vadd.f32 %v1834_v27, %v1432_v15 }
 0x1c5   : > { %v1434_v41 = vpop.f32.mrf.mxu1  ;;  %v1837_v42 = vpop.f32.mrf.mxu0 }
 0x1c6   : > { %v2625_v49 = vpack.c.bf16 %v1995_v17, %v1995_v17  ;;  %v1964_v11 = vadd.f32 %v3618_v51, %v1925_v37  ;;  %v1435_v62 = vadd.f32 %v1434_v41, %v3603_v43 }
 0x1c7   : > { %v1436_v34 = vpop.f32.mrf.mxu1  ;;  %v1839_v7 = vpop.f32.mrf.mxu0 }
 0x1c8   : > { %2156 = vst.msk [vmem:[%s3625_s27 + $0x2c] sm:$0xf] %vm2144_vm3, %v2625_v49  ;;  %v1996_v4 = vmax.f32 %v1964_v11, 0.0  ;;  %v1926_v10 = vadd.f32 %v1837_v42, %v1435_v62 }
 0x1c9   : > { %v1439_v60 = vpop.f32.mrf.mxu1  ;;  %v1842_v36 = vpop.f32.mrf.mxu0 }
 0x1ca   : > { %v2626_v22 = vpack.c.bf16 %v1996_v4, %v1996_v4  ;;  %v1965_v3 = vadd.f32 %v3618_v51, %v1926_v10  ;;  %v1440_v63 = vadd.f32 %v1439_v60, %v3607_v2 }
 0x1cb   : > { %v1441_v24 = vpop.f32.mrf.mxu1  ;;  %v1844_v50 = vpop.f32.mrf.mxu0 }
 0x1cc   : > { %2157 = vst.msk [vmem:[%s3625_s27 + $0x30] sm:$0xf] %vm2144_vm3, %v2626_v22  ;;  %v1997_v55 = vmax.f32 %v1965_v3, 0.0  ;;  %v1927_v43 = vadd.f32 %v1842_v36, %v1440_v63 }
 0x1cd   : > { %v1442_v28 = vpop.f32.mrf.mxu1  ;;  %v1845_v53 = vpop.f32.mrf.mxu0 }
 0x1ce   : > { %v2627_v48 = vpack.c.bf16 %v1997_v55, %v1997_v55  ;;  %v1966_v0 = vadd.f32 %v3618_v51, %v1927_v43  ;;  %v1443_v59 = vadd.f32 %v1442_v28, %v3611_v6 }
 0x1cf   : > { %v1444_v32 = vpop.f32.mrf.mxu1  ;;  %v1847_v14 = vpop.f32.mrf.mxu0 }
 0x1d0   : > { %2158 = vst.msk [vmem:[%s3625_s27 + $0x34] sm:$0xf] %vm2144_vm3, %v2627_v48  ;;  %v1998_v35 = vmax.f32 %v1966_v0, 0.0  ;;  %v1928_v2 = vadd.f32 %v1845_v53, %v1443_v59 }
 0x1d1   : > { %v1447_v25 = vpop.f32.mrf.mxu1  ;;  %v1850_v9 = vpop.f32.mrf.mxu0 }
 0x1d2   : > { %v2628_v26 = vpack.c.bf16 %v1998_v35, %v1998_v35  ;;  %v1967_v58 = vadd.f32 %v3618_v51, %v1928_v2  ;;  %v1448_v12 = vadd.f32 %v1447_v25, %v3548_v16 }
 0x1d3   : > { %v1449_v29 = vpop.f32.mrf.mxu1  ;;  %v1852_v56 = vpop.f32.mrf.mxu0 }
 0x1d4   : > { %2159 = vst.msk [vmem:[%s3625_s27 + $0x38] sm:$0xf] %vm2144_vm3, %v2628_v26  ;;  %v1999_v46 = vmax.f32 %v1967_v58, 0.0  ;;  %v1929_v6 = vadd.f32 %v1850_v9, %v1448_v12 }
 0x1d5   : > { %v1450_v52 = vpop.f32.mrf.mxu1  ;;  %v1853_v5 = vpop.f32.mrf.mxu0 }
 0x1d6   : > { %v2629_v23 = vpack.c.bf16 %v1999_v46, %v1999_v46  ;;  %v1968_v57 = vadd.f32 %v3618_v51, %v1929_v6  ;;  %v1451_v31 = vadd.f32 %v1450_v52, %v3552_v54 }
 0x1d7   : > { %v1452_v15 = vpop.f32.mrf.mxu1  ;;  %v1855_v8 = vpop.f32.mrf.mxu0 }
 0x1d8   : > { %2160 = vst.msk [vmem:[%s3625_s27 + $0x3c] sm:$0xf] %vm2144_vm3, %v2629_v23  ;;  %v2000_v27 = vmax.f32 %v1968_v57, 0.0  ;;  %v1930_v16 = vadd.f32 %v1853_v5, %v1451_v31 }
 0x1d9   : > { %v1455_v17 = vpop.f32.mrf.mxu1  ;;  %v1858_v49 = vpop.f32.mrf.mxu0 }
 0x1da   : > { %v2630_v37 = vpack.c.bf16 %v2000_v27, %v2000_v27  ;;  %v1969_v44 = vadd.f32 %v3618_v51, %v1930_v16  ;;  %v1456_v41 = vadd.f32 %v1455_v17, %v3556_v21 }
 0x1db   : > { %v1457_v11 = vpop.f32.mrf.mxu1  ;;  %v1860_v42 = vpop.f32.mrf.mxu0 }
 0x1dc   : > { %2161 = vst.msk [vmem:[%s3625_s27 + $0x40] sm:$0xf] %vm2144_vm3, %v2630_v37  ;;  %v2001_v62 = vmax.f32 %v1969_v44, 0.0  ;;  %v1931_v54 = vadd.f32 %v1858_v49, %v1456_v41 }
 0x1dd   : > { %v1458_v34 = vpop.f32.mrf.mxu1  ;;  %v1861_v60 = vpop.f32.mrf.mxu0 }
 0x1de   : > { %v2631_v4 = vpack.c.bf16 %v2001_v62, %v2001_v62  ;;  %v1970_v10 = vadd.f32 %v3618_v51, %v1931_v54  ;;  %v1459_v7 = vadd.f32 %v1458_v34, %v3560_v20 }
 0x1df   : > { %v1460_v22 = vpop.f32.mrf.mxu1  ;;  %v1863_v63 = vpop.f32.mrf.mxu0 }
 0x1e0   : > { %2162 = vst.msk [vmem:[%s3625_s27 + $0x44] sm:$0xf] %vm2144_vm3, %v2631_v4  ;;  %v2002_v3 = vmax.f32 %v1970_v10, 0.0  ;;  %v1932_v21 = vadd.f32 %v1861_v60, %v1459_v7 }
 0x1e1   : > { %v1463_v36 = vpop.f32.mrf.mxu1  ;;  %v1866_v50 = vpop.f32.mrf.mxu0 }
 0x1e2   : > { %v2632_v24 = vpack.c.bf16 %v2002_v3, %v2002_v3  ;;  %v1971_v55 = vadd.f32 %v3618_v51, %v1932_v21  ;;  %v1464_v43 = vadd.f32 %v1463_v36, %v3564_v61 }
 0x1e3   : > { %v1465_v28 = vpop.f32.mrf.mxu1  ;;  %v1868_v0 = vpop.f32.mrf.mxu0 }
 0x1e4   : > { %2163 = vst.msk [vmem:[%s3625_s27 + $0x48] sm:$0xf] %vm2144_vm3, %v2632_v24  ;;  %v2003_v48 = vmax.f32 %v1971_v55, 0.0  ;;  %v1933_v20 = vadd.f32 %v1866_v50, %v1464_v43 }
 0x1e5   : > { %v1466_v59 = vpop.f32.mrf.mxu1  ;;  %v1869_v2 = vpop.f32.mrf.mxu0 }
 0x1e6   : > { %v2633_v53 = vpack.c.bf16 %v2003_v48, %v2003_v48  ;;  %v1972_v32 = vadd.f32 %v3618_v51, %v1933_v20  ;;  %v1467_v35 = vadd.f32 %v1466_v59, %v3568_v39 }
 0x1e7   : > { %v1468_v14 = vpop.f32.mrf.mxu1  ;;  %v1871_v26 = vpop.f32.mrf.mxu0 }
 0x1e8   : > { %2164 = vst.msk [vmem:[%s3625_s27 + $0x4c] sm:$0xf] %vm2144_vm3, %v2633_v53  ;;  %v2004_v25 = vmax.f32 %v1972_v32, 0.0  ;;  %v1934_v61 = vadd.f32 %v1869_v2, %v1467_v35 }
 0x1e9   : > { %v1471_v58 = vpop.f32.mrf.mxu1  ;;  %v1874_v46 = vpop.f32.mrf.mxu0 }
 0x1ea   : > { %v2634_v12 = vpack.c.bf16 %v2004_v25, %v2004_v25  ;;  %v1973_v9 = vadd.f32 %v3618_v51, %v1934_v61  ;;  %v1472_v29 = vadd.f32 %v1471_v58, %v3572_v40 }
 0x1eb   : > { %v1473_v6 = vpop.f32.mrf.mxu1  ;;  %v1876_v52 = vpop.f32.mrf.mxu0 }
 0x1ec   : > { %2165 = vst.msk [vmem:[%s3625_s27 + $0x50] sm:$0xf] %vm2144_vm3, %v2634_v12  ;;  %v2005_v56 = vmax.f32 %v1973_v9, 0.0  ;;  %v1935_v39 = vadd.f32 %v1874_v46, %v1472_v29 }
 0x1ed   : > { %v1474_v23 = vpop.f32.mrf.mxu1  ;;  %v1877_v15 = vpop.f32.mrf.mxu0 }
 0x1ee   : > { %v2635_v57 = vpack.c.bf16 %v2005_v56, %v2005_v56  ;;  %v1974_v31 = vadd.f32 %v3618_v51, %v1935_v39  ;;  %v1475_v5 = vadd.f32 %v1474_v23, %v3576_v1 }
 0x1ef   : > { %v1476_v27 = vpop.f32.mrf.mxu1  ;;  %v1879_v8 = vpop.f32.mrf.mxu0 }
 0x1f0   : > { %2166 = vst.msk [vmem:[%s3625_s27 + $0x54] sm:$0xf] %vm2144_vm3, %v2635_v57  ;;  %v2006_v16 = vmax.f32 %v1974_v31, 0.0  ;;  %v1936_v40 = vadd.f32 %v1877_v15, %v1475_v5 }
 0x1f1   : > { %v1479_v17 = vpop.f32.mrf.mxu1  ;;  %v1882_v49 = vpop.f32.mrf.mxu0 }
 0x1f2   : > { %v2636_v37 = vpack.c.bf16 %v2006_v16, %v2006_v16  ;;  %v1975_v44 = vadd.f32 %v3618_v51, %v1936_v40  ;;  %v1480_v41 = vadd.f32 %v1479_v17, %v3580_v33 }
 0x1f3   : > { %v1481_v11 = vpop.f32.mrf.mxu1  ;;  %v1884_v54 = vpop.f32.mrf.mxu0 }
 0x1f4   : > { %2167 = vst.msk [vmem:[%s3625_s27 + $0x58] sm:$0xf] %vm2144_vm3, %v2636_v37  ;;  %v2007_v62 = vmax.f32 %v1975_v44, 0.0  ;;  %v1937_v1 = vadd.f32 %v1882_v49, %v1480_v41 }
 0x1f5   : > { %v1482_v42 = vpop.f32.mrf.mxu1  ;;  %v1885_v7 = vpop.f32.mrf.mxu0 }
 0x1f6   : > { %v2637_v34 = vpack.c.bf16 %v2007_v62, %v2007_v62  ;;  %v1976_v4 = vadd.f32 %v3618_v51, %v1937_v1  ;;  %v1483_v10 = vadd.f32 %v1482_v42, %v3584_v30 }
 0x1f7   : > { %v1484_v60 = vpop.f32.mrf.mxu1  ;;  %v1887_v3 = vpop.f32.mrf.mxu0 }
 0x1f8   : > { %2168 = vst.msk [vmem:[%s3625_s27 + $0x5c] sm:$0xf] %vm2144_vm3, %v2637_v34  ;;  %v2008_v22 = vmax.f32 %v1976_v4, 0.0  ;;  %v1938_v33 = vadd.f32 %v1885_v7, %v1483_v10 }
 0x1f9   : > { %v1487_v21 = vpop.f32.mrf.mxu1  ;;  %v1890_v55 = vpop.f32.mrf.mxu0 }
 0x1fa   : > { %v2638_v63 = vpack.c.bf16 %v2008_v22, %v2008_v22  ;;  %v1977_v36 = vadd.f32 %v3618_v51, %v1938_v33  ;;  %v1488_v24 = vadd.f32 %v1487_v21, %v3588_v45 }
 0x1fb   : > { %v1489_v43 = vpop.f32.mrf.mxu1  ;;  %v1892_v28 = vpop.f32.mrf.mxu0 }
 0x1fc   : > { %2169 = vst.msk [vmem:[%s3625_s27 + $0x60] sm:$0xf] %vm2144_vm3, %v2638_v63  ;;  %v2009_v50 = vmax.f32 %v1977_v36, 0.0  ;;  %v1939_v30 = vadd.f32 %v1890_v55, %v1488_v24 }
 0x1fd   : > { %v1490_v48 = vpop.f32.mrf.mxu1  ;;  %v1893_v53 = vpop.f32.mrf.mxu0 }
 0x1fe   : > { %v2639_v20 = vpack.c.bf16 %v2009_v50, %v2009_v50  ;;  %v1978_v0 = vadd.f32 %v3618_v51, %v1939_v30  ;;  %v1491_v59 = vadd.f32 %v1490_v48, %v3592_v13 }
 0x1ff   : > { %v1492_v32 = vpop.f32.mrf.mxu1  ;;  %v1895_v2 = vpop.f32.mrf.mxu0 }
 0x200   : > { %2170 = vst.msk [vmem:[%s3625_s27 + $0x64] sm:$0xf] %vm2144_vm3, %v2639_v20  ;;  %v2010_v35 = vmax.f32 %v1978_v0, 0.0  ;;  %v1940_v45 = vadd.f32 %v1893_v53, %v1491_v59 }
 0x201   : > { %v1495_v14 = vpop.f32.mrf.mxu1  ;;  %v1898_v58 = vpop.f32.mrf.mxu0 }
 0x202   : > { %v2640_v25 = vpack.c.bf16 %v2010_v35, %v2010_v35  ;;  %v1979_v61 = vadd.f32 %v3618_v51, %v1940_v45  ;;  %v1496_v26 = vadd.f32 %v1495_v14, %v3596_v47 }
 0x203   : > { %v1497_v12 = vpop.f32.mrf.mxu1  ;;  %v1900_v29 = vpop.f32.mrf.mxu0 }
 0x204   : > { %2171 = vst.msk [vmem:[%s3625_s27 + $0x68] sm:$0xf] %vm2144_vm3, %v2640_v25  ;;  %v2011_v9 = vmax.f32 %v1979_v61, 0.0  ;;  %v1941_v13 = vadd.f32 %v1898_v58, %v1496_v26 }
 0x205   : > { %v1498_v46 = vpop.f32.mrf.mxu1  ;;  %v1901_v52 = vpop.f32.mrf.mxu0 }
 0x206   : > { %v2641_v6 = vpack.c.bf16 %v2011_v9, %v2011_v9  ;;  %v1980_v56 = vadd.f32 %v3618_v51, %v1941_v13  ;;  %v1499_v39 = vadd.f32 %v1498_v46, %v3600_v38 }
 0x207   : > { %v1500_v23 = vpop.f32.mrf.mxu1  ;;  %v1903_v31 = vpop.f32.mrf.mxu0 }
 0x208   : > { %2172 = vst.msk [vmem:[%s3625_s27 + $0x6c] sm:$0xf] %vm2144_vm3, %v2641_v6  ;;  %v2012_v57 = vmax.f32 %v1980_v56, 0.0  ;;  %v1942_v47 = vadd.f32 %v1901_v52, %v1499_v39 }
 0x209   : > { %v1503_v5 = vpop.f32.mrf.mxu1  ;;  %v1906_v40 = vpop.f32.mrf.mxu0 }
 0x20a   : > { %v2642_v15 = vpack.c.bf16 %v2012_v57, %v2012_v57  ;;  %v1981_v27 = vadd.f32 %v3618_v51, %v1942_v47  ;;  %v1504_v16 = vadd.f32 %v1503_v5, %v3605_v19 }
 0x20b   : > { %v1505_v8 = vpop.f32.mrf.mxu1  ;;  %v1908_v37 = vpop.f32.mrf.mxu0 }
 0x20c   : > { %2173 = vst.msk [vmem:[%s3625_s27 + $0x70] sm:$0xf] %vm2144_vm3, %v2642_v15  ;;  %v2013_v38 = vmax.f32 %v1981_v27, 0.0  ;;  %v1943_v17 = vadd.f32 %v1906_v40, %v1504_v16 }
 0x20d   : > { %v1506_v44 = vpop.f32.mrf.mxu1  ;;  %v1909_v62 = vpop.f32.mrf.mxu0 }
 0x20e   : > { %v2643_v41 = vpack.c.bf16 %v2013_v38, %v2013_v38  ;;  %v1982_v49 = vadd.f32 %v3618_v51, %v1943_v17  ;;  %v1507_v11 = vadd.f32 %v1506_v44, %v3609_v18 }
 0x20f   : > { %v1508_v1 = vpop.f32.mrf.mxu1  ;;  %v1911_v42 = vpop.f32.mrf.mxu0 }
 0x210   : > { %2174 = vst.msk [vmem:[%s3625_s27 + $0x74] sm:$0xf] %vm2144_vm3, %v2643_v41  ;;  %v2014_v19 = vmax.f32 %v1982_v49, 0.0  ;;  %v1944_v54 = vadd.f32 %v1909_v62, %v1507_v11 }
 0x212   : > { %v2644_v34 = vpack.c.bf16 %v2014_v19, %v2014_v19  ;;  %v1983_v4 = vadd.f32 %v3618_v51, %v1944_v54 }
 0x214   : > { %2175 = vst.msk [vmem:[%s3625_s27 + $0x78] sm:$0xf] %vm2144_vm3, %v2644_v34  ;;  %v2015_v10 = vmax.f32 %v1983_v4, 0.0 }
 0x216   : > { %v2645_v7 = vpack.c.bf16 %v2015_v10, %v2015_v10 }
 0x218   : > { %2176 = vst.msk [vmem:[%s3625_s27 + $0x7c] sm:$0xf] %vm2144_vm3, %v2645_v7 }
 0x219 PF: > { %s13_s16 = sadd.s32 1, %s2859_s16   ;;  %s3787_s12 = smov %s2851_s14 }
 0x21a   : > { %p10_p7 = scmp.ge.s32.totalorder %s13_s16, 10   ;;  %s3788_s13 = smov %s2855_s15 }
 0x21b   : > { %s3789_s14 = smov %s3792_s17  ;;  %s3790_s15 = smov %s3796_s18 }
 0x21c   :  { %12 = sbr.rel (!%p10_p7) target bundleno = 3 (0x3), region = 67 }

// kernel: _lambda_.14
= control target key start
LH: loop header
LB: loop body
LE: loop exit
PB: predicated region body
PF: predicated region fallthrough
CT: control target
= control target key end

     0   :  { %s3904_s18 = smov 0   ;;  %s3906_s19 = smov 0   ;;  %s5008_s0 = inlined_call_operand.vmem [shape: bf16[2,42,42,64], index: 0, kind: input, shape index: {}]   ;;  %s5009_s1 = inlined_call_operand.vmem [shape: bf16[3,192,64], index: 1, kind: input, shape index: {}]   ;;  %s5010_s2 = inlined_call_operand.vmem [shape: f32[1,64], index: 2, kind: input, shape index: {}]   ;;  %s5011_s3 = inlined_call_operand.vmem [shape: bf16[2,32,32,64], index: 3, kind: input, shape index: {}]   ;;  %s5012_s4 = inlined_call_operand.vmem [shape: bf16[64,64], index: 4, kind: input, shape index: {}]   ;;  %s5013_s5 = inlined_call_operand.vmem [shape: bf16[2,32,32,64], index: 5, kind: output, shape index: {}]  }
   0x1   :  { %s3908_s20 = smov 0   ;;  %s3910_s21 = smov 0  }
   0x2   :  { %s3912_s22 = smov 0  }
   0x3 LB: > { %s24_s23 = sadd.s32 1, %s3862_s20  ;;  %s27_s24 = sadd.s32 1, %s3866_s21  ;;  %s3870_s22 = sphi %s3912_s22, %s15_s22   ;;  %s3866_s21 = sphi %s3910_s21, %s5017_s21   ;;  %s3862_s20 = sphi %s3908_s20, %s5016_s20   ;;  %s3858_s19 = sphi %s3906_s19, %s5015_s19   ;;  %s3854_s18 = sphi %s3904_s18, %s5014_s18  }
   0x4   : > { %p25_p0 = scmp.ge.s32.totalorder %s24_s23, 4  ;;  %p3148_p1 = scmp.ge.s32.totalorder %s3870_s22, 1 }
   0x5   : > { %p219_p2 = scmp.lt.s32.totalorder %s3870_s22, 9 }
   0x6   : > { %s5019_s23 = smov (%p25_p0, %s24_s23), 0  ;;  %s5021_s24 = smov (!%p25_p0, %s27_s24), %s3866_s21 }
   0x7   : > { %p220_p3 = pnand %p3148_p1, %p219_p2  ;;  %p29_p4 = scmp.ge.s32.totalorder %s5021_s24, 2 }
   0x8   : > { %p262_p5 = scmp.lt.s32.totalorder (!%p220_p3), %s3858_s19, 1  ;;  %s3536_s27 = smul.u32 (!%p220_p3), 192, %s3854_s18 }
   0x9   : > { %s5023_s24 = smov (%p29_p4, %s5021_s24), 0  ;;  %223 = sbr.rel (%p220_p3) target bundleno = 571 (0x23b), region = 40 }
   0xa   : > { %s3873_s25 = smov (!%p220_p3), 64   ;;  %s3150_s28 = sshll.u32 (!%p220_p3), %s3854_s18, 3 }
   0xb   : > { %p270_p6 = scmp.lt.s32.totalorder (!%p220_p3), %s3150_s28, 31 }
   0xe   : > { %v3711_v0 = vld [vmem:[%s5009_s1 + $0x38] sm:$0xff]   ;;  %v3872_v1 = vmov 0   ;;  %s5025_s19 = smov (!%p262_p5, %s3858_s19), 1  ;;  %v3712_v2 = vld [vmem:[%s5009_s1 + $0x30] sm:$0xff]   ;;  %v3713_v4 = vld [vmem:[%s5009_s1 + $0x28] sm:$0xff]   ;;  %vm854_vm0 = vcmask 523264  }
   0xf   : > { %1786 = vmatprep.subr.bf16.mxu1 %v3872_v1  ;;  %1521 = vmatprep.subr.bf16.mxu0 %v3872_v1  ;;  %s3653_s30 = smul.u32 1008, %s5025_s19  ;;  %v3714_v3 = vld [vmem:[%s5009_s1 + $0x98] sm:$0xff]   ;;  %v3717_v5 = vld [vmem:[%s5009_s1 + $0x90] sm:$0xff]   ;;  %v3716_v7 = vld [vmem:[%s5009_s1 + $0x20] sm:$0xff]   ;;  %vm967_vm1 = vsmask.f32 5376 }
  0x10   : > { %1787 = vmatpush1.bf16.msra.mxu1 %v3711_v0  ;;  %1522 = vmatpush1.bf16.msra.mxu0 %v3714_v3  ;;  %v3720_v11 = vld [vmem:[%s5009_s1 + $0x18] sm:$0xff]   ;;  %v3721_v20 = vld [vmem:[%s5009_s1 + $0x88] sm:$0xff]   ;;  %v3722_v21 = vld [vmem:[%s5009_s1 + $0x10] sm:$0xff]   ;;  %vm1971_vm2 = vcmask 1042432   ;;  %s3152_s18 = sshll.u32 %s5025_s19, 7  ;;  %s5027_s28 = smov (!%p270_p6, %s3150_s28), 31 }
  0x11   : > { %1788 = vmatprep.subr.bf16.mxu1 %v3872_v1  ;;  %s266_s10 = scalar_lea.vmem %s5008_s0, %s3653_s30  ;;  %1523 = vmatprep.subr.bf16.mxu0 %v3872_v1  ;;  %v3723_v22 = vld [vmem:[%s5009_s1 + $0x80] sm:$0xff]   ;;  %v3724_v23 = vld [vmem:[%s5009_s1 + $0x8] sm:$0xff]   ;;  %v3725_v26 = vld [vmem:[%s5009_s1 + $0x78] sm:$0xff]   ;;  %s3151_s19 = sshll.u32 %s5027_s28, 2  ;;  %vm2990_vm3 = vcmask 519168  }
  0x12   : > { %s3958_s13 = scalar_lea.vmem %s266_s10, %s3536_s27  ;;  %v3727_v27 = vld [vmem:[%s5009_s1] sm:$0xff]   ;;  %v3728_v30 = vld [vmem:[%s5009_s1 + $0x70] sm:$0xff]   ;;  %v3731_v31 = vld [vmem:[%s5009_s1 + $0x58] sm:$0xff]   ;;  %s4291_s6 = sadd.s32 %s3152_s18, %s3151_s19 }
  0x13   : > { %v3696_v6 = vld [vmem:[%s3958_s13 + $0x78] sm:$0xff]   ;;  %v3697_v8 = vld [vmem:[%s3958_s13 + $0x88] sm:$0x1f]   ;;  %v3698_v9 = vld [vmem:[%s3958_s13 + $0x80] sm:$0xff]   ;;  %s3153_s9 = sshll.u32 %s4291_s6, 2 }
  0x14   : > { %1789 = vmatpush1.bf16.msra.mxu1 %v3712_v2  ;;  %686 = vrot.lane.b32.xlu0 %v3696_v6, %s3873_s25  ;;  %v3699_v10 = vld [vmem:[%s3958_s13 + $0x90] sm:$0xff]   ;;  %v3701_v12 = vld [vmem:[%s3958_s13 + $0x98] sm:$0xff]   ;;  %v3700_v13 = vld [vmem:[%s3958_s13 + $0xa0] sm:$0x1f]   ;;  %s4325_s12 = scalar_lea.vmem %s5011_s3, %s3153_s9  ;;  %s4852_s11 = scalar_lea.vmem %s5013_s5, %s3153_s9 }
  0x15   : > { %1790 = vmatprep.subr.bf16.mxu1 %v3872_v1  ;;  %690 = vrot.lane.b32.xlu1 %v3697_v8, %s3873_s25  ;;  %v3702_v14 = vld [vmem:[%s3958_s13 + $0xa8] sm:$0xff]   ;;  %v3703_v15 = vld [vmem:[%s3958_s13 + $0xb0] sm:$0xff]   ;;  %v3704_v16 = vld [vmem:[%s3958_s13 + $0xb8] sm:$0x1f]  }
  0x16   : > { %1524 = vmatpush1.bf16.msra.mxu0 %v3717_v5  ;;  %v3705_v17 = vld [vmem:[%s3958_s13 + $0xc0] sm:$0xff]   ;;  %v3706_v18 = vld [vmem:[%s3958_s13 + $0xd0] sm:$0x1f]   ;;  %v3707_v19 = vld [vmem:[%s3958_s13 + $0xc8] sm:$0xff]  }
  0x17   : > { %1525 = vmatprep.subr.bf16.mxu0 %v3872_v1  ;;  %v3708_v24 = vld [vmem:[%s3958_s13 + $0xd8] sm:$0xff]   ;;  %v3709_v25 = vld [vmem:[%s3958_s13 + $0xe0] sm:$0xff]   ;;  %v3710_v28 = vld [vmem:[%s3958_s13 + $0xe8] sm:$0x1f]  }
  0x18   : > { %1791 = vmatpush1.bf16.msra.mxu1 %v3713_v4  ;;  %688 = vrot.lane.b32.xlu0 %v3698_v9, %s3873_s25  ;;  %v3715_v29 = vld [vmem:[%s3958_s13 + $0xf0] sm:$0xff]   ;;  %v3719_v32 = vld [vmem:[%s3958_s13 + $0xf8] sm:$0xff]   ;;  %v3718_v33 = vld [vmem:[%s3958_s13 + $0x100] sm:$0x1f]  }
  0x19   : > { %1792 = vmatprep.subr.bf16.mxu1 %v3872_v1  ;;  %692 = vrot.lane.b32.xlu1 %v3699_v10, %s3873_s25  ;;  %v3732_v34 = vld [vmem:[%s5009_s1 + $0x68] sm:$0xff]   ;;  %v3733_v35 = vld [vmem:[%s5009_s1 + $0x50] sm:$0xff]   ;;  %v3730_v38 = vld [vmem:[%s3958_s13 + $0x118] sm:$0x1f]  }
  0x1a   : > { %1526 = vmatpush1.bf16.msra.mxu0 %v3721_v20  ;;  %v3726_v36 = vld [vmem:[%s3958_s13 + $0x108] sm:$0xff]   ;;  %v3729_v37 = vld [vmem:[%s3958_s13 + $0x110] sm:$0xff]   ;;  %v3734_v39 = vld [vmem:[%s5009_s1 + $0x60] sm:$0xff]  }
  0x1b   : > { %1527 = vmatprep.subr.bf16.mxu0 %v3872_v1  ;;  %v3735_v40 = vld [vmem:[%s5009_s1 + $0x48] sm:$0xff]   ;;  %v3741_v41 = vld [vmem:[%s3958_s13 + $0xf0] sm:$0xff]   ;;  %v3737_v42 = vld [vmem:[%s3958_s13 + $0x120] sm:$0xff]  }
  0x1c   : > { %1793 = vmatpush1.bf16.msra.mxu1 %v3716_v7  ;;  %694 = vrot.lane.b32.xlu0 %v3701_v12, %s3873_s25  ;;  %v3736_v43 = vld [vmem:[%s5009_s1 + $0xb8] sm:$0xff]   ;;  %v3738_v44 = vld [vmem:[%s5009_s1 + $0x40] sm:$0xff]   ;;  %v3742_v45 = vld [vmem:[%s3958_s13 + $0x130] sm:$0x1f]   ;;  %v984_v46 = vshrl.u32 %v3741_v41, 16  ;;  %v987_v48 = vshll.u32 %v3741_v41, 16 }
  0x1d   : > { %1794 = vmatprep.subr.bf16.mxu1 %v3872_v1  ;;  %696 = vrot.lane.b32.xlu1 %v3700_v13, %s3873_s25  ;;  %v3743_v47 = vld [vmem:[%s3958_s13 + $0x128] sm:$0xff]   ;;  %v3740_v49 = vld [vmem:[%s5009_s1 + $0xb0] sm:$0xff]   ;;  %v3748_v50 = vld [vmem:[%s3958_s13 + $0xf8] sm:$0xff]  }
  0x1e   : > { %1528 = vmatpush1.bf16.msra.mxu0 %v3723_v22  ;;  %3397 = vmatprep.mubr.msk.bf16.mxu1 %vm854_vm0, %v3741_v41  ;;  %v986_v51 = vrot.slane %v984_v46, 2  ;;  %v989_v52 = vrot.slane %v987_v48, 3  ;;  %v3746_v53 = vld [vmem:[%s5009_s1 + $0xa8] sm:$0xff]   ;;  %v992_v54 = vshrl.u32 %v3748_v50, 16  ;;  %v995_v55 = vshll.u32 %v3748_v50, 16  ;;  %v3747_v60 = vld [vmem:[%s5009_s1 + $0xa0] sm:$0xff]  }
  0x1f   : > { %1529 = vmatprep.subr.bf16.mxu0 %v3872_v1  ;;  %v3754_v62 = vld [vmem:[%s3958_s13 + $0x100] sm:$0x1f]   ;;  %v3749_v0 = vld [vmem:[%s5009_s1 + $0xf8] sm:$0xff]   ;;  %v3744_v6 = vld [vmem:[%s3958_s13 + $0x10] sm:$0x1f]  }
  0x20   : > { %1795 = vmatpush1.bf16.msra.mxu1 %v3720_v11  ;;  %698 = vrot.lane.b32.xlu0 %v3702_v14, %s3873_s25  ;;  %v990_v56 = vor.u32 %v989_v52, %v986_v51  ;;  %v994_v57 = vrot.slane %v992_v54, 2  ;;  %v997_v58 = vrot.slane %v995_v55, 3  ;;  %v3739_v63 = vld [vmem:[%s3958_s13] sm:$0xff]   ;;  %v1009_v2 = vshrl.u32 %v3754_v62, 16  ;;  %v3745_v7 = vld [vmem:[%s3958_s13 + $0x8] sm:$0xff]   ;;  %v4114_v14 = vld [vmem:[%s5009_s1 + $0xf0] sm:$0xff]  }
  0x21   : > { %1796 = vmatprep.subr.bf16.mxu1 %v3872_v1  ;;  %700 = vrot.lane.b32.xlu1 %v3703_v15, %s3873_s25  ;;  %v1012_v3 = vshll.u32 %v3754_v62, 16  ;;  %v3751_v11 = vld [vmem:[%s3958_s13 + $0x108] sm:$0xff]   ;;  %v4117_v15 = vld [vmem:[%s3958_s13 + $0x110] sm:$0xff]   ;;  %v4152_v46 = vld [vmem:[%s5009_s1 + $0xe0] sm:$0xff]  }
  0x22   : > { %1530 = vmatpush1.bf16.msra.mxu0 %v3725_v26  ;;  %v998_v59 = vor.u32 %v997_v58, %v994_v57  ;;  %v1011_v12 = vrot.slane %v1009_v2, 2  ;;  %v1036_v20 = vshll.u32 %v3751_v11, 16 }
  0x23   : > { %1531 = vmatprep.subr.bf16.mxu0 %v3872_v1  ;;  %v1014_v13 = vrot.slane %v1012_v3, 3 }
  0x24   : > { %702 = vrot.lane.b32.xlu0 %v3704_v16, %s3873_s25  ;;  %1797 = vmatpush1.bf16.msra.mxu1 %v3722_v21  ;;  %v999_v61 = vsel %vm967_vm1, %v990_v56, %v998_v59 }
  0x25   : > { %704 = vrot.lane.b32.xlu1 %v3705_v17, %s3873_s25  ;;  %1798 = vmatprep.subr.bf16.mxu1 %v3872_v1  ;;  %v1015_v26 = vor.u32 %v1014_v13, %v1011_v12 }
  0x26   : > { %1532 = vmatpush1.bf16.msra.mxu0 %v3728_v30  ;;  %3369 = vmatprep.mubr.msk.bf16.mxu0 %vm854_vm0, %v999_v61  ;;  %v3752_v61 = vld [vmem:[%s3958_s13 + $0x28] sm:$0x1f]  }
  0x27   : > { %1533 = vmatprep.subr.bf16.mxu0 %v3872_v1 }
  0x28   : > { %706 = vrot.lane.b32.xlu0 %v3707_v19, %s3873_s25  ;;  %1799 = vmatpush1.bf16.msra.mxu1 %v3724_v23  ;;  %v1033_v19 = vshrl.u32 %v3751_v11, 16 }
  0x29   : > { %708 = vrot.lane.b32.xlu1 %v3706_v18, %s3873_s25  ;;  %1800 = vmatprep.subr.bf16.mxu1 %v3872_v1 }
  0x2a   : > { %1534 = vmatpush1.bf16.msra.mxu0 %v3732_v34 }
  0x2b   : > { %1535 = vmatprep.subr.bf16.mxu0 %v3872_v1 }
  0x2c   : > { %710 = vrot.lane.b32.xlu0 %v3708_v24, %s3873_s25  ;;  %1801 = vmatpush1.bf16.msra.mxu1 %v3727_v27  ;;  %v1041_v27 = vshrl.u32 %v4117_v15, 16 }
  0x2d   : > { %712 = vrot.lane.b32.xlu1 %v3709_v25, %s3873_s25  ;;  %1810 = vmatprep.subr.bf16.mxu1 %v3872_v1  ;;  %v3753_v25 = vld [vmem:[%s3958_s13 + $0x20] sm:$0xff]  }
  0x2e   : > { %1536 = vmatpush1.bf16.msra.mxu0 %v3734_v39  ;;  %v1035_v39 = vrot.slane %v1033_v19, 2 }
  0x2f   : > { %1545 = vmatprep.subr.bf16.mxu0 %v3872_v1 }
  0x30   : > { %714 = vrot.lane.b32.xlu0 %v3710_v28, %s3873_s25  ;;  %1811 = vmatpush2.bf16.msra.mxu1 %v3731_v31  ;;  %v1044_v28 = vshll.u32 %v4117_v15, 16 }
  0x31   : > { %716 = vrot.lane.b32.xlu1 %v3715_v29, %s3873_s25  ;;  %1812 = vmatprep.subr.bf16.mxu1 %v3872_v1  ;;  %v4135_v29 = vld [vmem:[%s5009_s1 + $0xe8] sm:$0xff]  }
  0x32   : > { %1546 = vmatpush2.bf16.msra.mxu0 %v3736_v43  ;;  %v1043_v43 = vrot.slane %v1041_v27, 2 }
  0x33   : > { %1547 = vmatprep.subr.bf16.mxu0 %v3872_v1 }
  0x34   : > { %718 = vrot.lane.b32.xlu0 %v3719_v32, %s3873_s25  ;;  %1813 = vmatpush2.bf16.msra.mxu1 %v3733_v35  ;;  %v3750_v35 = vld [vmem:[%s3958_s13 + $0x18] sm:$0xff]  }
  0x35   : > { %720 = vrot.lane.b32.xlu1 %v3718_v33, %s3873_s25  ;;  %1814 = vmatprep.subr.bf16.mxu1 %v3872_v1 }
  0x36   : > { %1548 = vmatpush2.bf16.msra.mxu0 %v3740_v49 }
  0x37   : > { %1549 = vmatprep.subr.bf16.mxu0 %v3872_v1 }
  0x38   : > { %722 = vrot.lane.b32.xlu0 %v3726_v36, %s3873_s25  ;;  %1815 = vmatpush2.bf16.msra.mxu1 %v3735_v40  ;;  %v1038_v40 = vrot.slane %v1036_v20, 3 }
  0x39   : > { %724 = vrot.lane.b32.xlu1 %v3729_v37, %s3873_s25  ;;  %1816 = vmatprep.subr.bf16.mxu1 %v3872_v1 }
  0x3a   : > { %1550 = vmatpush2.bf16.msra.mxu0 %v3746_v53  ;;  %v1039_v55 = vor.u32 %v1038_v40, %v1035_v39 }
  0x3b   : > { %1551 = vmatprep.subr.bf16.mxu0 %v3872_v1 }
  0x3c   : > { %726 = vrot.lane.b32.xlu0 %v3730_v38, %s3873_s25  ;;  %1817 = vmatpush2.bf16.msra.mxu1 %v3738_v44  ;;  %v1046_v44 = vrot.slane %v1044_v28, 3  ;;  %v4209_v28 = vld [vmem:[%s5009_s1 + $0xc8] sm:$0xff]  }
  0x3d   : > { %728 = vrot.lane.b32.xlu1 %v3737_v42, %s3873_s25  ;;  %3629 = vmatprep.subr.bf16.mxu1 %v3872_v1  ;;  %v1016_v42 = vsel %vm967_vm1, %v998_v59, %v1015_v26 }
  0x3e   : > { %1552 = vmatpush2.bf16.msra.mxu0 %v3747_v60  ;;  %v1047_v56 = vor.u32 %v1046_v44, %v1043_v43  ;;  %v4170_v60 = vld [vmem:[%s5009_s1 + $0xd8] sm:$0xff]   ;;  %v4238_v43 = vld [vmem:[%s5009_s1 + $0xc0] sm:$0xff]  }
  0x3f   : > { %2213 = vmatprep.subr.bf16.mxu0 %v3872_v1 }
  0x40   : > { %730 = vrot.lane.b32.xlu0 %v3743_v47, %s3873_s25 }
  0x41   : > { %732 = vrot.lane.b32.xlu1 %v3742_v45, %s3873_s25  ;;  %v3762_v45 = vld [vmem:[%s3958_s13 + $0x118] sm:$0x1f]  }
  0x42   : > { %v1058_v57 = vshrl.u32 %v3762_v45, 16  ;;  %v1061_v58 = vshll.u32 %v3762_v45, 16 }
  0x86   : > { %v687_v4 = vpop.permute.xlu0 %686 }
  0x87   : > { %v4102_v5 = vsel %vm854_vm0, %v3739_v63, %v687_v4  ;;  %v691_v10 = vpop.permute.xlu1 %690  ;;  %v4176_v4 = vld [vmem:[%s3958_s13 + $0x128] sm:$0xff]  }
  0x88   : > { %v968_v8 = vshrl.u32 %v4102_v5, 16  ;;  %v971_v9 = vshll.u32 %v4102_v5, 16  ;;  %1819 = vmatmul.mubr.bf16.vlgmr.msra.gmra.mxu1 %v4102_v5  ;;  %v4121_v17 = vsel %vm854_vm0, %v3744_v6, %v691_v10  ;;  %v1048_v6 = vsel %vm967_vm1, %v1039_v55, %v1047_v56  ;;  %v3761_v55 = vld [vmem:[%s3958_s13 + $0x40] sm:$0x1f]  }
  0x89   : > { %3398 = vmatprep.mubr.msk.bf16.mxu1 %vm854_vm0, %v3748_v50  ;;  %3641 = vmatpush1.bf16.msra.mxu1 %v3749_v0  ;;  %v1000_v30 = vshrl.u32 %v4121_v17, 16  ;;  %v1003_v31 = vshll.u32 %v4121_v17, 16  ;;  %v1090_v19 = vshrl.u32 %v4176_v4, 16 }
  0x8a   : > { %v689_v16 = vpop.permute.xlu0 %688  ;;  %3630 = vmatprep.subr.bf16.mxu1 %v3872_v1  ;;  %v970_v21 = vrot.slane %v968_v8, 2  ;;  %v973_v22 = vrot.slane %v971_v9, 3  ;;  %v1060_v8 = vrot.slane %v1058_v57, 2  ;;  %v1063_v9 = vrot.slane %v1061_v58, 3 }
  0x8b   : > { %v4124_v18 = vsel %vm854_vm0, %v3745_v7, %v689_v16  ;;  %v693_v38 = vpop.permute.xlu1 %692  ;;  %v1002_v47 = vrot.slane %v1000_v30, 2  ;;  %v1005_v48 = vrot.slane %v1003_v31, 3  ;;  %v3758_v7 = vld [vmem:[%s3958_s13 + $0x120] sm:$0xff]   ;;  %v3757_v30 = vld [vmem:[%s3958_s13 + $0x30] sm:$0xff]  }
  0x8c   : > { %v975_v23 = vshrl.u32 %v4124_v18, 16  ;;  %v978_v24 = vshll.u32 %v4124_v18, 16  ;;  %v974_v36 = vor.u32 %v973_v22, %v970_v21  ;;  %v4157_v50 = vsel %vm854_vm0, %v3750_v35, %v693_v38  ;;  %v3760_v22 = vld [vmem:[%s3958_s13 + $0x38] sm:$0xff]   ;;  %v4214_v31 = vld [vmem:[%s3958_s13 + $0x130] sm:$0x1f]  }
  0x8d   : > { %3642 = vmatpush1.bf16.msra.mxu1 %v4114_v14  ;;  %v1017_v51 = vshrl.u32 %v4157_v50, 16  ;;  %v1020_v52 = vshll.u32 %v4157_v50, 16  ;;  %v1006_v59 = vor.u32 %v1005_v48, %v1002_v47  ;;  %v1082_v13 = vshrl.u32 %v3758_v7, 16  ;;  %v4246_v48 = vld [vmem:[%s3958_s13 + $0x140] sm:$0xff]  }
  0x8e   : > { %v977_v32 = vrot.slane %v975_v23, 2  ;;  %v980_v33 = vrot.slane %v978_v24, 3  ;;  %v695_v34 = vpop.permute.xlu0 %694  ;;  %3631 = vmatprep.subr.bf16.mxu1 %v3872_v1  ;;  %v1085_v16 = vshll.u32 %v3758_v7, 16  ;;  %v1973_v20 = vrot.slane %v4124_v18, 5 }
  0x8f   : > { %v4144_v41 = vsel %vm854_vm0, %v3753_v25, %v695_v34  ;;  %v1019_v62 = vrot.slane %v1017_v51, 2  ;;  %v1022_v63 = vrot.slane %v1020_v52, 3  ;;  %v1064_v23 = vor.u32 %v1063_v9, %v1060_v8 }
  0x90   : > { %1827 = vmatmul.mubr.bf16.gmra.mxu1 %v4124_v18  ;;  %v981_v37 = vor.u32 %v980_v33, %v977_v32  ;;  %v1024_v53 = vshrl.u32 %v4144_v41, 16  ;;  %v1027_v54 = vshll.u32 %v4144_v41, 16  ;;  %v1093_v24 = vshll.u32 %v4176_v4, 16 }
  0x91   : > { %3399 = vmatprep.mubr.msk.bf16.mxu1 %vm854_vm0, %v3751_v11  ;;  %3643 = vmatpush1.bf16.msra.mxu1 %v4135_v29  ;;  %v4188_v11 = vld [vmem:[%s5009_s1 + $0xd0] sm:$0xff]   ;;  %v1084_v33 = vrot.slane %v1082_v13, 2  ;;  %v1087_v34 = vrot.slane %v1085_v16, 3  ;;  %v1092_v35 = vrot.slane %v1090_v19, 2  ;;  %v1110_v47 = vshll.u32 %v4214_v31, 16  ;;  %v4300_v19 = vld [vmem:[%s3958_s13 + $0x158] sm:$0xff]  }
  0x92   : > { %v982_v49 = vsel %vm967_vm1, %v974_v36, %v981_v37  ;;  %3632 = vmatprep.subr.bf16.mxu1 %v3872_v1  ;;  %v1026_v2 = vrot.slane %v1024_v53, 2  ;;  %v1029_v3 = vrot.slane %v1027_v54, 3  ;;  %v1007_v10 = vsel %vm967_vm1, %v981_v37, %v1006_v59  ;;  %v699_v21 = vpop.permute.xlu0 %698  ;;  %v4256_v54 = vld [vmem:[%s3958_s13 + $0x138] sm:$0xff]  }
  0x93   : > { %1554 = vmatmul.mubr.bf16.vlgmr.msra.gmra.mxu0 %v982_v49  ;;  %v1065_v36 = vsel %vm967_vm1, %v1047_v56, %v1064_v23  ;;  %v1095_v37 = vrot.slane %v1093_v24, 3  ;;  %v4241_v44 = vsel %vm854_vm0, %v3757_v30, %v699_v21  ;;  %v1088_v56 = vor.u32 %v1087_v34, %v1084_v33  ;;  %v4306_v21 = vld [vmem:[%s5009_s1 + $0x110] sm:$0xff]  }
  0x94   : > { %2214 = vmatpush1.bf16.msra.mxu0 %v3749_v0  ;;  %3370 = vmatprep.mubr.msk.bf16.mxu0 %vm854_vm0, %v1016_v42  ;;  %v697_v0 = vpop.permute.xlu1 %696  ;;  %v1066_v49 = vshrl.u32 %v4241_v44, 16  ;;  %v1069_v51 = vshll.u32 %v4241_v44, 16  ;;  %v1131_v59 = vshrl.u32 %v4256_v54, 16  ;;  %v4316_v24 = vld [vmem:[%s3958_s13 + $0x150] sm:$0xff]  }
  0x95   : > { %2215 = vmatprep.subr.bf16.mxu0 %v3872_v1  ;;  %3644 = vmatpush1.bf16.msra.mxu1 %v4152_v46  ;;  %v4191_v12 = vsel %vm854_vm0, %v3752_v61, %v697_v0  ;;  %v4260_v57 = vor.u32 %v1095_v37, %v1092_v35  ;;  %v4266_v61 = vld [vmem:[%s3958_s13 + $0x148] sm:$0x1f]   ;;  %v4276_v0 = vrot.slane %v1110_v47, 3  ;;  %v3768_v30 = vld [vmem:[%s3958_s13 + $0x50] sm:$0xff]   ;;  %v1188_v47 = vshrl.u32 %v4300_v19, 16 }
  0x96   : > { %3633 = vmatprep.subr.bf16.mxu1 %v3872_v1  ;;  %v1049_v25 = vshrl.u32 %v4191_v12, 16  ;;  %v1052_v26 = vshll.u32 %v4191_v12, 16  ;;  %v703_v45 = vpop.permute.xlu0 %702 }
  0x97   : > { %v1097_v13 = vsel %vm967_vm1, %v1088_v56, %v4260_v57  ;;  %v4294_v16 = vsel %vm854_vm0, %v3761_v55, %v703_v45 }
  0x98   : > { %1835 = vmatmul.mubr.bf16.gmra.mxu1 %v4157_v50  ;;  %2216 = vmatpush1.bf16.msra.mxu0 %v4114_v14  ;;  %v1023_v14 = vor.u32 %v1022_v63, %v1019_v62  ;;  %v701_v27 = vpop.permute.xlu1 %700  ;;  %v1051_v39 = vrot.slane %v1049_v25, 2  ;;  %v1054_v40 = vrot.slane %v1052_v26, 3  ;;  %v4272_v62 = vld [vmem:[%s5009_s1 + $0x118] sm:$0xff]   ;;  %v1159_v25 = vshll.u32 %v4266_v61, 16 }
  0x99   : > { %3400 = vmatprep.mubr.msk.bf16.mxu1 %vm854_vm0, %v4117_v15  ;;  %2217 = vmatprep.subr.bf16.mxu0 %v3872_v1  ;;  %v4195_v15 = vor.u32 %v1029_v3, %v1026_v2  ;;  %v1134_v2 = vshll.u32 %v4256_v54, 16  ;;  %v1139_v3 = vshrl.u32 %v4246_v48, 16  ;;  %v1098_v35 = vshrl.u32 %v4294_v16, 16 }
  0x9a   : > { %3645 = vmatpush1.bf16.msra.mxu1 %v4170_v60  ;;  %v1055_v58 = vor.u32 %v1054_v40, %v1051_v39  ;;  %v1180_v39 = vshrl.u32 %v4316_v24, 16  ;;  %v1183_v40 = vshll.u32 %v4316_v24, 16  ;;  %v1101_v45 = vshll.u32 %v4294_v16, 16 }
  0x9b   : > { %1562 = vmatmul.mubr.bf16.gmra.mxu0 %v1007_v10  ;;  %3634 = vmatprep.subr.bf16.mxu1 %v3872_v1  ;;  %v1031_v32 = vsel %vm967_vm1, %v1023_v14, %v4195_v15  ;;  %v1142_v14 = vshll.u32 %v4246_v48, 16  ;;  %v4311_v23 = vrot.slane %v1134_v2, 3  ;;  %v1141_v33 = vrot.slane %v1139_v3, 2 }
  0x9c   : > { %3371 = vmatprep.mubr.msk.bf16.mxu0 %vm854_vm0, %v1048_v6  ;;  %2218 = vmatpush1.bf16.msra.mxu0 %v4135_v29  ;;  %v1972_v29 = vrot.slane %v4102_v5, 5  ;;  %v4223_v5 = vsel %vm854_vm0, %v3760_v22, %v701_v27  ;;  %v4232_v42 = vpop.permute.xlu1 %704  ;;  %v1068_v6 = vrot.slane %v1066_v49, 2  ;;  %v4309_v22 = vrot.slane %v1131_v59, 2 }
  0x9d   : > { %2219 = vmatprep.subr.bf16.mxu0 %v3872_v1  ;;  %v1073_v52 = vshrl.u32 %v4223_v5, 16  ;;  %v1076_v53 = vshll.u32 %v4223_v5, 16  ;;  %v1144_v37 = vrot.slane %v1142_v14, 3  ;;  %v1978_v49 = vrot.slane %v4121_v17, 5 }
  0x9e   : > { %3646 = vmatpush1.bf16.msra.mxu1 %v4188_v11  ;;  %v4230_v38 = vsel %vm1971_vm2, %v1972_v29, %v1973_v20  ;;  %v3765_v29 = vld [vmem:[%s3958_s13 + $0x48] sm:$0xff]   ;;  %v1103_v3 = vrot.slane %v1101_v45, 3 }
  0x9f   : > { %3635 = vmatprep.subr.bf16.mxu1 %v3872_v1  ;;  %v1075_v8 = vrot.slane %v1073_v52, 2  ;;  %v1078_v9 = vrot.slane %v1076_v53, 3  ;;  %v1982_v52 = vrot.slane %v4157_v50, 5  ;;  %v4360_v55 = vsel %vm854_vm0, %v3765_v29, %v4232_v42 }
  0xa0   : > { %1843 = vmatmul.mubr.bf16.gmra.mxu1 %v4144_v41  ;;  %2220 = vmatpush1.bf16.msra.mxu0 %v4152_v46  ;;  %v1107_v46 = vshrl.u32 %v4214_v31, 16  ;;  %v4282_v10 = vpop.permute.xlu1 %708  ;;  %v1115_v2 = vshrl.u32 %v4360_v55, 16  ;;  %v1998_v29 = vrot.slane %v4294_v16, 5  ;;  %v1191_v50 = vshll.u32 %v4300_v19, 16 }
  0xa1   : > { %3401 = vmatprep.mubr.msk.bf16.mxu1 %vm854_vm0, %v3758_v7  ;;  %2221 = vmatprep.subr.bf16.mxu0 %v3872_v1  ;;  %v1071_v7 = vrot.slane %v1069_v51, 3  ;;  %v4328_v27 = vor.u32 %v1078_v9, %v1075_v8  ;;  %v4351_v51 = vrot.slane %v1159_v25, 3  ;;  %v3783_v8 = vld [vmem:[%s3958_s13 + $0x80] sm:$0xff]   ;;  %v1988_v9 = vrot.slane %v4191_v12, 5 }
  0xa2   : > { %3647 = vmatpush1.bf16.msra.mxu1 %v4209_v28  ;;  %v4274_v63 = vrot.slane %v1107_v46, 2  ;;  %v1992_v25 = vrot.slane %v4241_v44, 5  ;;  %v1137_v12 = vor.u32 %v4311_v23, %v4309_v22  ;;  %v3780_v23 = vld [vmem:[%s3958_s13 + $0x78] sm:$0xff]  }
  0xa3   : > { %1570 = vmatmul.mubr.bf16.gmra.mxu0 %v1031_v32  ;;  %3636 = vmatprep.subr.bf16.mxu1 %v3872_v1  ;;  %v1072_v26 = vor.u32 %v1071_v7, %v1068_v6  ;;  %v3772_v6 = vld [vmem:[%s3958_s13 + $0x60] sm:$0xff]   ;;  %v3776_v7 = vld [vmem:[%s3958_s13 + $0x70] sm:$0x1f]  }
  0xa4   : > { %3372 = vmatprep.mubr.msk.bf16.mxu0 %vm854_vm0, %v1065_v36  ;;  %2222 = vmatpush1.bf16.msra.mxu0 %v4170_v60  ;;  %v707_v60 = vpop.permute.xlu0 %706  ;;  %v1113_v32 = vor.u32 %v4276_v0, %v4274_v63  ;;  %v713_v34 = vpop.permute.xlu1 %712  ;;  %v3767_v36 = vld [vmem:[%s3958_s13 + $0x58] sm:$0x1f]   ;;  %v4370_v63 = vld [vmem:[%s5009_s1 + $0x100] sm:$0xff]   ;;  %v1100_v0 = vrot.slane %v1098_v35, 2 }
  0xa5   : > { %2223 = vmatprep.subr.bf16.mxu0 %v3872_v1  ;;  %v1080_v53 = vsel %vm967_vm1, %v1072_v26, %v4328_v27  ;;  %v4363_v56 = vsel %vm854_vm0, %v3768_v30, %v707_v60  ;;  %v4387_v14 = vsel %vm854_vm0, %v3767_v36, %v4282_v10  ;;  %v4402_v10 = vor.u32 %v1144_v37, %v1141_v33 }
  0xa6   : > { %3648 = vmatpush1.bf16.msra.mxu1 %v4238_v43  ;;  %v1114_v42 = vsel %vm967_vm1, %v4260_v57, %v1113_v32  ;;  %v1122_v57 = vshrl.u32 %v4363_v56, 16  ;;  %v1993_v26 = vrot.slane %v4223_v5, 5  ;;  %v1117_v30 = vrot.slane %v1115_v2, 2 }
  0xa7   : > { %3637 = vmatprep.subr.bf16.mxu1 %v3872_v1  ;;  %v2002_v32 = vrot.slane %v4360_v55, 5  ;;  %v2008_v36 = vrot.slane %v4387_v14, 5  ;;  %v1104_v45 = vor.u32 %v1103_v3, %v1100_v0 }
  0xa8   : > { %1851 = vmatmul.mubr.bf16.gmra.mxu1 %v4241_v44  ;;  %2224 = vmatpush1.bf16.msra.mxu0 %v4188_v11  ;;  %v1056_v11 = vsel %vm967_vm1, %v4195_v15, %v1055_v58  ;;  %v4313_v15 = vpop.permute.xlu0 %710  ;;  %v3775_v58 = vld [vmem:[%s3958_s13 + $0x68] sm:$0xff]   ;;  %v717_v59 = vpop.permute.xlu1 %716 }
  0xa9   : > { %3402 = vmatprep.mubr.msk.bf16.mxu1 %vm854_vm0, %v4176_v4  ;;  %2225 = vmatprep.subr.bf16.mxu0 %v3872_v1  ;;  %v1156_v4 = vshrl.u32 %v4266_v61, 16  ;;  %v4411_v22 = vsel %vm854_vm0, %v3775_v58, %v713_v34  ;;  %v901_v37 = vsel %vm854_vm0, %v3772_v6, %v4313_v15  ;;  %v1146_v58 = vsel %vm967_vm1, %v1137_v12, %v4402_v10  ;;  %v4506_v12 = vld [vmem:[%s3958_s13 + $0x160] sm:$0x1f]  }
  0xaa   : > { %3649 = vmatpush2.bf16.msra.mxu1 %v4272_v62  ;;  %v2012_v0 = vrot.slane %v901_v37, 5  ;;  %v1105_v15 = vsel %vm967_vm1, %v4328_v27, %v1104_v45 }
  0xab   : > { %1578 = vmatmul.mubr.bf16.gmra.mxu0 %v1056_v11  ;;  %3638 = vmatprep.subr.bf16.mxu1 %v3872_v1  ;;  %v4341_v46 = vrot.slane %v1156_v4, 2  ;;  %v3782_v11 = vld [vmem:[%s3958_s13 + $0x88] sm:$0x1f]   ;;  %v4395_v4 = vld [vmem:[%s5012_s4 + $0x18] sm:$0xff]  }
  0xac   : > { %3373 = vmatprep.mubr.msk.bf16.mxu0 %vm854_vm0, %v1097_v13  ;;  %2226 = vmatpush1.bf16.msra.mxu0 %v4209_v28  ;;  %v4348_v28 = vld [vmem:[%s5009_s1 + $0x108] sm:$0xff]   ;;  %v715_v60 = vpop.permute.xlu0 %714  ;;  %v1983_v13 = vrot.slane %v4144_v41, 5  ;;  %v1125_v41 = vshll.u32 %v4363_v56, 16  ;;  %v721_v33 = vpop.permute.xlu1 %720 }
  0xad   : > { %2227 = vmatprep.subr.bf16.mxu0 %v3872_v1  ;;  %v4433_v2 = vsel %vm854_vm0, %v3782_v11, %v721_v33  ;;  %v1162_v6 = vor.u32 %v4351_v51, %v4341_v46 }
  0xae   : > { %3650 = vmatpush2.bf16.msra.mxu1 %v4306_v21  ;;  %v1127_v16 = vrot.slane %v1125_v41, 3  ;;  %v4454_v27 = vsel %vm1971_vm2, %v1982_v52, %v1983_v13  ;;  %v2028_v18 = vrot.slane %v4433_v2, 5  ;;  %v4468_v52 = vsel %vm1971_vm2, %v1992_v25, %v1993_v26 }
  0xaf   : > { %3639 = vmatprep.subr.bf16.mxu1 %v3872_v1  ;;  %v1163_v11 = vsel %vm967_vm1, %v4402_v10, %v1162_v6  ;;  %v1185_v25 = vrot.slane %v1183_v40, 3  ;;  %v1193_v41 = vrot.slane %v1191_v50, 3 }
  0xb0   : > { %1859 = vmatmul.mubr.bf16.gmra.mxu1 %v4223_v5  ;;  %2228 = vmatpush1.bf16.msra.mxu0 %v4238_v43  ;;  %v1118_v43 = vshll.u32 %v4360_v55, 16  ;;  %v719_v44 = vpop.permute.xlu0 %718  ;;  %v1124_v5 = vrot.slane %v1122_v57, 2 }
  0xb1   : > { %3403 = vmatprep.mubr.msk.bf16.mxu1 %vm854_vm0, %v4256_v54  ;;  %2237 = vmatprep.subr.bf16.mxu0 %v3872_v1  ;;  %v4424_v34 = vsel %vm854_vm0, %v3783_v8, %v719_v44  ;;  %v4472_v8 = vsel %vm1971_vm2, %v1993_v26, %v1998_v29  ;;  %v1164_v26 = vshrl.u32 %v901_v37, 16  ;;  %v1167_v29 = vshll.u32 %v901_v37, 16 }
  0xb2   : > { %3651 = vmatpush2.bf16.msra.mxu1 %v4348_v28  ;;  %v1120_v35 = vrot.slane %v1118_v43, 3  ;;  %v2023_v43 = vrot.slane %v4424_v34, 5  ;;  %v1208_v44 = vshll.u32 %v4506_v12, 16 }
  0xb3   : > { %1586 = vmatmul.mubr.bf16.gmra.mxu0 %v1080_v53  ;;  %3640 = vmatprep.subr.bf16.mxu1 %v3872_v1  ;;  %v4421_v53 = vsel %vm854_vm0, %v3776_v7, %v715_v60  ;;  %v1150_v7 = vshll.u32 %v4387_v14, 16  ;;  %v1169_v45 = vrot.slane %v1167_v29, 3 }
  0xb4   : > { %3374 = vmatprep.mubr.msk.bf16.mxu0 %vm854_vm0, %v1114_v42  ;;  %2238 = vmatpush2.bf16.msra.mxu0 %v4272_v62  ;;  %v2003_v62 = vrot.slane %v4363_v56, 5  ;;  %v4439_v42 = vsel %vm854_vm0, %v3780_v23, %v717_v59  ;;  %v2018_v60 = vrot.slane %v4421_v53, 5  ;;  %v1121_v17 = vor.u32 %v1120_v35, %v1117_v30 }
  0xb5   : > { %2239 = vmatprep.subr.bf16.mxu0 %v3872_v1  ;;  %v2022_v3 = vrot.slane %v4439_v42, 5  ;;  %v1128_v59 = vor.u32 %v1127_v16, %v1124_v5  ;;  %v4495_v57 = vsel %vm1971_vm2, %v2023_v43, %v2028_v18  ;;  %v1171_v30 = vshrl.u32 %v4411_v22, 16 }
  0xb6   : > { %3652 = vmatpush2.bf16.msra.mxu1 %v4370_v63  ;;  %v1210_v16 = vrot.slane %v1208_v44, 3 }
  0xb7   : > { %3589 = vmatprep.subr.bf16.mxu1 %v4395_v4  ;;  %v4487_v51 = vsel %vm1971_vm2, %v2022_v3, %v2023_v43  ;;  %v1173_v23 = vrot.slane %v1171_v30, 2 }
  0xb8   : > { %1867 = vmatmul.mubr.bf16.gmra.mxu1 %v4360_v55  ;;  %2240 = vmatpush2.bf16.msra.mxu0 %v4306_v21  ;;  %v2013_v55 = vrot.slane %v4411_v22, 5  ;;  %v4446_v21 = vsel %vm1971_vm2, %v1973_v20, %v1978_v49  ;;  %v4460_v20 = vsel %vm1971_vm2, %v1983_v13, %v1988_v9  ;;  %v1147_v49 = vshrl.u32 %v4387_v14, 16 }
  0xb9   : > { %3404 = vmatprep.mubr.msk.bf16.mxu1 %vm854_vm0, %v4246_v48  ;;  %2241 = vmatprep.subr.bf16.mxu0 %v3872_v1  ;;  %v4478_v9 = vsel %vm1971_vm2, %v2003_v62, %v2008_v36  ;;  %v1129_v13 = vsel %vm967_vm1, %v1121_v17, %v1128_v59  ;;  %v1182_v14 = vrot.slane %v1180_v39, 2  ;;  %v1166_v36 = vrot.slane %v1164_v26, 2 }
  0xba   : > { %v4481_v46 = vsel %vm1971_vm2, %v2012_v0, %v2013_v55  ;;  %v1149_v39 = vrot.slane %v1147_v49, 2  ;;  %v1196_v49 = vshrl.u32 %v4421_v53, 16 }
  0xbb   : > { %1594 = vmatmul.mubr.bf16.gmra.mxu0 %v1105_v15  ;;  %v1186_v10 = vor.u32 %v1185_v25, %v1182_v14  ;;  %v1170_v15 = vor.u32 %v1169_v45, %v1166_v36  ;;  %v4536_v25 = vld [vmem:[%s3958_s13 + $0x178] sm:$0x1f]  }
  0xbc   : > { %3375 = vmatprep.mubr.msk.bf16.mxu0 %vm854_vm0, %v1146_v58  ;;  %2242 = vmatpush2.bf16.msra.mxu0 %v4348_v28  ;;  %v4475_v28 = vsel %vm1971_vm2, %v2002_v32, %v2003_v62  ;;  %v1174_v32 = vshll.u32 %v4411_v22, 16  ;;  %v4517_v58 = vld [vmem:[%s3958_s13 + $0x170] sm:$0xff]   ;;  %v1254_v30 = vshrl.u32 %v4536_v25, 16 }
  0xbd   : > { %2243 = vmatprep.subr.bf16.mxu0 %v3872_v1  ;;  %v4484_v1 = vsel %vm1971_vm2, %v2013_v55, %v2018_v60  ;;  %v4521_v55 = vld [vmem:[%s3958_s13 + $0x168] sm:$0xff]   ;;  %v1237_v17 = vshrl.u32 %v4517_v58, 16  ;;  %v1240_v18 = vshll.u32 %v4517_v58, 16 }
  0xbe   : > { %v1176_v33 = vrot.slane %v1174_v32, 3  ;;  %v1229_v60 = vshrl.u32 %v4521_v55, 16  ;;  %v1232_v43 = vshll.u32 %v4521_v55, 16  ;;  %v1257_v32 = vshll.u32 %v4536_v25, 16 }
  0xbf   : > { %v1239_v14 = vrot.slane %v1237_v17, 2  ;;  %v1256_v45 = vrot.slane %v1254_v30, 2 }
  0xc0   : > { %1875 = vmatmul.mubr.bf16.gmra.mxu1 %v4363_v56  ;;  %2244 = vmatpush2.bf16.msra.mxu0 %v4370_v63  ;;  %v1190_v56 = vrot.slane %v1188_v47, 2  ;;  %v1152_v63 = vrot.slane %v1150_v7, 3  ;;  %v1205_v47 = vshrl.u32 %v4506_v12, 16  ;;  %v1231_v50 = vrot.slane %v1229_v60, 2  ;;  %v3790_v60 = vld [vmem:[%s3958_s13 + $0x98] sm:$0xff]  }
  0xc1   : > { %3405 = vmatprep.mubr.msk.bf16.mxu1 %vm854_vm0, %v4316_v24 }
  0xc2   : > { %v1194_v40 = vor.u32 %v1193_v41, %v1190_v56  ;;  %v1153_v35 = vor.u32 %v1152_v63, %v1149_v39  ;;  %v1207_v62 = vrot.slane %v1205_v47, 2  ;;  %v1198_v56 = vrot.slane %v1196_v49, 2  ;;  %v725_v49 = vpop.permute.xlu1 %724 }
  0xc3   : > { %1602 = vmatmul.mubr.bf16.gmra.mxu0 %v1129_v13  ;;  %v1234_v13 = vrot.slane %v1232_v43, 3  ;;  %v1220_v39 = vshrl.u32 %v4424_v34, 16  ;;  %v1223_v63 = vshll.u32 %v4424_v34, 16 }
  0xc4   : > { %3376 = vmatprep.mubr.msk.bf16.mxu0 %vm854_vm0, %v1163_v11  ;;  %v1195_v5 = vsel %vm967_vm1, %v1186_v10, %v1194_v40  ;;  %v1154_v0 = vsel %vm967_vm1, %v1128_v59, %v1153_v35  ;;  %v1211_v3 = vor.u32 %v1210_v16, %v1207_v62  ;;  %v1199_v59 = vshll.u32 %v4421_v53, 16  ;;  %v4554_v62 = vld [vmem:[%s3958_s13 + $0x180] sm:$0xff]  }
  0xc5   : > { %v1242_v11 = vrot.slane %v1240_v18, 3  ;;  %v1213_v53 = vshrl.u32 %v4439_v42, 16  ;;  %v1235_v26 = vor.u32 %v1234_v13, %v1231_v50  ;;  %v1222_v44 = vrot.slane %v1220_v39, 2  ;;  %v723_v50 = vpop.permute.xlu0 %722 }
  0xc6   : > { %v1212_v7 = vsel %vm967_vm1, %v1194_v40, %v1211_v3  ;;  %v1201_v41 = vrot.slane %v1199_v59, 3  ;;  %v1225_v35 = vrot.slane %v1223_v63, 3  ;;  %v1248_v18 = vshll.u32 %v4433_v2, 16  ;;  %v3787_v59 = vld [vmem:[%s3958_s13 + $0x90] sm:$0xff]  }
  0xc7   : > { %v1243_v29 = vor.u32 %v1242_v11, %v1239_v14  ;;  %v1215_v40 = vrot.slane %v1213_v53, 2  ;;  %v4570_v14 = vsel %vm854_vm0, %v3790_v60, %v725_v49  ;;  %v4592_v60 = vld [vmem:[%s3958_s13 + $0x1a0] sm:$0xff]  }
  0xc8   : > { %1883 = vmatmul.mubr.bf16.gmra.mxu1 %v901_v37  ;;  %v1177_v37 = vor.u32 %v1176_v33, %v1173_v23  ;;  %v1202_v10 = vor.u32 %v1201_v41, %v1198_v56  ;;  %v1259_v23 = vrot.slane %v1257_v32, 3  ;;  %v4550_v33 = vld [vmem:[%s3958_s13 + $0x188] sm:$0xff]   ;;  %v1226_v16 = vor.u32 %v1225_v35, %v1222_v44  ;;  %v3791_v44 = vld [vmem:[%s3958_s13 + $0xa0] sm:$0x1f]  }
  0xc9   : > { %3406 = vmatprep.mubr.msk.bf16.mxu1 %vm854_vm0, %v4300_v19  ;;  %v1244_v36 = vsel %vm967_vm1, %v1235_v26, %v1243_v29  ;;  %v1286_v43 = vshrl.u32 %v4550_v33, 16  ;;  %v1289_v17 = vshll.u32 %v4550_v33, 16  ;;  %v1269_v26 = vshrl.u32 %v4570_v14, 16 }
  0xca   : > { %v1178_v6 = vsel %vm967_vm1, %v1170_v15, %v1177_v37  ;;  %v1281_v15 = vshll.u32 %v4554_v62, 16  ;;  %v1260_v3 = vor.u32 %v1259_v23, %v1256_v45  ;;  %v1272_v30 = vshll.u32 %v4570_v14, 16 }
  0xcb   : > { %1610 = vmatmul.mubr.bf16.gmra.mxu0 %v1154_v0  ;;  %v1278_v0 = vshrl.u32 %v4554_v62, 16  ;;  %v1288_v56 = vrot.slane %v1286_v43, 2  ;;  %v1291_v41 = vrot.slane %v1289_v17, 3  ;;  %v1271_v45 = vrot.slane %v1269_v26, 2  ;;  %v4596_v43 = vld [vmem:[%s3958_s13 + $0x198] sm:$0xff]  }
  0xcc   : > { %3377 = vmatprep.mubr.msk.bf16.mxu0 %vm854_vm0, %v1195_v5  ;;  %v1203_v5 = vsel %vm967_vm1, %v1177_v37, %v1202_v10  ;;  %v1245_v37 = vshrl.u32 %v4433_v2, 16  ;;  %v1283_v13 = vrot.slane %v1281_v15, 3  ;;  %v1261_v11 = vsel %vm967_vm1, %v1243_v29, %v1260_v3  ;;  %v4574_v2 = vld [vmem:[%s3958_s13 + $0x190] sm:$0x1f]  }
  0xcd   : > { %v1292_v32 = vor.u32 %v1291_v41, %v1288_v56  ;;  %v1303_v10 = vshrl.u32 %v4574_v2, 16  ;;  %v1274_v23 = vrot.slane %v1272_v30, 3  ;;  %v1327_v49 = vshrl.u32 %v4596_v43, 16  ;;  %v3795_v41 = vld [vmem:[%s3958_s13 + $0xa8] sm:$0xff]  }
  0xce   : > { %v1247_v53 = vrot.slane %v1245_v37, 2 }
  0xd0   : > { %1891 = vmatmul.mubr.bf16.gmra.mxu1 %v4411_v22  ;;  %v1216_v22 = vshll.u32 %v4439_v42, 16 }
  0xd1   : > { %3407 = vmatprep.mubr.msk.bf16.mxu1 %vm854_vm0, %v4521_v55 }
  0xd2   : > { %v1218_v47 = vrot.slane %v1216_v22, 3  ;;  %v4577_v22 = vsel %vm854_vm0, %v3787_v59, %v723_v50  ;;  %v1330_v59 = vshll.u32 %v4596_v43, 16 }
  0xd3   : > { %1618 = vmatmul.mubr.bf16.gmra.mxu0 %v1178_v6  ;;  %v1262_v39 = vshrl.u32 %v4577_v22, 16  ;;  %v1265_v63 = vshll.u32 %v4577_v22, 16 }
  0xd4   : > { %3378 = vmatprep.mubr.msk.bf16.mxu0 %vm854_vm0, %v1212_v7  ;;  %v1280_v7 = vrot.slane %v1278_v0, 2  ;;  %v1305_v0 = vrot.slane %v1303_v10, 2 }
  0xd5   : > { %v1264_v35 = vrot.slane %v1262_v39, 2  ;;  %v1329_v39 = vrot.slane %v1327_v49, 2 }
  0xd6   : > { %v1284_v29 = vor.u32 %v1283_v13, %v1280_v7  ;;  %v1335_v7 = vshrl.u32 %v4592_v60, 16 }
  0xd8   : > { %1899 = vmatmul.mubr.bf16.gmra.mxu1 %v4439_v42  ;;  %v1219_v42 = vor.u32 %v1218_v47, %v1215_v40  ;;  %v1306_v40 = vshll.u32 %v4574_v2, 16 }
  0xd9   : > { %3408 = vmatprep.mubr.msk.bf16.mxu1 %vm854_vm0, %v4517_v58 }
  0xda   : > { %v1227_v6 = vsel %vm967_vm1, %v1219_v42, %v1226_v16  ;;  %v1293_v42 = vsel %vm967_vm1, %v1284_v29, %v1292_v32  ;;  %v1308_v15 = vrot.slane %v1306_v40, 3  ;;  %v1337_v29 = vrot.slane %v1335_v7, 2  ;;  %v4619_v40 = vld [vmem:[%s3958_s13 + $0x1a8] sm:$0x1f]  }
  0xdb   : > { %1626 = vmatmul.mubr.bf16.gmra.mxu0 %v1203_v5  ;;  %v727_v5 = vpop.permute.xlu0 %726 }
  0xdc   : > { %3379 = vmatprep.mubr.msk.bf16.mxu0 %vm854_vm0, %v1244_v36  ;;  %v1267_v36 = vrot.slane %v1265_v63, 3  ;;  %v4599_v17 = vsel %vm854_vm0, %v3791_v44, %v727_v5  ;;  %v1309_v50 = vor.u32 %v1308_v15, %v1305_v0  ;;  %v1332_v63 = vrot.slane %v1330_v59, 3 }
  0xdd   : > { %v1294_v13 = vshrl.u32 %v4599_v17, 16  ;;  %v1352_v0 = vshrl.u32 %v4619_v40, 16  ;;  %v1355_v15 = vshll.u32 %v4619_v40, 16 }
  0xde   : > { %v1268_v37 = vor.u32 %v1267_v36, %v1264_v35  ;;  %v1310_v30 = vsel %vm967_vm1, %v1292_v32, %v1309_v50  ;;  %v1333_v32 = vor.u32 %v1332_v63, %v1329_v39 }
  0xdf   : > { %v731_v56 = vpop.permute.xlu0 %730 }
  0xe0   : > { %1907 = vmatmul.mubr.bf16.gmra.mxu1 %v4424_v34  ;;  %v1250_v34 = vrot.slane %v1248_v18, 3  ;;  %v1275_v18 = vor.u32 %v1274_v23, %v1271_v45 }
  0xe1   : > { %3409 = vmatprep.mubr.msk.bf16.mxu1 %vm854_vm0, %v4554_v62 }
  0xe2   : > { %v1251_v47 = vor.u32 %v1250_v34, %v1247_v53  ;;  %v1276_v53 = vsel %vm967_vm1, %v1268_v37, %v1275_v18  ;;  %v729_v34 = vpop.permute.xlu1 %728  ;;  %v3797_v37 = vld [vmem:[%s3958_s13 + $0xb8] sm:$0x1f]  }
  0xe3   : > { %1634 = vmatmul.mubr.bf16.gmra.mxu0 %v1227_v6  ;;  %v3798_v6 = vld [vmem:[%s3958_s13 + $0xb0] sm:$0xff]   ;;  %v4622_v35 = vsel %vm854_vm0, %v3795_v41, %v729_v34  ;;  %v2035_v41 = vrot.slane %v4554_v62, 5 }
  0xe4   : > { %3380 = vmatprep.mubr.msk.bf16.mxu0 %vm854_vm0, %v1261_v11  ;;  %v1252_v3 = vsel %vm967_vm1, %v1226_v16, %v1251_v47  ;;  %v1338_v16 = vshll.u32 %v4592_v60, 16  ;;  %v1297_v11 = vshll.u32 %v4599_v17, 16  ;;  %v4615_v26 = vsel %vm854_vm0, %v3798_v6, %v731_v56 }
  0xe5   : > { %v1296_v47 = vrot.slane %v1294_v13, 2  ;;  %v1311_v36 = vshrl.u32 %v4622_v35, 16  ;;  %v1314_v45 = vshll.u32 %v4622_v35, 16  ;;  %v1318_v23 = vshrl.u32 %v4615_v26, 16 }
  0xe6   : > { %v1340_v10 = vrot.slane %v1338_v16, 3  ;;  %v1299_v44 = vrot.slane %v1297_v11, 3  ;;  %v1321_v5 = vshll.u32 %v4615_v26, 16  ;;  %v733_v6 = vpop.permute.xlu1 %732  ;;  %v1354_v13 = vrot.slane %v1352_v0, 2  ;;  %v3825_v0 = vld [vmem:[%s3958_s13 + $0xf8] sm:$0xff]  }
  0xe7   : > { %v1313_v49 = vrot.slane %v1311_v36, 2  ;;  %v1316_v59 = vrot.slane %v1314_v45, 3  ;;  %v1320_v50 = vrot.slane %v1318_v23, 2  ;;  %v1357_v11 = vrot.slane %v1355_v15, 3 }
  0xe8   : > { %1915 = vmatmul.mubr.bf16.gmra.mxu1 %v4577_v22  ;;  %v1323_v7 = vrot.slane %v1321_v5, 3  ;;  %v4640_v34 = vsel %vm854_vm0, %v3797_v37, %v733_v6  ;;  %v2040_v36 = vrot.slane %v4574_v2, 5  ;;  %v2032_v45 = vrot.slane %v4577_v22, 5  ;;  %v3824_v5 = vld [vmem:[%s3958_s13 + $0xf0] sm:$0xff]   ;;  %v3806_v6 = vld [vmem:[%s5012_s4 + $0x8] sm:$0xff]  }
  0xe9   : > { %3410 = vmatprep.mubr.msk.bf16.mxu1 %vm854_vm0, %v4550_v33  ;;  %v1317_v39 = vor.u32 %v1316_v59, %v1313_v49  ;;  %v2033_v23 = vrot.slane %v4570_v14, 5  ;;  %v1976_v15 = vrot.slane %v3825_v0, 5  ;;  %v2045_v49 = vrot.slane %v4596_v43, 5  ;;  %v3813_v0 = vld [vmem:[%s4325_s12 + $0x28] sm:$0xff]  }
  0xea   : > { %v1324_v63 = vor.u32 %v1323_v7, %v1320_v50  ;;  %v2046_v59 = vrot.slane %v4592_v60, 5  ;;  %v2038_v50 = vrot.slane %v4599_v17, 5  ;;  %v3826_v7 = vld [vmem:[%s3958_s13 + $0x100] sm:$0x1f]  }
  0xeb   : > { %1642 = vmatmul.mubr.bf16.gmra.mxu0 %v1252_v3  ;;  %v1300_v3 = vor.u32 %v1299_v44, %v1296_v47  ;;  %v2034_v2 = vsel %vm1971_vm2, %v2032_v45, %v2033_v23 }
  0xec   : > { %3381 = vmatprep.mubr.msk.bf16.mxu0 %vm854_vm0, %v1293_v42  ;;  %v1341_v42 = vor.u32 %v1340_v10, %v1337_v29  ;;  %v1343_v29 = vshrl.u32 %v4640_v34, 16  ;;  %v1346_v10 = vshll.u32 %v4640_v34, 16 }
  0xed   : > { %v1301_v56 = vsel %vm967_vm1, %v1275_v18, %v1300_v3 }
  0xee   : > { %v1342_v16 = vsel %vm967_vm1, %v1333_v32, %v1341_v42  ;;  %v1345_v47 = vrot.slane %v1343_v29, 2  ;;  %v1348_v44 = vrot.slane %v1346_v10, 3  ;;  %v1975_v32 = vrot.slane %v3824_v5, 5  ;;  %v3829_v29 = vld [vmem:[%s3958_s13 + $0x118] sm:$0x1f]  }
  0xef   : > { %v1990_v10 = vrot.slane %v3829_v29, 5  ;;  %v2000_v5 = vrot.slane %v4214_v31, 5 }
  0xf0   : > { %1923 = vmatmul.mubr.bf16.gmra.mxu1 %v4570_v14  ;;  %v1349_v3 = vor.u32 %v1348_v44, %v1345_v47  ;;  %v1977_v14 = vsel %vm1971_vm2, %v1975_v32, %v1976_v15  ;;  %v3831_v44 = vld [vmem:[%s3958_s13 + $0x128] sm:$0xff]  }
  0xf1   : > { %3411 = vmatprep.mubr.msk.bf16.mxu1 %vm854_vm0, %v4596_v43  ;;  %v2039_v43 = vsel %vm1971_vm2, %v2033_v23, %v2038_v50  ;;  %v3811_v23 = vld [vmem:[%s4325_s12 + $0x18] sm:$0xff]  }
  0xf2   : > { %v1350_v22 = vsel %vm967_vm1, %v1324_v63, %v1349_v3  ;;  %v2006_v3 = vrot.slane %v4246_v48, 5 }
  0xf3   : > { %1650 = vmatmul.mubr.bf16.gmra.mxu0 %v1276_v53  ;;  %v2036_v53 = vrot.slane %v4550_v33, 5  ;;  %v1325_v33 = vsel %vm967_vm1, %v1317_v39, %v1324_v63  ;;  %v3828_v39 = vld [vmem:[%s3958_s13 + $0x110] sm:$0xff]  }
  0xf4   : > { %3382 = vmatprep.mubr.msk.bf16.mxu0 %vm854_vm0, %v1310_v30  ;;  %v1358_v30 = vor.u32 %v1357_v11, %v1354_v13  ;;  %v2050_v13 = vrot.slane %v4619_v40, 5  ;;  %v2042_v11 = vrot.slane %v4622_v35, 5  ;;  %v1986_v63 = vrot.slane %v3828_v39, 5 }
  0xf5   : > { %v2037_v18 = vsel %vm1971_vm2, %v2035_v41, %v2036_v53  ;;  %v2041_v37 = vsel %vm1971_vm2, %v2036_v53, %v2040_v36  ;;  %v3827_v41 = vld [vmem:[%s3958_s13 + $0x108] sm:$0xff]   ;;  %v1996_v36 = vrot.slane %v3831_v44, 5 }
  0xf6   : > { %v1359_v62 = vsel %vm967_vm1, %v1341_v42, %v1358_v30  ;;  %v3805_v42 = vld [vmem:[%s5012_s4 + $0x10] sm:$0xff]   ;;  %v1985_v53 = vrot.slane %v3827_v41, 5  ;;  %v2051_v30 = vsel %vm1971_vm2, %v2046_v59, %v2050_v13  ;;  %v2025_v13 = vrot.slane %v4521_v55, 5 }
  0xf7   : > { %v2001_v32 = vsel %vm1971_vm2, %v1996_v36, %v2000_v5 }
  0xf8   : > { %1931 = vmatmul.mubr.bf16.gmra.mxu1 %v4622_v35  ;;  %v3808_v35 = vld [vmem:[%s4325_s12] sm:$0xff]  }
  0xf9   : > { %3412 = vmatprep.mubr.msk.bf16.mxu1 %vm854_vm0, %v4592_v60  ;;  %v3807_v60 = vld [vmem:[%s5012_s4] sm:$0xff]  }
  0xfb   : > { %1658 = vmatmul.mubr.bf16.gmra.mxu0 %v1301_v56  ;;  %v2043_v56 = vrot.slane %v4615_v26, 5 }
  0xfc   : > { %3383 = vmatprep.mubr.msk.bf16.mxu0 %vm854_vm0, %v1342_v16  ;;  %v1980_v16 = vrot.slane %v3826_v7, 5 }
  0xfd   : > { %v2044_v40 = vsel %vm1971_vm2, %v2042_v11, %v2043_v56  ;;  %v2026_v11 = vrot.slane %v4517_v58, 5  ;;  %v3823_v58 = vld [vmem:[%s4325_s12 + $0x78] sm:$0xff]  }
  0xfe   : > { %v1981_v17 = vsel %vm1971_vm2, %v1976_v15, %v1980_v16  ;;  %v2005_v15 = vrot.slane %v4256_v54, 5  ;;  %v3817_v54 = vld [vmem:[%s4325_s12 + $0x48] sm:$0xff]  }
 0x100   : > { %1939 = vmatmul.mubr.bf16.gmra.mxu1 %v4615_v26  ;;  %v2048_v26 = vrot.slane %v4640_v34, 5  ;;  %v3809_v34 = vld [vmem:[%s4325_s12 + $0x8] sm:$0xff]   ;;  %v2007_v31 = vsel %vm1971_vm2, %v2005_v15, %v2006_v3 }
 0x101   : > { %3461 = vmatprep.mubr.msk.bf16.mxu1 %vm854_vm0, %v2037_v18 }
 0x102   : > { %v2049_v18 = vsel %vm1971_vm2, %v2043_v56, %v2048_v26 }
 0x103   : > { %1666 = vmatmul.mubr.bf16.gmra.mxu0 %v1325_v33  ;;  %v1991_v33 = vsel %vm1971_vm2, %v1986_v63, %v1990_v10 }
 0x104   : > { %3384 = vmatprep.mubr.msk.bf16.mxu0 %vm854_vm0, %v1359_v62  ;;  %v3830_v62 = vld [vmem:[%s3958_s13 + $0x120] sm:$0xff]  }
 0x105   : > { %v1995_v47 = vrot.slane %v3830_v62, 5 }
 0x107   : > { %v1997_v45 = vsel %vm1971_vm2, %v1995_v47, %v1996_v36 }
 0x108   : > { %2342 = vmatmul.mubr.bf16.vlgmr.msra.gmra.mxu1 %v2034_v2  ;;  %v2015_v2 = vrot.slane %v4316_v24, 5  ;;  %v2020_v24 = vrot.slane %v4506_v12, 5  ;;  %v3822_v12 = vld [vmem:[%s4325_s12 + $0x70] sm:$0xff]  }
 0x109   : > { %3462 = vmatprep.mubr.msk.bf16.mxu1 %vm854_vm0, %v2041_v37  ;;  %3590 = vmatpush3.bf16.msra.mxu1 %v4395_v4  ;;  %v2047_v4 = vsel %vm1971_vm2, %v2045_v49, %v2046_v59  ;;  %v3815_v37 = vld [vmem:[%s4325_s12 + $0x38] sm:$0xff]  }
 0x10a   : > { %3591 = vmatprep.subr.bf16.mxu1 %v3805_v42  ;;  %v3819_v59 = vld [vmem:[%s4325_s12 + $0x58] sm:$0xff]  }
 0x10b   : > { %1674 = vmatmul.mubr.bf16.gmra.mxu0 %v1350_v22 }
 0x10c   : > { %3449 = vmatprep.mubr.msk.bf16.mxu0 %vm854_vm0, %v1977_v14  ;;  %v2016_v14 = vrot.slane %v4300_v19, 5 }
 0x10d   : > { %3592 = vmatpush3.bf16.msra.mxu1 %v3805_v42  ;;  %v2010_v42 = vrot.slane %v4266_v61, 5 }
 0x10e   : > { %3593 = vmatprep.subr.bf16.mxu1 %v3806_v6  ;;  %v2017_v61 = vsel %vm1971_vm2, %v2015_v2, %v2016_v14  ;;  %v2021_v7 = vsel %vm1971_vm2, %v2016_v14, %v2020_v24 }
 0x10f   : > { %v2011_v48 = vsel %vm1971_vm2, %v2006_v3, %v2010_v42 }
 0x110   : > { %2350 = vmatmul.mubr.bf16.gmra.mxu1 %v2039_v43  ;;  %v3821_v43 = vld [vmem:[%s4325_s12 + $0x68] sm:$0xff]  }
 0x111   : > { %3463 = vmatprep.mubr.msk.bf16.mxu1 %vm854_vm0, %v2047_v4  ;;  %3594 = vmatpush3.bf16.msra.mxu1 %v3806_v6  ;;  %v3820_v6 = vld [vmem:[%s4325_s12 + $0x60] sm:$0xff]  }
 0x112   : > { %3595 = vmatprep.subr.bf16.mxu1 %v3807_v60 }
 0x113   : > { %2246 = vmatmul.mubr.bf16.vlgmr.msra.gmra.mxu0 %v4230_v38  ;;  %v1987_v38 = vsel %vm1971_vm2, %v1985_v53, %v1986_v63  ;;  %v2027_v63 = vsel %vm1971_vm2, %v2025_v13, %v2026_v11 }
 0x114   : > { %3450 = vmatprep.mubr.msk.bf16.mxu0 %vm854_vm0, %v1981_v17 }
 0x115   : > { %3596 = vmatpush3.bf16.msra.mxu1 %v3807_v60 }
 0x118   : > { %2358 = vmatmul.mubr.bf16.gmra.mxu1 %v2044_v40 }
 0x119   : > { %3464 = vmatprep.mubr.msk.bf16.mxu1 %vm854_vm0, %v2051_v30 }
 0x11b   : > { %2254 = vmatmul.mubr.bf16.gmra.mxu0 %v4446_v21  ;;  %v3810_v21 = vld [vmem:[%s4325_s12 + $0x10] sm:$0xff]  }
 0x11c   : > { %3451 = vmatprep.mubr.msk.bf16.mxu0 %vm854_vm0, %v1987_v38 }
 0x120   : > { %2366 = vmatmul.mubr.bf16.gmra.mxu1 %v2049_v18 }
 0x121   : > { %3597 = vmatprep.mubr.msk.bf16.mxu1 %vm854_vm0, %v3808_v35  ;;  %v2030_v35 = vrot.slane %v4536_v25, 5 }
 0x123   : > { %2262 = vmatmul.mubr.bf16.gmra.mxu0 %v4454_v27  ;;  %v3812_v27 = vld [vmem:[%s4325_s12 + $0x20] sm:$0xff]  }
 0x124   : > { %3452 = vmatprep.mubr.msk.bf16.mxu0 %vm854_vm0, %v1991_v33 }
 0x128   : > { %3598 = vmatmul.mubr.msk.bf16.vlgmr.msra.gmra.mxu1 %vm854_vm0, %v3809_v34 }
 0x129   : > { %3601 = vmatprep.mubr.msk.bf16.mxu1 %vm854_vm0, %v3810_v21  ;;  %v2031_v21 = vsel %vm1971_vm2, %v2026_v11, %v2030_v35 }
 0x12b   : > { %2270 = vmatmul.mubr.bf16.gmra.mxu0 %v4460_v20  ;;  %v3814_v20 = vld [vmem:[%s4325_s12 + $0x30] sm:$0xff]  }
 0x12c   : > { %3453 = vmatprep.mubr.msk.bf16.mxu0 %vm854_vm0, %v1997_v45 }
 0x130   : > { %3602 = vmatmul.mubr.msk.bf16.gmra.mxu1 %vm854_vm0, %v3811_v23 }
 0x131   : > { %3605 = vmatprep.mubr.msk.bf16.mxu1 %vm854_vm0, %v3812_v27 }
 0x133   : > { %2278 = vmatmul.mubr.bf16.gmra.mxu0 %v4468_v52  ;;  %v3816_v52 = vld [vmem:[%s4325_s12 + $0x40] sm:$0xff]  }
 0x134   : > { %3454 = vmatprep.mubr.msk.bf16.mxu0 %vm854_vm0, %v2001_v32 }
 0x138   : > { %3606 = vmatmul.mubr.msk.bf16.gmra.mxu1 %vm854_vm0, %v3813_v0 }
 0x139   : > { %3609 = vmatprep.mubr.msk.bf16.mxu1 %vm854_vm0, %v3814_v20 }
 0x13b   : > { %2286 = vmatmul.mubr.bf16.gmra.mxu0 %v4472_v8  ;;  %v3818_v8 = vld [vmem:[%s4325_s12 + $0x50] sm:$0xff]  }
 0x13c   : > { %3455 = vmatprep.mubr.msk.bf16.mxu0 %vm854_vm0, %v2007_v31 }
 0x140   : > { %3610 = vmatmul.mubr.msk.bf16.gmra.mxu1 %vm854_vm0, %v3815_v37 }
 0x141   : > { %3613 = vmatprep.mubr.msk.bf16.mxu1 %vm854_vm0, %v3816_v52 }
 0x143   : > { %2294 = vmatmul.mubr.bf16.gmra.mxu0 %v4475_v28 }
 0x144   : > { %3456 = vmatprep.mubr.msk.bf16.mxu0 %vm854_vm0, %v2011_v48 }
 0x148   : > { %v1820_v22 = vpop.f32.mrf.mxu1  ;;  %3614 = vmatmul.mubr.msk.bf16.gmra.mxu1 %vm854_vm0, %v3817_v54 }
 0x149   : > { %3617 = vmatprep.mubr.msk.bf16.mxu1 %vm854_vm0, %v3818_v8 }
 0x14a   : > { %v1822_v49 = vpop.f32.mrf.mxu1 }
 0x14b   : > { %2302 = vmatmul.mubr.bf16.gmra.mxu0 %v4478_v9 }
 0x14c   : > { %v1823_v28 = vpop.f32.mrf.mxu1  ;;  %3457 = vmatprep.mubr.msk.bf16.mxu0 %vm854_vm0, %v2017_v61 }
 0x14e   : > { %v1825_v19 = vpop.f32.mrf.mxu1 }
 0x150   : > { %v1828_v50 = vpop.f32.mrf.mxu1  ;;  %3618 = vmatmul.mubr.msk.bf16.gmra.mxu1 %vm854_vm0, %v3819_v59 }
 0x151   : > { %3621 = vmatprep.mubr.msk.bf16.mxu1 %vm854_vm0, %v3820_v6 }
 0x152   : > { %v1830_v16 = vpop.f32.mrf.mxu1 }
 0x153   : > { %v1555_v4 = vpop.f32.mrf.mxu0  ;;  %2310 = vmatmul.mubr.bf16.gmra.mxu0 %v4481_v46 }
 0x154   : > { %v4751_v9 = vadd.f32 %v1820_v22, %v1555_v4  ;;  %v1831_v60 = vpop.f32.mrf.mxu1  ;;  %3458 = vmatprep.mubr.msk.bf16.mxu0 %vm854_vm0, %v2021_v7 }
 0x155   : > { %v1557_v17 = vpop.f32.mrf.mxu0 }
 0x156   : > { %v1833_v56 = vpop.f32.mrf.mxu1 }
 0x157   : > { %v1558_v41 = vpop.f32.mrf.mxu0 }
 0x158   : > { %v4758_v53 = vadd.f32 %v1823_v28, %v1558_v41  ;;  %v1836_v39 = vpop.f32.mrf.mxu1  ;;  %3622 = vmatmul.mubr.msk.bf16.gmra.mxu1 %vm854_vm0, %v3821_v43 }
 0x159   : > { %v1560_v46 = vpop.f32.mrf.mxu0  ;;  %3625 = vmatprep.mubr.msk.bf16.mxu1 %vm854_vm0, %v3822_v12 }
 0x15a   : > { %v1838_v30 = vpop.f32.mrf.mxu1 }
 0x15b   : > { %v1563_v40 = vpop.f32.mrf.mxu0  ;;  %2318 = vmatmul.mubr.bf16.gmra.mxu0 %v4484_v1 }
 0x15c   : > { %v4764_v38 = vadd.f32 %v1828_v50, %v1563_v40  ;;  %v1839_v55 = vpop.f32.mrf.mxu1  ;;  %3459 = vmatprep.mubr.msk.bf16.mxu0 %vm854_vm0, %v2027_v63 }
 0x15d   : > { %v1565_v26 = vpop.f32.mrf.mxu0 }
 0x15e   : > { %v1841_v29 = vpop.f32.mrf.mxu1 }
 0x15f   : > { %v1566_v10 = vpop.f32.mrf.mxu0 }
 0x160   : > { %v4769_v18 = vadd.f32 %v1831_v60, %v1566_v10  ;;  %v1844_v33 = vpop.f32.mrf.mxu1  ;;  %3626 = vmatmul.mubr.msk.bf16.gmra.mxu1 %vm854_vm0, %v3823_v58 }
 0x161   : > { %v1568_v34 = vpop.f32.mrf.mxu0 }
 0x162   : > { %v1846_v1 = vpop.f32.mrf.mxu1 }
 0x163   : > { %v1571_v62 = vpop.f32.mrf.mxu0  ;;  %2326 = vmatmul.mubr.bf16.gmra.mxu0 %v4487_v51 }
 0x164   : > { %v4774_v47 = vadd.f32 %v1836_v39, %v1571_v62  ;;  %v1847_v44 = vpop.f32.mrf.mxu1  ;;  %3460 = vmatprep.mubr.msk.bf16.mxu0 %vm854_vm0, %v2031_v21 }
 0x165   : > { %v1573_v25 = vpop.f32.mrf.mxu0 }
 0x166   : > { %v1849_v36 = vpop.f32.mrf.mxu1 }
 0x167   : > { %v1574_v45 = vpop.f32.mrf.mxu0 }
 0x168   : > { %v4777_v23 = vadd.f32 %v1839_v55, %v1574_v45  ;;  %v1852_v27 = vpop.f32.mrf.mxu1 }
 0x169   : > { %v1576_v5 = vpop.f32.mrf.mxu0 }
 0x16a   : > { %v1854_v32 = vpop.f32.mrf.mxu1 }
 0x16b   : > { %v1579_v0 = vpop.f32.mrf.mxu0  ;;  %2334 = vmatmul.mubr.bf16.gmra.mxu0 %v4495_v57 }
 0x16c   : > { %v4780_v20 = vadd.f32 %v1844_v33, %v1579_v0  ;;  %v1855_v15 = vpop.f32.mrf.mxu1 }
 0x16d   : > { %v1581_v51 = vpop.f32.mrf.mxu0 }
 0x16e   : > { %v1857_v3 = vpop.f32.mrf.mxu1 }
 0x16f   : > { %v1582_v31 = vpop.f32.mrf.mxu0 }
 0x170   : > { %v4782_v37 = vadd.f32 %v1847_v44, %v1582_v31  ;;  %v1860_v52 = vpop.f32.mrf.mxu1 }
 0x171   : > { %v1584_v42 = vpop.f32.mrf.mxu0 }
 0x172   : > { %v1862_v48 = vpop.f32.mrf.mxu1 }
 0x173   : > { %v1587_v54 = vpop.f32.mrf.mxu0 }
 0x174   : > { %v4784_v8 = vadd.f32 %v1852_v27, %v1587_v54  ;;  %v1863_v2 = vpop.f32.mrf.mxu1 }
 0x175   : > { %v1589_v14 = vpop.f32.mrf.mxu0 }
 0x176   : > { %v1865_v22 = vpop.f32.mrf.mxu1 }
 0x177   : > { %v1590_v61 = vpop.f32.mrf.mxu0 }
 0x178   : > { %v4786_v49 = vadd.f32 %v1855_v15, %v1590_v61  ;;  %v1868_v57 = vpop.f32.mrf.mxu1 }
 0x179   : > { %v1592_v28 = vpop.f32.mrf.mxu0 }
 0x17a   : > { %v1870_v59 = vpop.f32.mrf.mxu1 }
 0x17b   : > { %v1595_v6 = vpop.f32.mrf.mxu0 }
 0x17c   : > { %v4788_v24 = vadd.f32 %v1860_v52, %v1595_v6  ;;  %v1871_v19 = vpop.f32.mrf.mxu1 }
 0x17d   : > { %v1597_v50 = vpop.f32.mrf.mxu0 }
 0x17e   : > { %v1873_v7 = vpop.f32.mrf.mxu1 }
 0x17f   : > { %v1598_v16 = vpop.f32.mrf.mxu0 }
 0x180   : > { %v4790_v4 = vadd.f32 %v1863_v2, %v1598_v16  ;;  %v1876_v60 = vpop.f32.mrf.mxu1 }
 0x181   : > { %v1600_v43 = vpop.f32.mrf.mxu0 }
 0x182   : > { %v1878_v17 = vpop.f32.mrf.mxu1 }
 0x183   : > { %v1603_v12 = vpop.f32.mrf.mxu0 }
 0x184   : > { %v4792_v13 = vadd.f32 %v1868_v57, %v1603_v12  ;;  %v1879_v11 = vpop.f32.mrf.mxu1 }
 0x185   : > { %v1605_v56 = vpop.f32.mrf.mxu0 }
 0x186   : > { %v1881_v41 = vpop.f32.mrf.mxu1 }
 0x187   : > { %v1606_v39 = vpop.f32.mrf.mxu0 }
 0x188   : > { %v4794_v46 = vadd.f32 %v1871_v19, %v1606_v39  ;;  %v1884_v63 = vpop.f32.mrf.mxu1 }
 0x189   : > { %v1608_v30 = vpop.f32.mrf.mxu0 }
 0x18a   : > { %v1886_v40 = vpop.f32.mrf.mxu1 }
 0x18b   : > { %v1611_v55 = vpop.f32.mrf.mxu0 }
 0x18c   : > { %v4796_v58 = vadd.f32 %v1876_v60, %v1611_v55  ;;  %v1887_v26 = vpop.f32.mrf.mxu1 }
 0x18d   : > { %v1613_v35 = vpop.f32.mrf.mxu0 }
 0x18e   : > { %v1889_v29 = vpop.f32.mrf.mxu1 }
 0x18f   : > { %v1614_v10 = vpop.f32.mrf.mxu0 }
 0x190   : > { %v4798_v33 = vadd.f32 %v1879_v11, %v1614_v10  ;;  %v1892_v34 = vpop.f32.mrf.mxu1 }
 0x191   : > { %v1616_v21 = vpop.f32.mrf.mxu0 }
 0x192   : > { %v1894_v1 = vpop.f32.mrf.mxu1 }
 0x193   : > { %v1619_v62 = vpop.f32.mrf.mxu0 }
 0x194   : > { %v4800_v44 = vadd.f32 %v1884_v63, %v1619_v62  ;;  %v1895_v25 = vpop.f32.mrf.mxu1 }
 0x195   : > { %v1621_v36 = vpop.f32.mrf.mxu0 }
 0x196   : > { %v1897_v45 = vpop.f32.mrf.mxu1 }
 0x197   : > { %v1622_v27 = vpop.f32.mrf.mxu0 }
 0x198   : > { %v4802_v5 = vadd.f32 %v1887_v26, %v1622_v27  ;;  %v1900_v32 = vpop.f32.mrf.mxu1 }
 0x199   : > { %v1624_v0 = vpop.f32.mrf.mxu0 }
 0x19a   : > { %v1902_v15 = vpop.f32.mrf.mxu1 }
 0x19b   : > { %v1627_v51 = vpop.f32.mrf.mxu0 }
 0x19c   : > { %v4804_v3 = vadd.f32 %v1892_v34, %v1627_v51  ;;  %v1903_v31 = vpop.f32.mrf.mxu1 }
 0x19d   : > { %v1629_v52 = vpop.f32.mrf.mxu0 }
 0x19e   : > { %v1905_v42 = vpop.f32.mrf.mxu1 }
 0x19f   : > { %v1630_v48 = vpop.f32.mrf.mxu0 }
 0x1a0   : > { %v4806_v54 = vadd.f32 %v1895_v25, %v1630_v48  ;;  %v1908_v2 = vpop.f32.mrf.mxu1 }
 0x1a1   : > { %v1632_v14 = vpop.f32.mrf.mxu0 }
 0x1a2   : > { %v1910_v22 = vpop.f32.mrf.mxu1 }
 0x1a3   : > { %v1635_v61 = vpop.f32.mrf.mxu0 }
 0x1a4   : > { %v4808_v57 = vadd.f32 %v1900_v32, %v1635_v61  ;;  %v1911_v28 = vpop.f32.mrf.mxu1 }
 0x1a5   : > { %v1637_v59 = vpop.f32.mrf.mxu0 }
 0x1a6   : > { %v1913_v6 = vpop.f32.mrf.mxu1 }
 0x1a7   : > { %v1638_v19 = vpop.f32.mrf.mxu0 }
 0x1a8   : > { %v4810_v50 = vadd.f32 %v1903_v31, %v1638_v19  ;;  %v1916_v7 = vpop.f32.mrf.mxu1 }
 0x1a9   : > { %v1640_v16 = vpop.f32.mrf.mxu0 }
 0x1aa   : > { %v1918_v60 = vpop.f32.mrf.mxu1 }
 0x1ab   : > { %v1643_v43 = vpop.f32.mrf.mxu0 }
 0x1ac   : > { %v4812_v17 = vadd.f32 %v1908_v2, %v1643_v43  ;;  %v1919_v12 = vpop.f32.mrf.mxu1 }
 0x1ad   : > { %v1645_v11 = vpop.f32.mrf.mxu0 }
 0x1ae   : > { %v1921_v56 = vpop.f32.mrf.mxu1 }
 0x1af   : > { %v1646_v41 = vpop.f32.mrf.mxu0 }
 0x1b0   : > { %v4814_v39 = vadd.f32 %v1911_v28, %v1646_v41  ;;  %v1924_v63 = vpop.f32.mrf.mxu1 }
 0x1b1   : > { %v1648_v30 = vpop.f32.mrf.mxu0 }
 0x1b2   : > { %v1926_v40 = vpop.f32.mrf.mxu1 }
 0x1b3   : > { %v1651_v55 = vpop.f32.mrf.mxu0 }
 0x1b4   : > { %v1917_v26 = vadd.f32 %v1916_v7, %v1651_v55  ;;  %v1927_v35 = vpop.f32.mrf.mxu1 }
 0x1b5   : > { %v1653_v29 = vpop.f32.mrf.mxu0 }
 0x1b6   : > { %v1929_v10 = vpop.f32.mrf.mxu1 }
 0x1b7   : > { %v1654_v34 = vpop.f32.mrf.mxu0 }
 0x1b8   : > { %v1920_v21 = vadd.f32 %v1919_v12, %v1654_v34  ;;  %v1932_v1 = vpop.f32.mrf.mxu1 }
 0x1b9   : > { %v1656_v62 = vpop.f32.mrf.mxu0 }
 0x1ba   : > { %v1934_v25 = vpop.f32.mrf.mxu1 }
 0x1bb   : > { %v1659_v36 = vpop.f32.mrf.mxu0 }
 0x1bc   : > { %v1925_v45 = vadd.f32 %v1924_v63, %v1659_v36  ;;  %v1935_v27 = vpop.f32.mrf.mxu1 }
 0x1bd   : > { %v1661_v32 = vpop.f32.mrf.mxu0 }
 0x1be   : > { %v1937_v0 = vpop.f32.mrf.mxu1 }
 0x1bf   : > { %v1662_v15 = vpop.f32.mrf.mxu0 }
 0x1c0   : > { %v1928_v51 = vadd.f32 %v1927_v35, %v1662_v15  ;;  %v1940_v31 = vpop.f32.mrf.mxu1 }
 0x1c1   : > { %v1664_v52 = vpop.f32.mrf.mxu0 }
 0x1c2   : > { %v1942_v42 = vpop.f32.mrf.mxu1 }
 0x1c3   : > { %v1667_v48 = vpop.f32.mrf.mxu0 }
 0x1c4   : > { %v1933_v2 = vadd.f32 %v1932_v1, %v1667_v48  ;;  %v1943_v14 = vpop.f32.mrf.mxu1 }
 0x1c5   : > { %v1669_v22 = vpop.f32.mrf.mxu0 }
 0x1c6   : > { %v1945_v61 = vpop.f32.mrf.mxu1 }
 0x1c7   : > { %v1670_v28 = vpop.f32.mrf.mxu0 }
 0x1c8   : > { %v1936_v59 = vadd.f32 %v1935_v27, %v1670_v28  ;;  %v2343_v6 = vpop.f32.mrf.mxu1 }
 0x1c9   : > { %v4816_v19 = vadd.f32 %v2343_v6, %v1917_v26  ;;  %v1672_v7 = vpop.f32.mrf.mxu0 }
 0x1ca   : > { %v2345_v16 = vpop.f32.mrf.mxu1 }
 0x1cb   : > { %v1675_v60 = vpop.f32.mrf.mxu0 }
 0x1cc   : > { %v4818_v43 = vadd.f32 %v1940_v31, %v1675_v60  ;;  %v2346_v12 = vpop.f32.mrf.mxu1 }
 0x1cd   : > { %v4820_v11 = vadd.f32 %v2346_v12, %v1920_v21  ;;  %v1677_v56 = vpop.f32.mrf.mxu0 }
 0x1ce   : > { %v2348_v41 = vpop.f32.mrf.mxu1 }
 0x1cf   : > { %v1678_v63 = vpop.f32.mrf.mxu0 }
 0x1d0   : > { %v4822_v30 = vadd.f32 %v1943_v14, %v1678_v63  ;;  %v2351_v40 = vpop.f32.mrf.mxu1 }
 0x1d1   : > { %v4824_v55 = vadd.f32 %v2351_v40, %v1925_v45  ;;  %v1680_v35 = vpop.f32.mrf.mxu0 }
 0x1d2   : > { %v2353_v29 = vpop.f32.mrf.mxu1 }
 0x1d3   : > { %v2247_v26 = vpop.f32.mrf.mxu0 }
 0x1d4   : > { %v2354_v10 = vpop.f32.mrf.mxu1  ;;  %v2374_v60 = vadd.f32 %v2247_v26, %v4751_v9 }
 0x1d5   : > { %v4826_v34 = vadd.f32 %v2354_v10, %v1928_v51  ;;  %v2249_v1 = vpop.f32.mrf.mxu0 }
 0x1d6   : > { %v2356_v62 = vpop.f32.mrf.mxu1 }
 0x1d7   : > { %v2250_v25 = vpop.f32.mrf.mxu0 }
 0x1d8   : > { %v2359_v36 = vpop.f32.mrf.mxu1  ;;  %v2375_v10 = vadd.f32 %v2250_v25, %v4758_v53 }
 0x1d9   : > { %v4828_v21 = vadd.f32 %v2359_v36, %v1933_v2  ;;  %v2252_v27 = vpop.f32.mrf.mxu0 }
 0x1da   : > { %v2361_v32 = vpop.f32.mrf.mxu1 }
 0x1db   : > { %v2255_v0 = vpop.f32.mrf.mxu0 }
 0x1dc   : > { %v2362_v15 = vpop.f32.mrf.mxu1  ;;  %v2376_v2 = vadd.f32 %v2255_v0, %v4764_v38 }
 0x1dd   : > { %v4830_v31 = vadd.f32 %v2362_v15, %v1936_v59  ;;  %v2257_v45 = vpop.f32.mrf.mxu0  ;;  %v4840_v59 = vld [vmem:[%s5010_s2] ss:$0 sm:$0xff] }
 0x1de   : > { %v2364_v52 = vpop.f32.mrf.mxu1 }
 0x1df   : > { %v2258_v42 = vpop.f32.mrf.mxu0 }
 0x1e0   : > { %v4832_v48 = vpop.f32.mrf.mxu1  ;;  %v2377_v63 = vadd.f32 %v2258_v42, %v4769_v18 }
 0x1e1   : > { %v2260_v14 = vpop.f32.mrf.mxu0 }
 0x1e2   : > { %v2369_v51 = vpop.f32.mrf.mxu1 }
 0x1e3   : > { %v2263_v22 = vpop.f32.mrf.mxu0 }
 0x1e4   : > { %v4834_v61 = vpop.f32.mrf.mxu1  ;;  %v2378_v15 = vadd.f32 %v2263_v22, %v4774_v47 }
 0x1e5   : > { %v2265_v28 = vpop.f32.mrf.mxu0 }
 0x1e6   : > { %v2372_v6 = vpop.f32.mrf.mxu1 }
 0x1e7   : > { %v2266_v7 = vpop.f32.mrf.mxu0 }
 0x1e8   : > { %v3599_v16 = vpop.f32.mrf.mxu1 }
 0x1e9   : > { %v2761_v12 = vadd.f32 %v3599_v16, %v2376_v2  ;;  %v2268_v56 = vpop.f32.mrf.mxu0 }
 0x1ea   : > { %v2632_v41 = vpop.f32.mrf.mxu1 }
 0x1eb   : > { %v2800_v40 = vadd.f32 %v4840_v59, %v2761_v12  ;;  %v2759_v35 = vadd.f32 %v2632_v41, %v2374_v60  ;;  %v2271_v29 = vpop.f32.mrf.mxu0  ;;  %v2379_v12 = vadd.f32 %v2266_v7, %v4777_v23 }
 0x1ec   : > { %v3600_v38 = vpop.f32.mrf.mxu1  ;;  %v2380_v9 = vadd.f32 %v2271_v29, %v4780_v20 }
 0x1ed   : > { %v2832_v1 = vmax.f32 %v2800_v40, 0.0  ;;  %v2798_v62 = vadd.f32 %v4840_v59, %v2759_v35  ;;  %v2762_v36 = vadd.f32 %v3600_v38, %v2377_v63  ;;  %v2273_v27 = vpop.f32.mrf.mxu0 }
 0x1ee   : > { %v2635_v18 = vpop.f32.mrf.mxu1 }
 0x1ef   : > { %v3539_v26 = vpack.c.bf16 %v2832_v1, %v2832_v1  ;;  %v2830_v32 = vmax.f32 %v2798_v62, 0.0  ;;  %v2801_v53 = vadd.f32 %v4840_v59, %v2762_v36  ;;  %v2760_v25 = vadd.f32 %v2635_v18, %v2375_v10  ;;  %v2274_v0 = vpop.f32.mrf.mxu0 }
 0x1f0   : > { %v3603_v45 = vpop.f32.mrf.mxu1  ;;  %v2381_v28 = vadd.f32 %v2274_v0, %v4782_v37 }
 0x1f1   : > { %2993 = vst.msk [vmem:[%s4852_s11 + $0x8] sm:$0xf] %vm2990_vm3, %v3539_v26  ;;  %v3537_v52 = vpack.c.bf16 %v2830_v32, %v2830_v32  ;;  %v2833_v42 = vmax.f32 %v2801_v53, 0.0  ;;  %v2799_v14 = vadd.f32 %v4840_v59, %v2760_v25  ;;  %v2765_v51 = vadd.f32 %v3603_v45, %v2380_v9  ;;  %v2276_v20 = vpop.f32.mrf.mxu0 }
 0x1f2   : > { %v2648_v6 = vpop.f32.mrf.mxu1 }
 0x1f3   : > { %2991 = vst.msk [vmem:[%s4852_s11] sm:$0xf] %vm2990_vm3, %v3537_v52  ;;  %v3540_v2 = vpack.c.bf16 %v2833_v42, %v2833_v42  ;;  %v2831_v16 = vmax.f32 %v2799_v14, 0.0  ;;  %v2804_v47 = vadd.f32 %v4840_v59, %v2765_v51  ;;  %v2763_v22 = vadd.f32 %v2648_v6, %v2378_v15  ;;  %v2279_v60 = vpop.f32.mrf.mxu0 }
 0x1f4   : > { %v3604_v56 = vpop.f32.mrf.mxu1  ;;  %v2382_v27 = vadd.f32 %v2279_v60, %v4784_v8 }
 0x1f5   : > { %2994 = vst.msk [vmem:[%s4852_s11 + $0xc] sm:$0xf] %vm2990_vm3, %v3540_v2  ;;  %v3538_v41 = vpack.c.bf16 %v2831_v16, %v2831_v16  ;;  %v2836_v63 = vmax.f32 %v2804_v47, 0.0  ;;  %v2802_v37 = vadd.f32 %v4840_v59, %v2763_v22  ;;  %v2766_v40 = vadd.f32 %v3604_v56, %v2381_v28  ;;  %v2281_v35 = vpop.f32.mrf.mxu0 }
 0x1f6   : > { %v2651_v29 = vpop.f32.mrf.mxu1 }
 0x1f7   : > { %2992 = vst.msk [vmem:[%s4852_s11 + $0x4] sm:$0xf] %vm2990_vm3, %v3538_v41  ;;  %v3543_v38 = vpack.c.bf16 %v2836_v63, %v2836_v63  ;;  %v2834_v10 = vmax.f32 %v2802_v37, 0.0  ;;  %v2805_v1 = vadd.f32 %v4840_v59, %v2766_v40  ;;  %v2764_v62 = vadd.f32 %v2651_v29, %v2379_v12  ;;  %v2282_v23 = vpop.f32.mrf.mxu0 }
 0x1f8   : > { %v3607_v7 = vpop.f32.mrf.mxu1  ;;  %v2383_v8 = vadd.f32 %v2282_v23, %v4786_v49 }
 0x1f9   : > { %2997 = vst.msk [vmem:[%s4852_s11 + $0x18] sm:$0xf] %vm2990_vm3, %v3543_v38  ;;  %v3541_v36 = vpack.c.bf16 %v2834_v10, %v2834_v10  ;;  %v2837_v9 = vmax.f32 %v2805_v1, 0.0  ;;  %v2803_v18 = vadd.f32 %v4840_v59, %v2764_v62  ;;  %v2284_v26 = vpop.f32.mrf.mxu0 }
 0x1fa   : > { %v2664_v32 = vpop.f32.mrf.mxu1 }
 0x1fb   : > { %2995 = vst.msk [vmem:[%s4852_s11 + $0x10] sm:$0xf] %vm2990_vm3, %v3541_v36  ;;  %v3544_v53 = vpack.c.bf16 %v2837_v9, %v2837_v9  ;;  %v2835_v25 = vmax.f32 %v2803_v18, 0.0  ;;  %v2767_v0 = vadd.f32 %v2664_v32, %v2382_v27  ;;  %v2287_v15 = vpop.f32.mrf.mxu0 }
 0x1fc   : > { %v2384_v45 = vadd.f32 %v2287_v15, %v4788_v24  ;;  %v3608_v52 = vpop.f32.mrf.mxu1 }
 0x1fd   : > { %2998 = vst.msk [vmem:[%s4852_s11 + $0x1c] sm:$0xf] %vm2990_vm3, %v3544_v53  ;;  %v3542_v42 = vpack.c.bf16 %v2835_v25, %v2835_v25  ;;  %v2806_v14 = vadd.f32 %v4840_v59, %v2767_v0  ;;  %v2289_v51 = vpop.f32.mrf.mxu0 }
 0x1fe   : > { %v2769_v20 = vadd.f32 %v3607_v7, %v2384_v45  ;;  %v2667_v28 = vpop.f32.mrf.mxu1 }
 0x1ff   : > { %2996 = vst.msk [vmem:[%s4852_s11 + $0x14] sm:$0xf] %vm2990_vm3, %v3542_v42  ;;  %v2838_v6 = vmax.f32 %v2806_v14, 0.0  ;;  %v2768_v2 = vadd.f32 %v2667_v28, %v2383_v8  ;;  %v2290_v16 = vpop.f32.mrf.mxu0 }
 0x200   : > { %v2808_v47 = vadd.f32 %v4840_v59, %v2769_v20  ;;  %v2385_v24 = vadd.f32 %v2290_v16, %v4790_v4  ;;  %v3611_v22 = vpop.f32.mrf.mxu1 }
 0x201   : > { %v3545_v60 = vpack.c.bf16 %v2838_v6, %v2838_v6  ;;  %v2807_v49 = vadd.f32 %v4840_v59, %v2768_v2  ;;  %v2292_v12 = vpop.f32.mrf.mxu0 }
 0x202   : > { %v2840_v56 = vmax.f32 %v2808_v47, 0.0  ;;  %v2770_v41 = vadd.f32 %v3608_v52, %v2385_v24  ;;  %v2680_v63 = vpop.f32.mrf.mxu1 }
 0x203   : > { %2999 = vst.msk [vmem:[%s4852_s11 + $0x20] sm:$0xf] %vm2990_vm3, %v3545_v60  ;;  %v2839_v37 = vmax.f32 %v2807_v49, 0.0  ;;  %v2295_v40 = vpop.f32.mrf.mxu0 }
 0x204   : > { %v3547_v35 = vpack.c.bf16 %v2840_v56, %v2840_v56  ;;  %v2809_v29 = vadd.f32 %v4840_v59, %v2770_v41  ;;  %v2386_v4 = vadd.f32 %v2295_v40, %v4792_v13  ;;  %v3612_v38 = vpop.f32.mrf.mxu1 }
 0x205   : > { %v3546_v10 = vpack.c.bf16 %v2839_v37, %v2839_v37  ;;  %v2297_v1 = vpop.f32.mrf.mxu0 }
 0x206   : > { %3001 = vst.msk [vmem:[%s4852_s11 + $0x28] sm:$0xf] %vm2990_vm3, %v3547_v35  ;;  %v2841_v62 = vmax.f32 %v2809_v29, 0.0  ;;  %v2771_v23 = vadd.f32 %v2680_v63, %v2386_v4  ;;  %v2683_v7 = vpop.f32.mrf.mxu1 }
 0x207   : > { %3000 = vst.msk [vmem:[%s4852_s11 + $0x24] sm:$0xf] %vm2990_vm3, %v3546_v10  ;;  %v2298_v36 = vpop.f32.mrf.mxu0 }
 0x208   : > { %v3548_v27 = vpack.c.bf16 %v2841_v62, %v2841_v62  ;;  %v2810_v9 = vadd.f32 %v4840_v59, %v2771_v23  ;;  %v2387_v18 = vadd.f32 %v2298_v36, %v4794_v46  ;;  %v3615_v26 = vpop.f32.mrf.mxu1 }
 0x209   : > { %v2300_v32 = vpop.f32.mrf.mxu0 }
 0x20a   : > { %3002 = vst.msk [vmem:[%s4852_s11 + $0x2c] sm:$0xf] %vm2990_vm3, %v3548_v27  ;;  %v2842_v13 = vmax.f32 %v2810_v9, 0.0  ;;  %v2772_v53 = vadd.f32 %v2683_v7, %v2387_v18  ;;  %v2696_v25 = vpop.f32.mrf.mxu1 }
 0x20b   : > { %v2303_v0 = vpop.f32.mrf.mxu0 }
 0x20c   : > { %v3549_v15 = vpack.c.bf16 %v2842_v13, %v2842_v13  ;;  %v2811_v45 = vadd.f32 %v4840_v59, %v2772_v53  ;;  %v2388_v52 = vadd.f32 %v2303_v0, %v4796_v58  ;;  %v4901_v42 = vpop.f32.mrf.mxu1 }
 0x20d   : > { %v2305_v8 = vpop.f32.mrf.mxu0 }
 0x20e   : > { %3003 = vst.msk [vmem:[%s4852_s11 + $0x30] sm:$0xf] %vm2990_vm3, %v3549_v15  ;;  %v2843_v46 = vmax.f32 %v2811_v45, 0.0  ;;  %v2773_v14 = vadd.f32 %v3611_v22, %v2388_v52  ;;  %v2699_v51 = vpop.f32.mrf.mxu1  ;;  %v2404_v15 = vadd.f32 %v4832_v48, %v4818_v43 }
 0x20f   : > { %v2306_v20 = vpop.f32.mrf.mxu0 }
 0x210   : > { %v3550_v28 = vpack.c.bf16 %v2843_v46, %v2843_v46  ;;  %v2812_v6 = vadd.f32 %v4840_v59, %v2773_v14  ;;  %v2389_v2 = vadd.f32 %v2306_v20, %v4798_v33  ;;  %v4907_v16 = vpop.f32.mrf.mxu1 }
 0x211   : > { %v2308_v47 = vpop.f32.mrf.mxu0 }
 0x212   : > { %3004 = vst.msk [vmem:[%s4852_s11 + $0x34] sm:$0xf] %vm2990_vm3, %v3550_v28  ;;  %v2844_v58 = vmax.f32 %v2812_v6, 0.0  ;;  %v2774_v24 = vadd.f32 %v3612_v38, %v2389_v2  ;;  %v4911_v60 = vpop.f32.mrf.mxu1 }
 0x213   : > { %v2311_v49 = vpop.f32.mrf.mxu0 }
 0x214   : > { %v3551_v12 = vpack.c.bf16 %v2844_v58, %v2844_v58  ;;  %v2813_v22 = vadd.f32 %v4840_v59, %v2774_v24  ;;  %v2390_v56 = vadd.f32 %v2311_v49, %v4800_v44  ;;  %v4915_v41 = vpop.f32.mrf.mxu1 }
 0x215   : > { %v2313_v63 = vpop.f32.mrf.mxu0 }
 0x216   : > { %3005 = vst.msk [vmem:[%s4852_s11 + $0x38] sm:$0xf] %vm2990_vm3, %v3551_v12  ;;  %v2845_v33 = vmax.f32 %v2813_v22, 0.0  ;;  %v2775_v37 = vadd.f32 %v2696_v25, %v2390_v56  ;;  %v4919_v40 = vpop.f32.mrf.mxu1 }
 0x217   : > { %v2314_v35 = vpop.f32.mrf.mxu0 }
 0x218   : > { %v3552_v29 = vpack.c.bf16 %v2845_v33, %v2845_v33  ;;  %v2814_v4 = vadd.f32 %v4840_v59, %v2775_v37  ;;  %v2391_v38 = vadd.f32 %v2314_v35, %v4802_v5  ;;  %v3623_v10 = vpop.f32.mrf.mxu1 }
 0x219   : > { %v2785_v1 = vadd.f32 %v3623_v10, %v4824_v55  ;;  %v2316_v62 = vpop.f32.mrf.mxu0 }
 0x21a   : > { %3006 = vst.msk [vmem:[%s4852_s11 + $0x3c] sm:$0xf] %vm2990_vm3, %v3552_v29  ;;  %v2846_v44 = vmax.f32 %v2814_v4, 0.0  ;;  %v2776_v23 = vadd.f32 %v2699_v51, %v2391_v38  ;;  %v2728_v7 = vpop.f32.mrf.mxu1 }
 0x21b   : > { %v2824_v36 = vadd.f32 %v4840_v59, %v2785_v1  ;;  %v2783_v27 = vadd.f32 %v2728_v7, %v4816_v19  ;;  %v2319_v9 = vpop.f32.mrf.mxu0 }
 0x21c   : > { %v3553_v18 = vpack.c.bf16 %v2846_v44, %v2846_v44  ;;  %v2815_v32 = vadd.f32 %v4840_v59, %v2776_v23  ;;  %v2392_v5 = vadd.f32 %v2319_v9, %v4804_v3  ;;  %v3624_v13 = vpop.f32.mrf.mxu1 }
 0x21d   : > { %v2856_v53 = vmax.f32 %v2824_v36, 0.0  ;;  %v2822_v55 = vadd.f32 %v4840_v59, %v2783_v27  ;;  %v2786_v25 = vadd.f32 %v3624_v13, %v4826_v34  ;;  %v2321_v0 = vpop.f32.mrf.mxu0 }
 0x21e   : > { %3007 = vst.msk [vmem:[%s4852_s11 + $0x40] sm:$0xf] %vm2990_vm3, %v3553_v18  ;;  %v2847_v19 = vmax.f32 %v2815_v32, 0.0  ;;  %v2777_v45 = vadd.f32 %v3615_v26, %v2392_v5  ;;  %v2731_v52 = vpop.f32.mrf.mxu1 }
 0x21f   : > { %v3563_v8 = vpack.c.bf16 %v2856_v53, %v2856_v53  ;;  %v2854_v46 = vmax.f32 %v2822_v55, 0.0  ;;  %v2825_v3 = vadd.f32 %v4840_v59, %v2786_v25  ;;  %v2784_v14 = vadd.f32 %v2731_v52, %v4820_v11  ;;  %v2322_v51 = vpop.f32.mrf.mxu0 }
 0x220   : > { %v3554_v34 = vpack.c.bf16 %v2847_v19, %v2847_v19  ;;  %v2816_v20 = vadd.f32 %v4840_v59, %v2777_v45  ;;  %v2393_v28 = vadd.f32 %v2322_v51, %v4806_v54  ;;  %v3627_v43 = vpop.f32.mrf.mxu1  ;;  %v2405_v11 = vadd.f32 %v4834_v61, %v4822_v30 }
 0x221   : > { %3017 = vst.msk [vmem:[%s4852_s11 + $0x68] sm:$0xf] %vm2990_vm3, %v3563_v8  ;;  %v3561_v48 = vpack.c.bf16 %v2854_v46, %v2854_v46  ;;  %v2857_v26 = vmax.f32 %v2825_v3, 0.0  ;;  %v2823_v6 = vadd.f32 %v4840_v59, %v2784_v14  ;;  %v2789_v2 = vadd.f32 %v3627_v43, %v2404_v15  ;;  %v2324_v47 = vpop.f32.mrf.mxu0 }
 0x222   : > { %3008 = vst.msk [vmem:[%s4852_s11 + $0x44] sm:$0xf] %vm2990_vm3, %v3554_v34  ;;  %v2848_v58 = vmax.f32 %v2816_v20, 0.0  ;;  %v2778_v24 = vadd.f32 %v4901_v42, %v2393_v28  ;;  %v2744_v49 = vpop.f32.mrf.mxu1 }
 0x223   : > { %3015 = vst.msk [vmem:[%s4852_s11 + $0x60] sm:$0xf] %vm2990_vm3, %v3561_v48  ;;  %v3564_v54 = vpack.c.bf16 %v2857_v26, %v2857_v26  ;;  %v2855_v12 = vmax.f32 %v2823_v6, 0.0  ;;  %v2828_v22 = vadd.f32 %v4840_v59, %v2789_v2  ;;  %v2787_v56 = vadd.f32 %v2744_v49, %v4828_v21  ;;  %v2327_v63 = vpop.f32.mrf.mxu0 }
 0x224   : > { %v3555_v33 = vpack.c.bf16 %v2848_v58, %v2848_v58  ;;  %v2817_v30 = vadd.f32 %v4840_v59, %v2778_v24  ;;  %v2394_v61 = vadd.f32 %v2327_v63, %v4808_v57  ;;  %v3628_v37 = vpop.f32.mrf.mxu1 }
 0x225   : > { %3018 = vst.msk [vmem:[%s4852_s11 + $0x6c] sm:$0xf] %vm2990_vm3, %v3564_v54  ;;  %v3562_v42 = vpack.c.bf16 %v2855_v12, %v2855_v12  ;;  %v2860_v35 = vmax.f32 %v2828_v22, 0.0  ;;  %v2826_v29 = vadd.f32 %v4840_v59, %v2787_v56  ;;  %v2790_v4 = vadd.f32 %v3628_v37, %v2405_v11  ;;  %v2329_v38 = vpop.f32.mrf.mxu0 }
 0x226   : > { %3009 = vst.msk [vmem:[%s4852_s11 + $0x48] sm:$0xf] %vm2990_vm3, %v3555_v33  ;;  %v2849_v21 = vmax.f32 %v2817_v30, 0.0  ;;  %v2779_v10 = vadd.f32 %v4911_v60, %v2394_v61  ;;  %v2747_v1 = vpop.f32.mrf.mxu1 }
 0x227   : > { %3016 = vst.msk [vmem:[%s4852_s11 + $0x64] sm:$0xf] %vm2990_vm3, %v3562_v42  ;;  %v3567_v57 = vpack.c.bf16 %v2860_v35, %v2860_v35  ;;  %v2858_v62 = vmax.f32 %v2826_v29, 0.0  ;;  %v2829_v44 = vadd.f32 %v4840_v59, %v2790_v4  ;;  %v2788_v23 = vadd.f32 %v2747_v1, %v4830_v31  ;;  %v2330_v7 = vpop.f32.mrf.mxu0 }
 0x228   : > { %v3556_v36 = vpack.c.bf16 %v2849_v21, %v2849_v21  ;;  %v2818_v27 = vadd.f32 %v4840_v59, %v2779_v10  ;;  %v2395_v9 = vadd.f32 %v2330_v7, %v4810_v50 }
 0x229   : > { %3021 = vst.msk [vmem:[%s4852_s11 + $0x78] sm:$0xf] %vm2990_vm3, %v3567_v57  ;;  %v3565_v60 = vpack.c.bf16 %v2858_v62, %v2858_v62  ;;  %v2861_v18 = vmax.f32 %v2829_v44, 0.0  ;;  %v2827_v32 = vadd.f32 %v4840_v59, %v2788_v23  ;;  %v2332_v5 = vpop.f32.mrf.mxu0 }
 0x22a   : > { %3010 = vst.msk [vmem:[%s4852_s11 + $0x4c] sm:$0xf] %vm2990_vm3, %v3556_v36  ;;  %v2850_v13 = vmax.f32 %v2818_v27, 0.0  ;;  %v2780_v31 = vadd.f32 %v4919_v40, %v2395_v9 }
 0x22b   : > { %3019 = vst.msk [vmem:[%s4852_s11 + $0x70] sm:$0xf] %vm2990_vm3, %v3565_v60  ;;  %v3568_v53 = vpack.c.bf16 %v2861_v18, %v2861_v18  ;;  %v2859_v55 = vmax.f32 %v2827_v32, 0.0  ;;  %v2335_v50 = vpop.f32.mrf.mxu0 }
 0x22c   : > { %v3557_v25 = vpack.c.bf16 %v2850_v13, %v2850_v13  ;;  %v2819_v0 = vadd.f32 %v4840_v59, %v2780_v31  ;;  %v2396_v15 = vadd.f32 %v2335_v50, %v4812_v17 }
 0x22d   : > { %3022 = vst.msk [vmem:[%s4852_s11 + $0x7c] sm:$0xf] %vm2990_vm3, %v3568_v53  ;;  %v3566_v19 = vpack.c.bf16 %v2859_v55, %v2859_v55  ;;  %v2337_v45 = vpop.f32.mrf.mxu0 }
 0x22e   : > { %3011 = vst.msk [vmem:[%s4852_s11 + $0x50] sm:$0xf] %vm2990_vm3, %v3557_v25  ;;  %v2851_v52 = vmax.f32 %v2819_v0, 0.0  ;;  %v2781_v40 = vadd.f32 %v4907_v16, %v2396_v15 }
 0x22f   : > { %3020 = vst.msk [vmem:[%s4852_s11 + $0x74] sm:$0xf] %vm2990_vm3, %v3566_v19  ;;  %v2338_v8 = vpop.f32.mrf.mxu0 }
 0x230   : > { %v3558_v46 = vpack.c.bf16 %v2851_v52, %v2851_v52  ;;  %v2820_v3 = vadd.f32 %v4840_v59, %v2781_v40  ;;  %v2397_v14 = vadd.f32 %v2338_v8, %v4814_v39 }
 0x231   : > { %v2340_v17 = vpop.f32.mrf.mxu0 }
 0x232   : > { %3012 = vst.msk [vmem:[%s4852_s11 + $0x54] sm:$0xf] %vm2990_vm3, %v3558_v46  ;;  %v2852_v51 = vmax.f32 %v2820_v3, 0.0  ;;  %v2782_v34 = vadd.f32 %v4915_v41, %v2397_v14 }
 0x234   : > { %v3559_v20 = vpack.c.bf16 %v2852_v51, %v2852_v51  ;;  %v2821_v28 = vadd.f32 %v4840_v59, %v2782_v34 }
 0x236   : > { %3013 = vst.msk [vmem:[%s4852_s11 + $0x58] sm:$0xf] %vm2990_vm3, %v3559_v20  ;;  %v2853_v16 = vmax.f32 %v2821_v28, 0.0 }
 0x238   : > { %v3560_v43 = vpack.c.bf16 %v2853_v16, %v2853_v16 }
 0x23a   : > { %3014 = vst.msk [vmem:[%s4852_s11 + $0x5c] sm:$0xf] %vm2990_vm3, %v3560_v43 }
 0x23b PF: > { %s15_s22 = sadd.s32 1, %s3870_s22   ;;  %s5014_s18 = smov %s3862_s20 }
 0x23c   : > { %p12_p7 = scmp.ge.s32.totalorder %s15_s22, 10   ;;  %s5015_s19 = smov %s3866_s21 }
 0x23d   : > { %s5016_s20 = smov %s5019_s23  ;;  %s5017_s21 = smov %s5023_s24 }
 0x23e   :  { %14 = sbr.rel (!%p12_p7) target bundleno = 3 (0x3), region = 78 }

</bundles_post_ra>
